<compile_context>
chip_gen: v6e
topology: v6e:2x2x1
jax: 0.10.0
libtpu: 0.0.40
codegen_flags: <defaults>
</compile_context>

<pallas_src>
import functools

import jax
import jax.numpy as jnp
from jax.experimental import pallas as pl
from jax.experimental.pallas import tpu as pltpu


def _round_up(x, m):
    return (x + m - 1) // m * m


# ----------------------------------------------------------------------------
# Kernel
# ----------------------------------------------------------------------------
def _highway_max_kernel(ut_ref, us_ref, ue_ref, hid_ref,
                        wd_us_ref, wd_ue_ref, wd_h_ref, wd_b_ref,
                        w1_ut_ref, w1_r_ref, w1_b_ref,
                        w2_m1_ref, w2_b_ref,
                        w3_m1_ref, w3_m2_ref, w3_b_ref,
                        out_ref,
                        *, pool_size, out_pad_h, dot_dtype):
    f32 = jnp.float32

    def slab_linear_max(xs_ws, b_ref, out_pad):
        # Maxout computed slab-wise: per pool index k one (TILE_B, out_pad)
        # dot (+bias) folded into a running max.  The pool index is the slow
        # axis of the packed weights, so every slab is a 128-aligned lane
        # range: MXU dots + pure-VPU max, with a pool-x smaller live
        # intermediate than materializing (TILE_B, pool*out_pad).
        m = None
        for k in range(pool_size):                    # static, unrolled
            lo = k * out_pad
            y = b_ref[:, lo:lo + out_pad]             # f32 (1, out_pad) bias
            for x, w_ref in xs_ws:
                y = y + jnp.dot(x, w_ref[:, lo:lo + out_pad],
                                preferred_element_type=f32)
            m = y if m is None else jnp.maximum(m, y)
        return m

    # r = tanh(WD(cat([us, ue, hidden], 1)))  -- concat replaced by split dots.
    r = jnp.tanh(
        jnp.dot(us_ref[...], wd_us_ref[...], preferred_element_type=f32)
        + jnp.dot(ue_ref[...], wd_ue_ref[...], preferred_element_type=f32)
        + jnp.dot(hid_ref[...], wd_h_ref[...], preferred_element_type=f32)
        + wd_b_ref[...])
    r_c = r.astype(dot_dtype)

    # m1 = maxout(W1(cat([ut, r], 1)))
    m1 = slab_linear_max([(ut_ref[...], w1_ut_ref), (r_c, w1_r_ref)],
                         w1_b_ref, out_pad_h)
    m1_c = m1.astype(dot_dtype)

    # m2 = maxout(W2(m1))
    m2 = slab_linear_max([(m1_c, w2_m1_ref)], w2_b_ref, out_pad_h)
    m2_c = m2.astype(dot_dtype)

    # m3 = maxout(W3(cat([m1, m2], 1)))  -- the single output unit's pool
    # logits are packed along lanes; unused bias lanes are -inf so an
    # unmasked lane-max is exact.
    y3 = (jnp.dot(m1_c, w3_m1_ref[...], preferred_element_type=f32)
          + jnp.dot(m2_c, w3_m2_ref[...], preferred_element_type=f32)
          + w3_b_ref[...])                            # (TILE_B, lanes>=pool)
    m3 = jnp.max(y3, axis=-1, keepdims=True)          # (TILE_B, 1)

    out_ref[...] = jnp.broadcast_to(m3, out_ref.shape)   # lane-dense store


# ----------------------------------------------------------------------------
# One-time weight preparation (hoisted out of the per-call path)
# ----------------------------------------------------------------------------
def _prep_maxout(w, b, in_splits, out_feats, pool, out_pad, dtype):
    """PyTorch Linear (out*pool, in_total)/(out*pool,) -> per-input-split
    (in_pad_i, pool*out_pad) weights (pool SLOW axis) + (1, pool*out_pad) f32
    bias."""
    w3 = w.reshape(out_feats, pool, -1)               # (out, pool, in)
    wt = jnp.transpose(w3, (2, 1, 0))                 # (in, pool, out)
    wt = jnp.pad(wt, ((0, 0), (0, 0), (0, out_pad - out_feats)))
    b2 = b.reshape(out_feats, pool).T                 # (pool, out)
    b2 = jnp.pad(b2, ((0, 0), (0, out_pad - out_feats)))
    b2 = b2.reshape(1, pool * out_pad).astype(jnp.float32)

    ws, start = [], 0
    for in_f in in_splits:
        wi = wt[start:start + in_f]
        start += in_f
        in_pad = _round_up(in_f, 128)
        wi = jnp.pad(wi, ((0, in_pad - in_f), (0, 0), (0, 0)))
        ws.append(wi.reshape(in_pad, pool * out_pad).astype(dtype))
    return tuple(ws), b2


def _prep_w3_packed(w, b, in_splits, pool, dtype):
    """Single-output-unit maxout Linear (pool, in_total)/(pool,) -> per-split
    (in_pad_i, lanes) weights with the pool index packed along lanes, and a
    (1, lanes) f32 bias whose unused lanes are -inf (so a plain lane-max over
    y3 is exact)."""
    lanes = _round_up(pool, 128)
    wt = jnp.pad(w.T, ((0, 0), (0, lanes - pool)))    # (in_total, lanes)
    b_packed = jnp.full((1, lanes), -jnp.inf, jnp.float32)
    b_packed = b_packed.at[0, :pool].set(b.astype(jnp.float32))

    ws, start = [], 0
    for in_f in in_splits:
        wi = wt[start:start + in_f]
        start += in_f
        in_pad = _round_up(in_f, 128)
        wi = jnp.pad(wi, ((0, in_pad - in_f), (0, 0)))
        ws.append(wi.astype(dtype))
    return tuple(ws), b_packed


def _prep_wd(w, b, in_splits, h, h_pad, dtype):
    """PyTorch Linear (h, 5h)/(h,) -> per-input-split (in_pad_i, h_pad) + (1, h_pad)."""
    wt = jnp.pad(w.T, ((0, 0), (0, h_pad - h)))       # (5h, h_pad)
    ws, start = [], 0
    for in_f in in_splits:
        wi = wt[start:start + in_f]
        start += in_f
        in_pad = _round_up(in_f, 128)
        wi = jnp.pad(wi, ((0, in_pad - in_f), (0, 0)))
        ws.append(wi.astype(dtype))
    bp = jnp.pad(b.reshape(1, h), ((0, 0), (0, h_pad - h))).astype(jnp.float32)
    return tuple(ws), bp


def prepare_params(params, *, hidden_size, pool_size, dot_dtype=jnp.bfloat16):
    h, p = hidden_size, pool_size
    h_pad = _round_up(h, 128)
    wd = _prep_wd(*params["WD"], in_splits=(2 * h, 2 * h, h),
                  h=h, h_pad=h_pad, dtype=dot_dtype)
    w1 = _prep_maxout(*params["W1"], in_splits=(2 * h, h),
                      out_feats=h, pool=p, out_pad=h_pad, dtype=dot_dtype)
    w2 = _prep_maxout(*params["W2"], in_splits=(h,),
                      out_feats=h, pool=p, out_pad=h_pad, dtype=dot_dtype)
    w3 = _prep_w3_packed(*params["W3"], in_splits=(h, h),
                         pool=p, dtype=dot_dtype)
    return {"wd": wd, "w1": w1, "w2": w2, "w3": w3}


# ----------------------------------------------------------------------------
# Wrapper
# ----------------------------------------------------------------------------
def highway_max(ut, us, ue, hidden, prep, *, hidden_size, pool_size,
                tile_b=512, dot_dtype=jnp.bfloat16, vmem_limit_bytes=None):
    """Fused HighwayMax forward.  Returns (B, 1) f32.

    tile_b notes: with bf16 operands + single-buffered weights the per-core
    budget stays small; v6e (128 MiB VMEM) can raise tile_b to 1024-2048,
    v7x (64 MiB per core, weights duplicated on both cores) ~1024, v5e works
    at 512-1024 once vmem_limit_bytes is raised above its 16 MiB scoped
    default (physical VMEM on v5e is 128 MiB)."""
    h, p = hidden_size, pool_size
    h_pad = _round_up(h, 128)
    in2_pad = _round_up(2 * h, 128)

    itemsize = jnp.dtype(dot_dtype).itemsize
    row_mult = {4: 8, 2: 16, 1: 32}[itemsize]         # sublane packing

    B = ut.shape[0]
    # Prefer >=2 grid steps so both v7x TensorCores get work ("parallel" axis).
    if B >= 2 * row_mult:
        tile_b = min(tile_b, _round_up(-(-B // 2), row_mult))
    tile_b = _round_up(max(row_mult, min(tile_b, _round_up(B, row_mult))),
                       row_mult)
    Bp = _round_up(B, tile_b)

    def pad_act(x, feat_pad):
        xp = jnp.pad(x, ((0, Bp - B), (0, feat_pad - x.shape[1])))
        return xp.astype(dot_dtype)

    ut_p = pad_act(ut, in2_pad)
    us_p = pad_act(us, in2_pad)
    ue_p = pad_act(ue, in2_pad)
    hid_p = pad_act(hidden, h_pad)

    (wd_us, wd_ue, wd_h), wd_b = prep["wd"]
    (w1_ut, w1_r), w1_b = prep["w1"]
    (w2_m1,), w2_b = prep["w2"]
    (w3_m1, w3_m2), w3_b = prep["w3"]

    args = (ut_p, us_p, ue_p, hid_p,
            wd_us, wd_ue, wd_h, wd_b,
            w1_ut, w1_r, w1_b,
            w2_m1, w2_b,
            w3_m1, w3_m2, w3_b)
    weight_args = args[4:]

    # Explicit VMEM budget: weights (conservatively x2 buffers) + double-
    # buffered activation tiles + output + f32 intermediates + margin,
    # clamped to [32 MiB, 64 MiB] which is safe on v5e/v6e/v7x.
    if vmem_limit_bytes is None:
        w_bytes = sum(int(a.size) * a.dtype.itemsize for a in weight_args)
        act_bytes = tile_b * (3 * in2_pad + h_pad) * itemsize
        out_bytes = tile_b * 128 * 4
        inter_bytes = tile_b * h_pad * 4 * 8
        need = 2 * w_bytes + 2 * act_bytes + 2 * out_bytes + inter_bytes
        vmem_limit_bytes = int(min(max(int(need * 1.25) + (4 << 20), 32 << 20),
                                   64 << 20))

    kernel = functools.partial(_highway_max_kernel, pool_size=p,
                               out_pad_h=h_pad, dot_dtype=dot_dtype)

    def row_spec(feat):
        return pl.BlockSpec((tile_b, feat), lambda i: (i, 0))

    def run(single_buffer_weights):
        def const_spec(a):
            if single_buffer_weights:
                # Constant index_map -> weights revisited every step; one
                # resident buffer is enough (halves weight VMEM).
                return pl.BlockSpec(a.shape, lambda i: (0, 0),
                                    pipeline_mode=pl.Buffered(1))
            return pl.BlockSpec(a.shape, lambda i: (0, 0))

        in_specs = ([row_spec(in2_pad)] * 3 + [row_spec(h_pad)]
                    + [const_spec(a) for a in weight_args])
        return pl.pallas_call(
            kernel,
            out_shape=jax.ShapeDtypeStruct((Bp, 128), jnp.float32),
            grid=(Bp // tile_b,),
            in_specs=in_specs,
            out_specs=row_spec(128),
            compiler_params=pltpu.CompilerParams(
                dimension_semantics=("parallel",),
                vmem_limit_bytes=vmem_limit_bytes),
        )(*args)

    try:
        out_pad = run(True)
    except Exception:
        # TODO(synk): this jax build rejected pipeline_mode=pl.Buffered(1) for
        # the constant weight specs; fall back to default double-buffering.
        out_pad = run(False)

    return out_pad[:B, :1]


# ----------------------------------------------------------------------------
# Pure-JAX reference (exact PyTorch semantics) and init
# ----------------------------------------------------------------------------
def init_params(key, hidden_size, pool_size):
    def linear(k, out_f, in_f):
        k1, k2 = jax.random.split(k)
        bound = 1.0 / jnp.sqrt(jnp.float32(in_f))
        w = jax.random.uniform(k1, (out_f, in_f), jnp.float32, -bound, bound)
        b = jax.random.uniform(k2, (out_f,), jnp.float32, -bound, bound)
        return w, b

    h, p = hidden_size, pool_size
    kd, k1, k2, k3 = jax.random.split(key, 4)
    return {
        "WD": linear(kd, h, 5 * h),
        "W1": linear(k1, h * p, 3 * h),
        "W2": linear(k2, h * p, h),
        "W3": linear(k3, 1 * p, 2 * h),
    }


def highway_max_ref(ut, us, ue, hidden, params, *, hidden_size, pool_size):
    def lin(x, wb):
        w, b = wb
        return x @ w.T + b

    def maxout(x, wb, out_feats):
        y = lin(x, wb)
        return y.reshape(x.shape[0], out_feats, pool_size).max(axis=-1)

    r = jnp.tanh(lin(jnp.concatenate([us, ue, hidden], 1), params["WD"]))
    m1 = maxout(jnp.concatenate([ut, r], 1), params["W1"], hidden_size)
    m2 = maxout(m1, params["W2"], hidden_size)
    m3 = maxout(jnp.concatenate([m1, m2], 1), params["W3"], 1)
    return m3


if __name__ == "__main__":
    B, H, P = 8, 32, 8
    key = jax.random.PRNGKey(0)
    k_ut, k_us, k_ue, k_h, k_p = jax.random.split(key, 5)
    ut = jax.random.normal(k_ut, (B, 2 * H), jnp.float32)
    us = jax.random.normal(k_us, (B, 2 * H), jnp.float32)
    ue = jax.random.normal(k_ue, (B, 2 * H), jnp.float32)
    hidden = jax.random.normal(k_h, (B, H), jnp.float32)
    params = init_params(k_p, H, P)

    ref = highway_max_ref(ut, us, ue, hidden, params,
                          hidden_size=H, pool_size=P)

    # Default bf16 MXU-operand path (accumulation / bias / tanh / max in f32).
    prep16 = prepare_params(params, hidden_size=H, pool_size=P)
    out16 = highway_max(ut, us, ue, hidden, prep16,
                        hidden_size=H, pool_size=P)
    out16 = jax.block_until_ready(out16)
    assert out16.shape == (B, 1), out16.shape
    assert jnp.allclose(out16, ref, atol=1e-1, rtol=1e-1), (out16, ref)

    # f32 path (bit-accurate correctness check).
    prep32 = prepare_params(params, hidden_size=H, pool_size=P,
                            dot_dtype=jnp.float32)
    out32 = highway_max(ut, us, ue, hidden, prep32,
                        hidden_size=H, pool_size=P, dot_dtype=jnp.float32)
    out32 = jax.block_until_ready(out32)
    assert out32.shape == (B, 1), out32.shape
    assert jnp.allclose(out32, ref, atol=1e-5, rtol=1e-5), (out32, ref)

    print("KERNEL_OK")
</pallas_src>

<mosaic_0001>
module attributes {stable_mosaic.version = 11 : i64} {
  func.func @_highway_max_kernel(%arg0: i32, %arg1: memref<16x128xbf16, #tpu.memory_space<vmem>>, %arg2: memref<16x128xbf16, #tpu.memory_space<vmem>>, %arg3: memref<16x128xbf16, #tpu.memory_space<vmem>>, %arg4: memref<16x128xbf16, #tpu.memory_space<vmem>>, %arg5: memref<128x128xbf16, #tpu.memory_space<vmem>>, %arg6: memref<128x128xbf16, #tpu.memory_space<vmem>>, %arg7: memref<128x128xbf16, #tpu.memory_space<vmem>>, %arg8: memref<1x128xf32, #tpu.memory_space<vmem>>, %arg9: memref<128x1024xbf16, #tpu.memory_space<vmem>>, %arg10: memref<128x1024xbf16, #tpu.memory_space<vmem>>, %arg11: memref<1x1024xf32, #tpu.memory_space<vmem>>, %arg12: memref<128x1024xbf16, #tpu.memory_space<vmem>>, %arg13: memref<1x1024xf32, #tpu.memory_space<vmem>>, %arg14: memref<128x128xbf16, #tpu.memory_space<vmem>>, %arg15: memref<128x128xbf16, #tpu.memory_space<vmem>>, %arg16: memref<1x128xf32, #tpu.memory_space<vmem>>, %arg17: memref<16x128xf32, #tpu.memory_space<vmem>>) attributes {dimension_semantics = [#tpu.dimension_semantics<parallel>], iteration_bounds = array<i64: 1>, scalar_prefetch = 0 : i64, scratch_operands = 0 : i64, tpu.core_type = #tpu.core_type<tc>, window_params = [{transform_indices = @transform_0, window_bounds = array<i64: 16, 128>}, {transform_indices = @transform_1, window_bounds = array<i64: 16, 128>}, {transform_indices = @transform_2, window_bounds = array<i64: 16, 128>}, {transform_indices = @transform_3, window_bounds = array<i64: 16, 128>}, {pipeline_mode = #tpu.pipeline_mode<synchronous>, transform_indices = @transform_4, window_bounds = array<i64: 128, 128>}, {pipeline_mode = #tpu.pipeline_mode<synchronous>, transform_indices = @transform_5, window_bounds = array<i64: 128, 128>}, {pipeline_mode = #tpu.pipeline_mode<synchronous>, transform_indices = @transform_6, window_bounds = array<i64: 128, 128>}, {pipeline_mode = #tpu.pipeline_mode<synchronous>, transform_indices = @transform_7, window_bounds = array<i64: 1, 128>}, {pipeline_mode = #tpu.pipeline_mode<synchronous>, transform_indices = @transform_8, window_bounds = array<i64: 128, 1024>}, {pipeline_mode = #tpu.pipeline_mode<synchronous>, transform_indices = @transform_9, window_bounds = array<i64: 128, 1024>}, {pipeline_mode = #tpu.pipeline_mode<synchronous>, transform_indices = @transform_10, window_bounds = array<i64: 1, 1024>}, {pipeline_mode = #tpu.pipeline_mode<synchronous>, transform_indices = @transform_11, window_bounds = array<i64: 128, 1024>}, {pipeline_mode = #tpu.pipeline_mode<synchronous>, transform_indices = @transform_12, window_bounds = array<i64: 1, 1024>}, {pipeline_mode = #tpu.pipeline_mode<synchronous>, transform_indices = @transform_13, window_bounds = array<i64: 128, 128>}, {pipeline_mode = #tpu.pipeline_mode<synchronous>, transform_indices = @transform_14, window_bounds = array<i64: 128, 128>}, {pipeline_mode = #tpu.pipeline_mode<synchronous>, transform_indices = @transform_15, window_bounds = array<i64: 1, 128>}, {transform_indices = @transform_16, window_bounds = array<i64: 16, 128>}]} {
    %c0 = arith.constant 0 : index
    %c0_0 = arith.constant 0 : index
    %0 = vector.load %arg2[%c0, %c0_0] : memref<16x128xbf16, #tpu.memory_space<vmem>>, vector<16x128xbf16>
    %c0_1 = arith.constant 0 : index
    %c0_2 = arith.constant 0 : index
    %1 = vector.load %arg5[%c0_1, %c0_2] : memref<128x128xbf16, #tpu.memory_space<vmem>>, vector<128x128xbf16>
    %cst = arith.constant dense<0.000000e+00> : vector<16x128xf32>
    %2 = tpu.matmul %0, %1, %cst {dimension_numbers = #tpu.dot_dimension_numbers<[1], [0], [0], [1], [0, 0, 1, 1], [], []>} : vector<16x128xbf16>, vector<128x128xbf16>, vector<16x128xf32> -> vector<16x128xf32>
    %c0_3 = arith.constant 0 : index
    %c0_4 = arith.constant 0 : index
    %3 = vector.load %arg3[%c0_3, %c0_4] : memref<16x128xbf16, #tpu.memory_space<vmem>>, vector<16x128xbf16>
    %c0_5 = arith.constant 0 : index
    %c0_6 = arith.constant 0 : index
    %4 = vector.load %arg6[%c0_5, %c0_6] : memref<128x128xbf16, #tpu.memory_space<vmem>>, vector<128x128xbf16>
    %cst_7 = arith.constant dense<0.000000e+00> : vector<16x128xf32>
    %5 = tpu.matmul %3, %4, %cst_7 {dimension_numbers = #tpu.dot_dimension_numbers<[1], [0], [0], [1], [0, 0, 1, 1], [], []>} : vector<16x128xbf16>, vector<128x128xbf16>, vector<16x128xf32> -> vector<16x128xf32>
    %6 = arith.addf %2, %5 : vector<16x128xf32>
    %c0_8 = arith.constant 0 : index
    %c0_9 = arith.constant 0 : index
    %7 = vector.load %arg4[%c0_8, %c0_9] : memref<16x128xbf16, #tpu.memory_space<vmem>>, vector<16x128xbf16>
    %c0_10 = arith.constant 0 : index
    %c0_11 = arith.constant 0 : index
    %8 = vector.load %arg7[%c0_10, %c0_11] : memref<128x128xbf16, #tpu.memory_space<vmem>>, vector<128x128xbf16>
    %cst_12 = arith.constant dense<0.000000e+00> : vector<16x128xf32>
    %9 = tpu.matmul %7, %8, %cst_12 {dimension_numbers = #tpu.dot_dimension_numbers<[1], [0], [0], [1], [0, 0, 1, 1], [], []>} : vector<16x128xbf16>, vector<128x128xbf16>, vector<16x128xf32> -> vector<16x128xf32>
    %10 = arith.addf %6, %9 : vector<16x128xf32>
    %c0_13 = arith.constant 0 : index
    %c0_14 = arith.constant 0 : index
    %11 = vector.load %arg8[%c0_13, %c0_14] : memref<1x128xf32, #tpu.memory_space<vmem>>, vector<1x128xf32>
    %12 = vector.broadcast %11 : vector<1x128xf32> to vector<16x128xf32>
    %13 = arith.addf %10, %12 : vector<16x128xf32>
    %14 = math.tanh %13 : vector<16x128xf32>
    %15 = arith.truncf %14 : vector<16x128xf32> to vector<16x128xbf16>
    %c0_15 = arith.constant 0 : index
    %c0_16 = arith.constant 0 : index
    %16 = vector.load %arg1[%c0_15, %c0_16] : memref<16x128xbf16, #tpu.memory_space<vmem>>, vector<16x128xbf16>
    %c0_17 = arith.constant 0 : index
    %c0_18 = arith.constant 0 : index
    %17 = vector.load %arg11[%c0_17, %c0_18] : memref<1x1024xf32, #tpu.memory_space<vmem>>, vector<1x128xf32>
    %c0_19 = arith.constant 0 : index
    %c0_20 = arith.constant 0 : index
    %18 = vector.load %arg9[%c0_19, %c0_20] : memref<128x1024xbf16, #tpu.memory_space<vmem>>, vector<128x128xbf16>
    %cst_21 = arith.constant dense<0.000000e+00> : vector<16x128xf32>
    %19 = tpu.matmul %16, %18, %cst_21 {dimension_numbers = #tpu.dot_dimension_numbers<[1], [0], [0], [1], [0, 0, 1, 1], [], []>} : vector<16x128xbf16>, vector<128x128xbf16>, vector<16x128xf32> -> vector<16x128xf32>
    %20 = vector.broadcast %17 : vector<1x128xf32> to vector<16x128xf32>
    %21 = arith.addf %20, %19 : vector<16x128xf32>
    %c0_22 = arith.constant 0 : index
    %c0_23 = arith.constant 0 : index
    %22 = vector.load %arg10[%c0_22, %c0_23] : memref<128x1024xbf16, #tpu.memory_space<vmem>>, vector<128x128xbf16>
    %cst_24 = arith.constant dense<0.000000e+00> : vector<16x128xf32>
    %23 = tpu.matmul %15, %22, %cst_24 {dimension_numbers = #tpu.dot_dimension_numbers<[1], [0], [0], [1], [0, 0, 1, 1], [], []>} : vector<16x128xbf16>, vector<128x128xbf16>, vector<16x128xf32> -> vector<16x128xf32>
    %24 = arith.addf %21, %23 : vector<16x128xf32>
    %c0_25 = arith.constant 0 : index
    %c128 = arith.constant 128 : index
    %25 = vector.load %arg11[%c0_25, %c128] : memref<1x1024xf32, #tpu.memory_space<vmem>>, vector<1x128xf32>
    %c0_26 = arith.constant 0 : index
    %c128_27 = arith.constant 128 : index
    %26 = vector.load %arg9[%c0_26, %c128_27] : memref<128x1024xbf16, #tpu.memory_space<vmem>>, vector<128x128xbf16>
    %cst_28 = arith.constant dense<0.000000e+00> : vector<16x128xf32>
    %27 = tpu.matmul %16, %26, %cst_28 {dimension_numbers = #tpu.dot_dimension_numbers<[1], [0], [0], [1], [0, 0, 1, 1], [], []>} : vector<16x128xbf16>, vector<128x128xbf16>, vector<16x128xf32> -> vector<16x128xf32>
    %28 = vector.broadcast %25 : vector<1x128xf32> to vector<16x128xf32>
    %29 = arith.addf %28, %27 : vector<16x128xf32>
    %c0_29 = arith.constant 0 : index
    %c128_30 = arith.constant 128 : index
    %30 = vector.load %arg10[%c0_29, %c128_30] : memref<128x1024xbf16, #tpu.memory_space<vmem>>, vector<128x128xbf16>
    %cst_31 = arith.constant dense<0.000000e+00> : vector<16x128xf32>
    %31 = tpu.matmul %15, %30, %cst_31 {dimension_numbers = #tpu.dot_dimension_numbers<[1], [0], [0], [1], [0, 0, 1, 1], [], []>} : vector<16x128xbf16>, vector<128x128xbf16>, vector<16x128xf32> -> vector<16x128xf32>
    %32 = arith.addf %29, %31 : vector<16x128xf32>
    %33 = arith.maximumf %24, %32 : vector<16x128xf32>
    %c0_32 = arith.constant 0 : index
    %c256 = arith.constant 256 : index
    %34 = vector.load %arg11[%c0_32, %c256] : memref<1x1024xf32, #tpu.memory_space<vmem>>, vector<1x128xf32>
    %c0_33 = arith.constant 0 : index
    %c256_34 = arith.constant 256 : index
    %35 = vector.load %arg9[%c0_33, %c256_34] : memref<128x1024xbf16, #tpu.memory_space<vmem>>, vector<128x128xbf16>
    %cst_35 = arith.constant dense<0.000000e+00> : vector<16x128xf32>
    %36 = tpu.matmul %16, %35, %cst_35 {dimension_numbers = #tpu.dot_dimension_numbers<[1], [0], [0], [1], [0, 0, 1, 1], [], []>} : vector<16x128xbf16>, vector<128x128xbf16>, vector<16x128xf32> -> vector<16x128xf32>
    %37 = vector.broadcast %34 : vector<1x128xf32> to vector<16x128xf32>
    %38 = arith.addf %37, %36 : vector<16x128xf32>
    %c0_36 = arith.constant 0 : index
    %c256_37 = arith.constant 256 : index
    %39 = vector.load %arg10[%c0_36, %c256_37] : memref<128x1024xbf16, #tpu.memory_space<vmem>>, vector<128x128xbf16>
    %cst_38 = arith.constant dense<0.000000e+00> : vector<16x128xf32>
    %40 = tpu.matmul %15, %39, %cst_38 {dimension_numbers = #tpu.dot_dimension_numbers<[1], [0], [0], [1], [0, 0, 1, 1], [], []>} : vector<16x128xbf16>, vector<128x128xbf16>, vector<16x128xf32> -> vector<16x128xf32>
    %41 = arith.addf %38, %40 : vector<16x128xf32>
    %42 = arith.maximumf %33, %41 : vector<16x128xf32>
    %c0_39 = arith.constant 0 : index
    %c384 = arith.constant 384 : index
    %43 = vector.load %arg11[%c0_39, %c384] : memref<1x1024xf32, #tpu.memory_space<vmem>>, vector<1x128xf32>
    %c0_40 = arith.constant 0 : index
    %c384_41 = arith.constant 384 : index
    %44 = vector.load %arg9[%c0_40, %c384_41] : memref<128x1024xbf16, #tpu.memory_space<vmem>>, vector<128x128xbf16>
    %cst_42 = arith.constant dense<0.000000e+00> : vector<16x128xf32>
    %45 = tpu.matmul %16, %44, %cst_42 {dimension_numbers = #tpu.dot_dimension_numbers<[1], [0], [0], [1], [0, 0, 1, 1], [], []>} : vector<16x128xbf16>, vector<128x128xbf16>, vector<16x128xf32> -> vector<16x128xf32>
    %46 = vector.broadcast %43 : vector<1x128xf32> to vector<16x128xf32>
    %47 = arith.addf %46, %45 : vector<16x128xf32>
    %c0_43 = arith.constant 0 : index
    %c384_44 = arith.constant 384 : index
    %48 = vector.load %arg10[%c0_43, %c384_44] : memref<128x1024xbf16, #tpu.memory_space<vmem>>, vector<128x128xbf16>
    %cst_45 = arith.constant dense<0.000000e+00> : vector<16x128xf32>
    %49 = tpu.matmul %15, %48, %cst_45 {dimension_numbers = #tpu.dot_dimension_numbers<[1], [0], [0], [1], [0, 0, 1, 1], [], []>} : vector<16x128xbf16>, vector<128x128xbf16>, vector<16x128xf32> -> vector<16x128xf32>
    %50 = arith.addf %47, %49 : vector<16x128xf32>
    %51 = arith.maximumf %42, %50 : vector<16x128xf32>
    %c0_46 = arith.constant 0 : index
    %c512 = arith.constant 512 : index
    %52 = vector.load %arg11[%c0_46, %c512] : memref<1x1024xf32, #tpu.memory_space<vmem>>, vector<1x128xf32>
    %c0_47 = arith.constant 0 : index
    %c512_48 = arith.constant 512 : index
    %53 = vector.load %arg9[%c0_47, %c512_48] : memref<128x1024xbf16, #tpu.memory_space<vmem>>, vector<128x128xbf16>
    %cst_49 = arith.constant dense<0.000000e+00> : vector<16x128xf32>
    %54 = tpu.matmul %16, %53, %cst_49 {dimension_numbers = #tpu.dot_dimension_numbers<[1], [0], [0], [1], [0, 0, 1, 1], [], []>} : vector<16x128xbf16>, vector<128x128xbf16>, vector<16x128xf32> -> vector<16x128xf32>
    %55 = vector.broadcast %52 : vector<1x128xf32> to vector<16x128xf32>
    %56 = arith.addf %55, %54 : vector<16x128xf32>
    %c0_50 = arith.constant 0 : index
    %c512_51 = arith.constant 512 : index
    %57 = vector.load %arg10[%c0_50, %c512_51] : memref<128x1024xbf16, #tpu.memory_space<vmem>>, vector<128x128xbf16>
    %cst_52 = arith.constant dense<0.000000e+00> : vector<16x128xf32>
    %58 = tpu.matmul %15, %57, %cst_52 {dimension_numbers = #tpu.dot_dimension_numbers<[1], [0], [0], [1], [0, 0, 1, 1], [], []>} : vector<16x128xbf16>, vector<128x128xbf16>, vector<16x128xf32> -> vector<16x128xf32>
    %59 = arith.addf %56, %58 : vector<16x128xf32>
    %60 = arith.maximumf %51, %59 : vector<16x128xf32>
    %c0_53 = arith.constant 0 : index
    %c640 = arith.constant 640 : index
    %61 = vector.load %arg11[%c0_53, %c640] : memref<1x1024xf32, #tpu.memory_space<vmem>>, vector<1x128xf32>
    %c0_54 = arith.constant 0 : index
    %c640_55 = arith.constant 640 : index
    %62 = vector.load %arg9[%c0_54, %c640_55] : memref<128x1024xbf16, #tpu.memory_space<vmem>>, vector<128x128xbf16>
    %cst_56 = arith.constant dense<0.000000e+00> : vector<16x128xf32>
    %63 = tpu.matmul %16, %62, %cst_56 {dimension_numbers = #tpu.dot_dimension_numbers<[1], [0], [0], [1], [0, 0, 1, 1], [], []>} : vector<16x128xbf16>, vector<128x128xbf16>, vector<16x128xf32> -> vector<16x128xf32>
    %64 = vector.broadcast %61 : vector<1x128xf32> to vector<16x128xf32>
    %65 = arith.addf %64, %63 : vector<16x128xf32>
    %c0_57 = arith.constant 0 : index
    %c640_58 = arith.constant 640 : index
    %66 = vector.load %arg10[%c0_57, %c640_58] : memref<128x1024xbf16, #tpu.memory_space<vmem>>, vector<128x128xbf16>
    %cst_59 = arith.constant dense<0.000000e+00> : vector<16x128xf32>
    %67 = tpu.matmul %15, %66, %cst_59 {dimension_numbers = #tpu.dot_dimension_numbers<[1], [0], [0], [1], [0, 0, 1, 1], [], []>} : vector<16x128xbf16>, vector<128x128xbf16>, vector<16x128xf32> -> vector<16x128xf32>
    %68 = arith.addf %65, %67 : vector<16x128xf32>
    %69 = arith.maximumf %60, %68 : vector<16x128xf32>
    %c0_60 = arith.constant 0 : index
    %c768 = arith.constant 768 : index
    %70 = vector.load %arg11[%c0_60, %c768] : memref<1x1024xf32, #tpu.memory_space<vmem>>, vector<1x128xf32>
    %c0_61 = arith.constant 0 : index
    %c768_62 = arith.constant 768 : index
    %71 = vector.load %arg9[%c0_61, %c768_62] : memref<128x1024xbf16, #tpu.memory_space<vmem>>, vector<128x128xbf16>
    %cst_63 = arith.constant dense<0.000000e+00> : vector<16x128xf32>
    %72 = tpu.matmul %16, %71, %cst_63 {dimension_numbers = #tpu.dot_dimension_numbers<[1], [0], [0], [1], [0, 0, 1, 1], [], []>} : vector<16x128xbf16>, vector<128x128xbf16>, vector<16x128xf32> -> vector<16x128xf32>
    %73 = vector.broadcast %70 : vector<1x128xf32> to vector<16x128xf32>
    %74 = arith.addf %73, %72 : vector<16x128xf32>
    %c0_64 = arith.constant 0 : index
    %c768_65 = arith.constant 768 : index
    %75 = vector.load %arg10[%c0_64, %c768_65] : memref<128x1024xbf16, #tpu.memory_space<vmem>>, vector<128x128xbf16>
    %cst_66 = arith.constant dense<0.000000e+00> : vector<16x128xf32>
    %76 = tpu.matmul %15, %75, %cst_66 {dimension_numbers = #tpu.dot_dimension_numbers<[1], [0], [0], [1], [0, 0, 1, 1], [], []>} : vector<16x128xbf16>, vector<128x128xbf16>, vector<16x128xf32> -> vector<16x128xf32>
    %77 = arith.addf %74, %76 : vector<16x128xf32>
    %78 = arith.maximumf %69, %77 : vector<16x128xf32>
    %c0_67 = arith.constant 0 : index
    %c896 = arith.constant 896 : index
    %79 = vector.load %arg11[%c0_67, %c896] : memref<1x1024xf32, #tpu.memory_space<vmem>>, vector<1x128xf32>
    %c0_68 = arith.constant 0 : index
    %c896_69 = arith.constant 896 : index
    %80 = vector.load %arg9[%c0_68, %c896_69] : memref<128x1024xbf16, #tpu.memory_space<vmem>>, vector<128x128xbf16>
    %cst_70 = arith.constant dense<0.000000e+00> : vector<16x128xf32>
    %81 = tpu.matmul %16, %80, %cst_70 {dimension_numbers = #tpu.dot_dimension_numbers<[1], [0], [0], [1], [0, 0, 1, 1], [], []>} : vector<16x128xbf16>, vector<128x128xbf16>, vector<16x128xf32> -> vector<16x128xf32>
    %82 = vector.broadcast %79 : vector<1x128xf32> to vector<16x128xf32>
    %83 = arith.addf %82, %81 : vector<16x128xf32>
    %c0_71 = arith.constant 0 : index
    %c896_72 = arith.constant 896 : index
    %84 = vector.load %arg10[%c0_71, %c896_72] : memref<128x1024xbf16, #tpu.memory_space<vmem>>, vector<128x128xbf16>
    %cst_73 = arith.constant dense<0.000000e+00> : vector<16x128xf32>
    %85 = tpu.matmul %15, %84, %cst_73 {dimension_numbers = #tpu.dot_dimension_numbers<[1], [0], [0], [1], [0, 0, 1, 1], [], []>} : vector<16x128xbf16>, vector<128x128xbf16>, vector<16x128xf32> -> vector<16x128xf32>
    %86 = arith.addf %83, %85 : vector<16x128xf32>
    %87 = arith.maximumf %78, %86 : vector<16x128xf32>
    %88 = arith.truncf %87 : vector<16x128xf32> to vector<16x128xbf16>
    %c0_74 = arith.constant 0 : index
    %c0_75 = arith.constant 0 : index
    %89 = vector.load %arg13[%c0_74, %c0_75] : memref<1x1024xf32, #tpu.memory_space<vmem>>, vector<1x128xf32>
    %c0_76 = arith.constant 0 : index
    %c0_77 = arith.constant 0 : index
    %90 = vector.load %arg12[%c0_76, %c0_77] : memref<128x1024xbf16, #tpu.memory_space<vmem>>, vector<128x128xbf16>
    %cst_78 = arith.constant dense<0.000000e+00> : vector<16x128xf32>
    %91 = tpu.matmul %88, %90, %cst_78 {dimension_numbers = #tpu.dot_dimension_numbers<[1], [0], [0], [1], [0, 0, 1, 1], [], []>} : vector<16x128xbf16>, vector<128x128xbf16>, vector<16x128xf32> -> vector<16x128xf32>
    %92 = vector.broadcast %89 : vector<1x128xf32> to vector<16x128xf32>
    %93 = arith.addf %92, %91 : vector<16x128xf32>
    %c0_79 = arith.constant 0 : index
    %c128_80 = arith.constant 128 : index
    %94 = vector.load %arg13[%c0_79, %c128_80] : memref<1x1024xf32, #tpu.memory_space<vmem>>, vector<1x128xf32>
    %c0_81 = arith.constant 0 : index
    %c128_82 = arith.constant 128 : index
    %95 = vector.load %arg12[%c0_81, %c128_82] : memref<128x1024xbf16, #tpu.memory_space<vmem>>, vector<128x128xbf16>
    %cst_83 = arith.constant dense<0.000000e+00> : vector<16x128xf32>
    %96 = tpu.matmul %88, %95, %cst_83 {dimension_numbers = #tpu.dot_dimension_numbers<[1], [0], [0], [1], [0, 0, 1, 1], [], []>} : vector<16x128xbf16>, vector<128x128xbf16>, vector<16x128xf32> -> vector<16x128xf32>
    %97 = vector.broadcast %94 : vector<1x128xf32> to vector<16x128xf32>
    %98 = arith.addf %97, %96 : vector<16x128xf32>
    %99 = arith.maximumf %93, %98 : vector<16x128xf32>
    %c0_84 = arith.constant 0 : index
    %c256_85 = arith.constant 256 : index
    %100 = vector.load %arg13[%c0_84, %c256_85] : memref<1x1024xf32, #tpu.memory_space<vmem>>, vector<1x128xf32>
    %c0_86 = arith.constant 0 : index
    %c256_87 = arith.constant 256 : index
    %101 = vector.load %arg12[%c0_86, %c256_87] : memref<128x1024xbf16, #tpu.memory_space<vmem>>, vector<128x128xbf16>
    %cst_88 = arith.constant dense<0.000000e+00> : vector<16x128xf32>
    %102 = tpu.matmul %88, %101, %cst_88 {dimension_numbers = #tpu.dot_dimension_numbers<[1], [0], [0], [1], [0, 0, 1, 1], [], []>} : vector<16x128xbf16>, vector<128x128xbf16>, vector<16x128xf32> -> vector<16x128xf32>
    %103 = vector.broadcast %100 : vector<1x128xf32> to vector<16x128xf32>
    %104 = arith.addf %103, %102 : vector<16x128xf32>
    %105 = arith.maximumf %99, %104 : vector<16x128xf32>
    %c0_89 = arith.constant 0 : index
    %c384_90 = arith.constant 384 : index
    %106 = vector.load %arg13[%c0_89, %c384_90] : memref<1x1024xf32, #tpu.memory_space<vmem>>, vector<1x128xf32>
    %c0_91 = arith.constant 0 : index
    %c384_92 = arith.constant 384 : index
    %107 = vector.load %arg12[%c0_91, %c384_92] : memref<128x1024xbf16, #tpu.memory_space<vmem>>, vector<128x128xbf16>
    %cst_93 = arith.constant dense<0.000000e+00> : vector<16x128xf32>
    %108 = tpu.matmul %88, %107, %cst_93 {dimension_numbers = #tpu.dot_dimension_numbers<[1], [0], [0], [1], [0, 0, 1, 1], [], []>} : vector<16x128xbf16>, vector<128x128xbf16>, vector<16x128xf32> -> vector<16x128xf32>
    %109 = vector.broadcast %106 : vector<1x128xf32> to vector<16x128xf32>
    %110 = arith.addf %109, %108 : vector<16x128xf32>
    %111 = arith.maximumf %105, %110 : vector<16x128xf32>
    %c0_94 = arith.constant 0 : index
    %c512_95 = arith.constant 512 : index
    %112 = vector.load %arg13[%c0_94, %c512_95] : memref<1x1024xf32, #tpu.memory_space<vmem>>, vector<1x128xf32>
    %c0_96 = arith.constant 0 : index
    %c512_97 = arith.constant 512 : index
    %113 = vector.load %arg12[%c0_96, %c512_97] : memref<128x1024xbf16, #tpu.memory_space<vmem>>, vector<128x128xbf16>
    %cst_98 = arith.constant dense<0.000000e+00> : vector<16x128xf32>
    %114 = tpu.matmul %88, %113, %cst_98 {dimension_numbers = #tpu.dot_dimension_numbers<[1], [0], [0], [1], [0, 0, 1, 1], [], []>} : vector<16x128xbf16>, vector<128x128xbf16>, vector<16x128xf32> -> vector<16x128xf32>
    %115 = vector.broadcast %112 : vector<1x128xf32> to vector<16x128xf32>
    %116 = arith.addf %115, %114 : vector<16x128xf32>
    %117 = arith.maximumf %111, %116 : vector<16x128xf32>
    %c0_99 = arith.constant 0 : index
    %c640_100 = arith.constant 640 : index
    %118 = vector.load %arg13[%c0_99, %c640_100] : memref<1x1024xf32, #tpu.memory_space<vmem>>, vector<1x128xf32>
    %c0_101 = arith.constant 0 : index
    %c640_102 = arith.constant 640 : index
    %119 = vector.load %arg12[%c0_101, %c640_102] : memref<128x1024xbf16, #tpu.memory_space<vmem>>, vector<128x128xbf16>
    %cst_103 = arith.constant dense<0.000000e+00> : vector<16x128xf32>
    %120 = tpu.matmul %88, %119, %cst_103 {dimension_numbers = #tpu.dot_dimension_numbers<[1], [0], [0], [1], [0, 0, 1, 1], [], []>} : vector<16x128xbf16>, vector<128x128xbf16>, vector<16x128xf32> -> vector<16x128xf32>
    %121 = vector.broadcast %118 : vector<1x128xf32> to vector<16x128xf32>
    %122 = arith.addf %121, %120 : vector<16x128xf32>
    %123 = arith.maximumf %117, %122 : vector<16x128xf32>
    %c0_104 = arith.constant 0 : index
    %c768_105 = arith.constant 768 : index
    %124 = vector.load %arg13[%c0_104, %c768_105] : memref<1x1024xf32, #tpu.memory_space<vmem>>, vector<1x128xf32>
    %c0_106 = arith.constant 0 : index
    %c768_107 = arith.constant 768 : index
    %125 = vector.load %arg12[%c0_106, %c768_107] : memref<128x1024xbf16, #tpu.memory_space<vmem>>, vector<128x128xbf16>
    %cst_108 = arith.constant dense<0.000000e+00> : vector<16x128xf32>
    %126 = tpu.matmul %88, %125, %cst_108 {dimension_numbers = #tpu.dot_dimension_numbers<[1], [0], [0], [1], [0, 0, 1, 1], [], []>} : vector<16x128xbf16>, vector<128x128xbf16>, vector<16x128xf32> -> vector<16x128xf32>
    %127 = vector.broadcast %124 : vector<1x128xf32> to vector<16x128xf32>
    %128 = arith.addf %127, %126 : vector<16x128xf32>
    %129 = arith.maximumf %123, %128 : vector<16x128xf32>
    %c0_109 = arith.constant 0 : index
    %c896_110 = arith.constant 896 : index
    %130 = vector.load %arg13[%c0_109, %c896_110] : memref<1x1024xf32, #tpu.memory_space<vmem>>, vector<1x128xf32>
    %c0_111 = arith.constant 0 : index
    %c896_112 = arith.constant 896 : index
    %131 = vector.load %arg12[%c0_111, %c896_112] : memref<128x1024xbf16, #tpu.memory_space<vmem>>, vector<128x128xbf16>
    %cst_113 = arith.constant dense<0.000000e+00> : vector<16x128xf32>
    %132 = tpu.matmul %88, %131, %cst_113 {dimension_numbers = #tpu.dot_dimension_numbers<[1], [0], [0], [1], [0, 0, 1, 1], [], []>} : vector<16x128xbf16>, vector<128x128xbf16>, vector<16x128xf32> -> vector<16x128xf32>
    %133 = vector.broadcast %130 : vector<1x128xf32> to vector<16x128xf32>
    %134 = arith.addf %133, %132 : vector<16x128xf32>
    %135 = arith.maximumf %129, %134 : vector<16x128xf32>
    %136 = arith.truncf %135 : vector<16x128xf32> to vector<16x128xbf16>
    %c0_114 = arith.constant 0 : index
    %c0_115 = arith.constant 0 : index
    %137 = vector.load %arg14[%c0_114, %c0_115] : memref<128x128xbf16, #tpu.memory_space<vmem>>, vector<128x128xbf16>
    %cst_116 = arith.constant dense<0.000000e+00> : vector<16x128xf32>
    %138 = tpu.matmul %88, %137, %cst_116 {dimension_numbers = #tpu.dot_dimension_numbers<[1], [0], [0], [1], [0, 0, 1, 1], [], []>} : vector<16x128xbf16>, vector<128x128xbf16>, vector<16x128xf32> -> vector<16x128xf32>
    %c0_117 = arith.constant 0 : index
    %c0_118 = arith.constant 0 : index
    %139 = vector.load %arg15[%c0_117, %c0_118] : memref<128x128xbf16, #tpu.memory_space<vmem>>, vector<128x128xbf16>
    %cst_119 = arith.constant dense<0.000000e+00> : vector<16x128xf32>
    %140 = tpu.matmul %136, %139, %cst_119 {dimension_numbers = #tpu.dot_dimension_numbers<[1], [0], [0], [1], [0, 0, 1, 1], [], []>} : vector<16x128xbf16>, vector<128x128xbf16>, vector<16x128xf32> -> vector<16x128xf32>
    %141 = arith.addf %138, %140 : vector<16x128xf32>
    %c0_120 = arith.constant 0 : index
    %c0_121 = arith.constant 0 : index
    %142 = vector.load %arg16[%c0_120, %c0_121] : memref<1x128xf32, #tpu.memory_space<vmem>>, vector<1x128xf32>
    %143 = vector.broadcast %142 : vector<1x128xf32> to vector<16x128xf32>
    %144 = arith.addf %141, %143 : vector<16x128xf32>
    %cst_122 = arith.constant dense<0xFF800000> : vector<16xf32>
    %145 = vector.multi_reduction <maximumf>, %144, %cst_122 [1] : vector<16x128xf32> to vector<16xf32>
    %146 = vector.shape_cast %145 : vector<16xf32> to vector<16x1xf32>
    %147 = vector.shape_cast %146 : vector<16x1xf32> to vector<16x1xf32>
    %148 = vector.broadcast %147 : vector<16x1xf32> to vector<16x128xf32>
    %c0_123 = arith.constant 0 : index
    %c0_124 = arith.constant 0 : index
    %149 = vector.load %arg17[%c0_123, %c0_124] : memref<16x128xf32, #tpu.memory_space<vmem>>, vector<16x128xf32>
    tpu.vector_store %arg17[%c0_123, %c0_124], %148 {strides = array<i32>} : memref<16x128xf32, #tpu.memory_space<vmem>>, vector<16x128xf32>,
    return
  }
  func.func @transform_0(%arg0: i32) -> (i32, i32) {
    %c0_i32 = arith.constant 0 : i32
    %c0_i32_0 = arith.constant 0 : i32
    return %arg0, %c0_i32 : i32, i32
  }
  func.func @transform_1(%arg0: i32) -> (i32, i32) {
    %c0_i32 = arith.constant 0 : i32
    %c0_i32_0 = arith.constant 0 : i32
    return %arg0, %c0_i32 : i32, i32
  }
  func.func @transform_2(%arg0: i32) -> (i32, i32) {
    %c0_i32 = arith.constant 0 : i32
    %c0_i32_0 = arith.constant 0 : i32
    return %arg0, %c0_i32 : i32, i32
  }
  func.func @transform_3(%arg0: i32) -> (i32, i32) {
    %c0_i32 = arith.constant 0 : i32
    %c0_i32_0 = arith.constant 0 : i32
    return %arg0, %c0_i32 : i32, i32
  }
  func.func @transform_4(%arg0: i32) -> (i32, i32) {
    %c0_i32 = arith.constant 0 : i32
    %c0_i32_0 = arith.constant 0 : i32
    %c0_i32_1 = arith.constant 0 : i32
    return %c0_i32, %c0_i32_0 : i32, i32
  }
  func.func @transform_5(%arg0: i32) -> (i32, i32) {
    %c0_i32 = arith.constant 0 : i32
    %c0_i32_0 = arith.constant 0 : i32
    %c0_i32_1 = arith.constant 0 : i32
    return %c0_i32, %c0_i32_0 : i32, i32
  }
  func.func @transform_6(%arg0: i32) -> (i32, i32) {
    %c0_i32 = arith.constant 0 : i32
    %c0_i32_0 = arith.constant 0 : i32
    %c0_i32_1 = arith.constant 0 : i32
    return %c0_i32, %c0_i32_0 : i32, i32
  }
  func.func @transform_7(%arg0: i32) -> (i32, i32) {
    %c0_i32 = arith.constant 0 : i32
    %c0_i32_0 = arith.constant 0 : i32
    %c0_i32_1 = arith.constant 0 : i32
    return %c0_i32, %c0_i32_0 : i32, i32
  }
  func.func @transform_8(%arg0: i32) -> (i32, i32) {
    %c0_i32 = arith.constant 0 : i32
    %c0_i32_0 = arith.constant 0 : i32
    %c0_i32_1 = arith.constant 0 : i32
    return %c0_i32, %c0_i32_0 : i32, i32
  }
  func.func @transform_9(%arg0: i32) -> (i32, i32) {
    %c0_i32 = arith.constant 0 : i32
    %c0_i32_0 = arith.constant 0 : i32
    %c0_i32_1 = arith.constant 0 : i32
    return %c0_i32, %c0_i32_0 : i32, i32
  }
  func.func @transform_10(%arg0: i32) -> (i32, i32) {
    %c0_i32 = arith.constant 0 : i32
    %c0_i32_0 = arith.constant 0 : i32
    %c0_i32_1 = arith.constant 0 : i32
    return %c0_i32, %c0_i32_0 : i32, i32
  }
  func.func @transform_11(%arg0: i32) -> (i32, i32) {
    %c0_i32 = arith.constant 0 : i32
    %c0_i32_0 = arith.constant 0 : i32
    %c0_i32_1 = arith.constant 0 : i32
    return %c0_i32, %c0_i32_0 : i32, i32
  }
  func.func @transform_12(%arg0: i32) -> (i32, i32) {
    %c0_i32 = arith.constant 0 : i32
    %c0_i32_0 = arith.constant 0 : i32
    %c0_i32_1 = arith.constant 0 : i32
    return %c0_i32, %c0_i32_0 : i32, i32
  }
  func.func @transform_13(%arg0: i32) -> (i32, i32) {
    %c0_i32 = arith.constant 0 : i32
    %c0_i32_0 = arith.constant 0 : i32
    %c0_i32_1 = arith.constant 0 : i32
    return %c0_i32, %c0_i32_0 : i32, i32
  }
  func.func @transform_14(%arg0: i32) -> (i32, i32) {
    %c0_i32 = arith.constant 0 : i32
    %c0_i32_0 = arith.constant 0 : i32
    %c0_i32_1 = arith.constant 0 : i32
    return %c0_i32, %c0_i32_0 : i32, i32
  }
  func.func @transform_15(%arg0: i32) -> (i32, i32) {
    %c0_i32 = arith.constant 0 : i32
    %c0_i32_0 = arith.constant 0 : i32
    %c0_i32_1 = arith.constant 0 : i32
    return %c0_i32, %c0_i32_0 : i32, i32
  }
  func.func @transform_16(%arg0: i32) -> (i32, i32) {
    %c0_i32 = arith.constant 0 : i32
    %c0_i32_0 = arith.constant 0 : i32
    return %arg0, %c0_i32 : i32, i32
  }
}

module attributes {stable_mosaic.version = 11 : i64} {
  func.func @_highway_max_kernel(%arg0: i32, %arg1: memref<16x128xbf16, #tpu.memory_space<vmem>>, %arg2: memref<16x128xbf16, #tpu.memory_space<vmem>>, %arg3: memref<16x128xbf16, #tpu.memory_space<vmem>>, %arg4: memref<16x128xbf16, #tpu.memory_space<vmem>>, %arg5: memref<128x128xbf16, #tpu.memory_space<vmem>>, %arg6: memref<128x128xbf16, #tpu.memory_space<vmem>>, %arg7: memref<128x128xbf16, #tpu.memory_space<vmem>>, %arg8: memref<1x128xf32, #tpu.memory_space<vmem>>, %arg9: memref<128x1024xbf16, #tpu.memory_space<vmem>>, %arg10: memref<128x1024xbf16, #tpu.memory_space<vmem>>, %arg11: memref<1x1024xf32, #tpu.memory_space<vmem>>, %arg12: memref<128x1024xbf16, #tpu.memory_space<vmem>>, %arg13: memref<1x1024xf32, #tpu.memory_space<vmem>>, %arg14: memref<128x128xbf16, #tpu.memory_space<vmem>>, %arg15: memref<128x128xbf16, #tpu.memory_space<vmem>>, %arg16: memref<1x128xf32, #tpu.memory_space<vmem>>, %arg17: memref<16x128xf32, #tpu.memory_space<vmem>>) attributes {dimension_semantics = [#tpu.dimension_semantics<parallel>], iteration_bounds = array<i64: 1>, scalar_prefetch = 0 : i64, scratch_operands = 0 : i64, tpu.core_type = #tpu.core_type<tc>, window_params = [{transform_indices = @transform_0, window_bounds = array<i64: 16, 128>}, {transform_indices = @transform_1, window_bounds = array<i64: 16, 128>}, {transform_indices = @transform_2, window_bounds = array<i64: 16, 128>}, {transform_indices = @transform_3, window_bounds = array<i64: 16, 128>}, {pipeline_mode = #tpu.pipeline_mode<synchronous>, transform_indices = @transform_4, window_bounds = array<i64: 128, 128>}, {pipeline_mode = #tpu.pipeline_mode<synchronous>, transform_indices = @transform_5, window_bounds = array<i64: 128, 128>}, {pipeline_mode = #tpu.pipeline_mode<synchronous>, transform_indices = @transform_6, window_bounds = array<i64: 128, 128>}, {pipeline_mode = #tpu.pipeline_mode<synchronous>, transform_indices = @transform_7, window_bounds = array<i64: 1, 128>}, {pipeline_mode = #tpu.pipeline_mode<synchronous>, transform_indices = @transform_8, window_bounds = array<i64: 128, 1024>}, {pipeline_mode = #tpu.pipeline_mode<synchronous>, transform_indices = @transform_9, window_bounds = array<i64: 128, 1024>}, {pipeline_mode = #tpu.pipeline_mode<synchronous>, transform_indices = @transform_10, window_bounds = array<i64: 1, 1024>}, {pipeline_mode = #tpu.pipeline_mode<synchronous>, transform_indices = @transform_11, window_bounds = array<i64: 128, 1024>}, {pipeline_mode = #tpu.pipeline_mode<synchronous>, transform_indices = @transform_12, window_bounds = array<i64: 1, 1024>}, {pipeline_mode = #tpu.pipeline_mode<synchronous>, transform_indices = @transform_13, window_bounds = array<i64: 128, 128>}, {pipeline_mode = #tpu.pipeline_mode<synchronous>, transform_indices = @transform_14, window_bounds = array<i64: 128, 128>}, {pipeline_mode = #tpu.pipeline_mode<synchronous>, transform_indices = @transform_15, window_bounds = array<i64: 1, 128>}, {transform_indices = @transform_16, window_bounds = array<i64: 16, 128>}]} {
    %c0 = arith.constant 0 : index
    %c0_0 = arith.constant 0 : index
    %0 = vector.load %arg2[%c0, %c0_0] : memref<16x128xbf16, #tpu.memory_space<vmem>>, vector<16x128xbf16>
    %c0_1 = arith.constant 0 : index
    %c0_2 = arith.constant 0 : index
    %1 = vector.load %arg5[%c0_1, %c0_2] : memref<128x128xbf16, #tpu.memory_space<vmem>>, vector<128x128xbf16>
    %cst = arith.constant dense<0.000000e+00> : vector<16x128xf32>
    %2 = tpu.matmul %0, %1, %cst {dimension_numbers = #tpu.dot_dimension_numbers<[1], [0], [0], [1], [0, 0, 1, 1], [], []>} : vector<16x128xbf16>, vector<128x128xbf16>, vector<16x128xf32> -> vector<16x128xf32>
    %c0_3 = arith.constant 0 : index
    %c0_4 = arith.constant 0 : index
    %3 = vector.load %arg3[%c0_3, %c0_4] : memref<16x128xbf16, #tpu.memory_space<vmem>>, vector<16x128xbf16>
    %c0_5 = arith.constant 0 : index
    %c0_6 = arith.constant 0 : index
    %4 = vector.load %arg6[%c0_5, %c0_6] : memref<128x128xbf16, #tpu.memory_space<vmem>>, vector<128x128xbf16>
    %cst_7 = arith.constant dense<0.000000e+00> : vector<16x128xf32>
    %5 = tpu.matmul %3, %4, %cst_7 {dimension_numbers = #tpu.dot_dimension_numbers<[1], [0], [0], [1], [0, 0, 1, 1], [], []>} : vector<16x128xbf16>, vector<128x128xbf16>, vector<16x128xf32> -> vector<16x128xf32>
    %6 = arith.addf %2, %5 : vector<16x128xf32>
    %c0_8 = arith.constant 0 : index
    %c0_9 = arith.constant 0 : index
    %7 = vector.load %arg4[%c0_8, %c0_9] : memref<16x128xbf16, #tpu.memory_space<vmem>>, vector<16x128xbf16>
    %c0_10 = arith.constant 0 : index
    %c0_11 = arith.constant 0 : index
    %8 = vector.load %arg7[%c0_10, %c0_11] : memref<128x128xbf16, #tpu.memory_space<vmem>>, vector<128x128xbf16>
    %cst_12 = arith.constant dense<0.000000e+00> : vector<16x128xf32>
    %9 = tpu.matmul %7, %8, %cst_12 {dimension_numbers = #tpu.dot_dimension_numbers<[1], [0], [0], [1], [0, 0, 1, 1], [], []>} : vector<16x128xbf16>, vector<128x128xbf16>, vector<16x128xf32> -> vector<16x128xf32>
    %10 = arith.addf %6, %9 : vector<16x128xf32>
    %c0_13 = arith.constant 0 : index
    %c0_14 = arith.constant 0 : index
    %11 = vector.load %arg8[%c0_13, %c0_14] : memref<1x128xf32, #tpu.memory_space<vmem>>, vector<1x128xf32>
    %12 = vector.broadcast %11 : vector<1x128xf32> to vector<16x128xf32>
    %13 = arith.addf %10, %12 : vector<16x128xf32>
    %14 = math.tanh %13 : vector<16x128xf32>
    %15 = arith.truncf %14 : vector<16x128xf32> to vector<16x128xbf16>
    %c0_15 = arith.constant 0 : index
    %c0_16 = arith.constant 0 : index
    %16 = vector.load %arg1[%c0_15, %c0_16] : memref<16x128xbf16, #tpu.memory_space<vmem>>, vector<16x128xbf16>
    %c0_17 = arith.constant 0 : index
    %c0_18 = arith.constant 0 : index
    %17 = vector.load %arg11[%c0_17, %c0_18] : memref<1x1024xf32, #tpu.memory_space<vmem>>, vector<1x128xf32>
    %c0_19 = arith.constant 0 : index
    %c0_20 = arith.constant 0 : index
    %18 = vector.load %arg9[%c0_19, %c0_20] : memref<128x1024xbf16, #tpu.memory_space<vmem>>, vector<128x128xbf16>
    %cst_21 = arith.constant dense<0.000000e+00> : vector<16x128xf32>
    %19 = tpu.matmul %16, %18, %cst_21 {dimension_numbers = #tpu.dot_dimension_numbers<[1], [0], [0], [1], [0, 0, 1, 1], [], []>} : vector<16x128xbf16>, vector<128x128xbf16>, vector<16x128xf32> -> vector<16x128xf32>
    %20 = vector.broadcast %17 : vector<1x128xf32> to vector<16x128xf32>
    %21 = arith.addf %20, %19 : vector<16x128xf32>
    %c0_22 = arith.constant 0 : index
    %c0_23 = arith.constant 0 : index
    %22 = vector.load %arg10[%c0_22, %c0_23] : memref<128x1024xbf16, #tpu.memory_space<vmem>>, vector<128x128xbf16>
    %cst_24 = arith.constant dense<0.000000e+00> : vector<16x128xf32>
    %23 = tpu.matmul %15, %22, %cst_24 {dimension_numbers = #tpu.dot_dimension_numbers<[1], [0], [0], [1], [0, 0, 1, 1], [], []>} : vector<16x128xbf16>, vector<128x128xbf16>, vector<16x128xf32> -> vector<16x128xf32>
    %24 = arith.addf %21, %23 : vector<16x128xf32>
    %c0_25 = arith.constant 0 : index
    %c128 = arith.constant 128 : index
    %25 = vector.load %arg11[%c0_25, %c128] : memref<1x1024xf32, #tpu.memory_space<vmem>>, vector<1x128xf32>
    %c0_26 = arith.constant 0 : index
    %c128_27 = arith.constant 128 : index
    %26 = vector.load %arg9[%c0_26, %c128_27] : memref<128x1024xbf16, #tpu.memory_space<vmem>>, vector<128x128xbf16>
    %cst_28 = arith.constant dense<0.000000e+00> : vector<16x128xf32>
    %27 = tpu.matmul %16, %26, %cst_28 {dimension_numbers = #tpu.dot_dimension_numbers<[1], [0], [0], [1], [0, 0, 1, 1], [], []>} : vector<16x128xbf16>, vector<128x128xbf16>, vector<16x128xf32> -> vector<16x128xf32>
    %28 = vector.broadcast %25 : vector<1x128xf32> to vector<16x128xf32>
    %29 = arith.addf %28, %27 : vector<16x128xf32>
    %c0_29 = arith.constant 0 : index
    %c128_30 = arith.constant 128 : index
    %30 = vector.load %arg10[%c0_29, %c128_30] : memref<128x1024xbf16, #tpu.memory_space<vmem>>, vector<128x128xbf16>
    %cst_31 = arith.constant dense<0.000000e+00> : vector<16x128xf32>
    %31 = tpu.matmul %15, %30, %cst_31 {dimension_numbers = #tpu.dot_dimension_numbers<[1], [0], [0], [1], [0, 0, 1, 1], [], []>} : vector<16x128xbf16>, vector<128x128xbf16>, vector<16x128xf32> -> vector<16x128xf32>
    %32 = arith.addf %29, %31 : vector<16x128xf32>
    %33 = arith.maximumf %24, %32 : vector<16x128xf32>
    %c0_32 = arith.constant 0 : index
    %c256 = arith.constant 256 : index
    %34 = vector.load %arg11[%c0_32, %c256] : memref<1x1024xf32, #tpu.memory_space<vmem>>, vector<1x128xf32>
    %c0_33 = arith.constant 0 : index
    %c256_34 = arith.constant 256 : index
    %35 = vector.load %arg9[%c0_33, %c256_34] : memref<128x1024xbf16, #tpu.memory_space<vmem>>, vector<128x128xbf16>
    %cst_35 = arith.constant dense<0.000000e+00> : vector<16x128xf32>
    %36 = tpu.matmul %16, %35, %cst_35 {dimension_numbers = #tpu.dot_dimension_numbers<[1], [0], [0], [1], [0, 0, 1, 1], [], []>} : vector<16x128xbf16>, vector<128x128xbf16>, vector<16x128xf32> -> vector<16x128xf32>
    %37 = vector.broadcast %34 : vector<1x128xf32> to vector<16x128xf32>
    %38 = arith.addf %37, %36 : vector<16x128xf32>
    %c0_36 = arith.constant 0 : index
    %c256_37 = arith.constant 256 : index
    %39 = vector.load %arg10[%c0_36, %c256_37] : memref<128x1024xbf16, #tpu.memory_space<vmem>>, vector<128x128xbf16>
    %cst_38 = arith.constant dense<0.000000e+00> : vector<16x128xf32>
    %40 = tpu.matmul %15, %39, %cst_38 {dimension_numbers = #tpu.dot_dimension_numbers<[1], [0], [0], [1], [0, 0, 1, 1], [], []>} : vector<16x128xbf16>, vector<128x128xbf16>, vector<16x128xf32> -> vector<16x128xf32>
    %41 = arith.addf %38, %40 : vector<16x128xf32>
    %42 = arith.maximumf %33, %41 : vector<16x128xf32>
    %c0_39 = arith.constant 0 : index
    %c384 = arith.constant 384 : index
    %43 = vector.load %arg11[%c0_39, %c384] : memref<1x1024xf32, #tpu.memory_space<vmem>>, vector<1x128xf32>
    %c0_40 = arith.constant 0 : index
    %c384_41 = arith.constant 384 : index
    %44 = vector.load %arg9[%c0_40, %c384_41] : memref<128x1024xbf16, #tpu.memory_space<vmem>>, vector<128x128xbf16>
    %cst_42 = arith.constant dense<0.000000e+00> : vector<16x128xf32>
    %45 = tpu.matmul %16, %44, %cst_42 {dimension_numbers = #tpu.dot_dimension_numbers<[1], [0], [0], [1], [0, 0, 1, 1], [], []>} : vector<16x128xbf16>, vector<128x128xbf16>, vector<16x128xf32> -> vector<16x128xf32>
    %46 = vector.broadcast %43 : vector<1x128xf32> to vector<16x128xf32>
    %47 = arith.addf %46, %45 : vector<16x128xf32>
    %c0_43 = arith.constant 0 : index
    %c384_44 = arith.constant 384 : index
    %48 = vector.load %arg10[%c0_43, %c384_44] : memref<128x1024xbf16, #tpu.memory_space<vmem>>, vector<128x128xbf16>
    %cst_45 = arith.constant dense<0.000000e+00> : vector<16x128xf32>
    %49 = tpu.matmul %15, %48, %cst_45 {dimension_numbers = #tpu.dot_dimension_numbers<[1], [0], [0], [1], [0, 0, 1, 1], [], []>} : vector<16x128xbf16>, vector<128x128xbf16>, vector<16x128xf32> -> vector<16x128xf32>
    %50 = arith.addf %47, %49 : vector<16x128xf32>
    %51 = arith.maximumf %42, %50 : vector<16x128xf32>
    %c0_46 = arith.constant 0 : index
    %c512 = arith.constant 512 : index
    %52 = vector.load %arg11[%c0_46, %c512] : memref<1x1024xf32, #tpu.memory_space<vmem>>, vector<1x128xf32>
    %c0_47 = arith.constant 0 : index
    %c512_48 = arith.constant 512 : index
    %53 = vector.load %arg9[%c0_47, %c512_48] : memref<128x1024xbf16, #tpu.memory_space<vmem>>, vector<128x128xbf16>
    %cst_49 = arith.constant dense<0.000000e+00> : vector<16x128xf32>
    %54 = tpu.matmul %16, %53, %cst_49 {dimension_numbers = #tpu.dot_dimension_numbers<[1], [0], [0], [1], [0, 0, 1, 1], [], []>} : vector<16x128xbf16>, vector<128x128xbf16>, vector<16x128xf32> -> vector<16x128xf32>
    %55 = vector.broadcast %52 : vector<1x128xf32> to vector<16x128xf32>
    %56 = arith.addf %55, %54 : vector<16x128xf32>
    %c0_50 = arith.constant 0 : index
    %c512_51 = arith.constant 512 : index
    %57 = vector.load %arg10[%c0_50, %c512_51] : memref<128x1024xbf16, #tpu.memory_space<vmem>>, vector<128x128xbf16>
    %cst_52 = arith.constant dense<0.000000e+00> : vector<16x128xf32>
    %58 = tpu.matmul %15, %57, %cst_52 {dimension_numbers = #tpu.dot_dimension_numbers<[1], [0], [0], [1], [0, 0, 1, 1], [], []>} : vector<16x128xbf16>, vector<128x128xbf16>, vector<16x128xf32> -> vector<16x128xf32>
    %59 = arith.addf %56, %58 : vector<16x128xf32>
    %60 = arith.maximumf %51, %59 : vector<16x128xf32>
    %c0_53 = arith.constant 0 : index
    %c640 = arith.constant 640 : index
    %61 = vector.load %arg11[%c0_53, %c640] : memref<1x1024xf32, #tpu.memory_space<vmem>>, vector<1x128xf32>
    %c0_54 = arith.constant 0 : index
    %c640_55 = arith.constant 640 : index
    %62 = vector.load %arg9[%c0_54, %c640_55] : memref<128x1024xbf16, #tpu.memory_space<vmem>>, vector<128x128xbf16>
    %cst_56 = arith.constant dense<0.000000e+00> : vector<16x128xf32>
    %63 = tpu.matmul %16, %62, %cst_56 {dimension_numbers = #tpu.dot_dimension_numbers<[1], [0], [0], [1], [0, 0, 1, 1], [], []>} : vector<16x128xbf16>, vector<128x128xbf16>, vector<16x128xf32> -> vector<16x128xf32>
    %64 = vector.broadcast %61 : vector<1x128xf32> to vector<16x128xf32>
    %65 = arith.addf %64, %63 : vector<16x128xf32>
    %c0_57 = arith.constant 0 : index
    %c640_58 = arith.constant 640 : index
    %66 = vector.load %arg10[%c0_57, %c640_58] : memref<128x1024xbf16, #tpu.memory_space<vmem>>, vector<128x128xbf16>
    %cst_59 = arith.constant dense<0.000000e+00> : vector<16x128xf32>
    %67 = tpu.matmul %15, %66, %cst_59 {dimension_numbers = #tpu.dot_dimension_numbers<[1], [0], [0], [1], [0, 0, 1, 1], [], []>} : vector<16x128xbf16>, vector<128x128xbf16>, vector<16x128xf32> -> vector<16x128xf32>
    %68 = arith.addf %65, %67 : vector<16x128xf32>
    %69 = arith.maximumf %60, %68 : vector<16x128xf32>
    %c0_60 = arith.constant 0 : index
    %c768 = arith.constant 768 : index
    %70 = vector.load %arg11[%c0_60, %c768] : memref<1x1024xf32, #tpu.memory_space<vmem>>, vector<1x128xf32>
    %c0_61 = arith.constant 0 : index
    %c768_62 = arith.constant 768 : index
    %71 = vector.load %arg9[%c0_61, %c768_62] : memref<128x1024xbf16, #tpu.memory_space<vmem>>, vector<128x128xbf16>
    %cst_63 = arith.constant dense<0.000000e+00> : vector<16x128xf32>
    %72 = tpu.matmul %16, %71, %cst_63 {dimension_numbers = #tpu.dot_dimension_numbers<[1], [0], [0], [1], [0, 0, 1, 1], [], []>} : vector<16x128xbf16>, vector<128x128xbf16>, vector<16x128xf32> -> vector<16x128xf32>
    %73 = vector.broadcast %70 : vector<1x128xf32> to vector<16x128xf32>
    %74 = arith.addf %73, %72 : vector<16x128xf32>
    %c0_64 = arith.constant 0 : index
    %c768_65 = arith.constant 768 : index
    %75 = vector.load %arg10[%c0_64, %c768_65] : memref<128x1024xbf16, #tpu.memory_space<vmem>>, vector<128x128xbf16>
    %cst_66 = arith.constant dense<0.000000e+00> : vector<16x128xf32>
    %76 = tpu.matmul %15, %75, %cst_66 {dimension_numbers = #tpu.dot_dimension_numbers<[1], [0], [0], [1], [0, 0, 1, 1], [], []>} : vector<16x128xbf16>, vector<128x128xbf16>, vector<16x128xf32> -> vector<16x128xf32>
    %77 = arith.addf %74, %76 : vector<16x128xf32>
    %78 = arith.maximumf %69, %77 : vector<16x128xf32>
    %c0_67 = arith.constant 0 : index
    %c896 = arith.constant 896 : index
    %79 = vector.load %arg11[%c0_67, %c896] : memref<1x1024xf32, #tpu.memory_space<vmem>>, vector<1x128xf32>
    %c0_68 = arith.constant 0 : index
    %c896_69 = arith.constant 896 : index
    %80 = vector.load %arg9[%c0_68, %c896_69] : memref<128x1024xbf16, #tpu.memory_space<vmem>>, vector<128x128xbf16>
    %cst_70 = arith.constant dense<0.000000e+00> : vector<16x128xf32>
    %81 = tpu.matmul %16, %80, %cst_70 {dimension_numbers = #tpu.dot_dimension_numbers<[1], [0], [0], [1], [0, 0, 1, 1], [], []>} : vector<16x128xbf16>, vector<128x128xbf16>, vector<16x128xf32> -> vector<16x128xf32>
    %82 = vector.broadcast %79 : vector<1x128xf32> to vector<16x128xf32>
    %83 = arith.addf %82, %81 : vector<16x128xf32>
    %c0_71 = arith.constant 0 : index
    %c896_72 = arith.constant 896 : index
    %84 = vector.load %arg10[%c0_71, %c896_72] : memref<128x1024xbf16, #tpu.memory_space<vmem>>, vector<128x128xbf16>
    %cst_73 = arith.constant dense<0.000000e+00> : vector<16x128xf32>
    %85 = tpu.matmul %15, %84, %cst_73 {dimension_numbers = #tpu.dot_dimension_numbers<[1], [0], [0], [1], [0, 0, 1, 1], [], []>} : vector<16x128xbf16>, vector<128x128xbf16>, vector<16x128xf32> -> vector<16x128xf32>
    %86 = arith.addf %83, %85 : vector<16x128xf32>
    %87 = arith.maximumf %78, %86 : vector<16x128xf32>
    %88 = arith.truncf %87 : vector<16x128xf32> to vector<16x128xbf16>
    %c0_74 = arith.constant 0 : index
    %c0_75 = arith.constant 0 : index
    %89 = vector.load %arg13[%c0_74, %c0_75] : memref<1x1024xf32, #tpu.memory_space<vmem>>, vector<1x128xf32>
    %c0_76 = arith.constant 0 : index
    %c0_77 = arith.constant 0 : index
    %90 = vector.load %arg12[%c0_76, %c0_77] : memref<128x1024xbf16, #tpu.memory_space<vmem>>, vector<128x128xbf16>
    %cst_78 = arith.constant dense<0.000000e+00> : vector<16x128xf32>
    %91 = tpu.matmul %88, %90, %cst_78 {dimension_numbers = #tpu.dot_dimension_numbers<[1], [0], [0], [1], [0, 0, 1, 1], [], []>} : vector<16x128xbf16>, vector<128x128xbf16>, vector<16x128xf32> -> vector<16x128xf32>
    %92 = vector.broadcast %89 : vector<1x128xf32> to vector<16x128xf32>
    %93 = arith.addf %92, %91 : vector<16x128xf32>
    %c0_79 = arith.constant 0 : index
    %c128_80 = arith.constant 128 : index
    %94 = vector.load %arg13[%c0_79, %c128_80] : memref<1x1024xf32, #tpu.memory_space<vmem>>, vector<1x128xf32>
    %c0_81 = arith.constant 0 : index
    %c128_82 = arith.constant 128 : index
    %95 = vector.load %arg12[%c0_81, %c128_82] : memref<128x1024xbf16, #tpu.memory_space<vmem>>, vector<128x128xbf16>
    %cst_83 = arith.constant dense<0.000000e+00> : vector<16x128xf32>
    %96 = tpu.matmul %88, %95, %cst_83 {dimension_numbers = #tpu.dot_dimension_numbers<[1], [0], [0], [1], [0, 0, 1, 1], [], []>} : vector<16x128xbf16>, vector<128x128xbf16>, vector<16x128xf32> -> vector<16x128xf32>
    %97 = vector.broadcast %94 : vector<1x128xf32> to vector<16x128xf32>
    %98 = arith.addf %97, %96 : vector<16x128xf32>
    %99 = arith.maximumf %93, %98 : vector<16x128xf32>
    %c0_84 = arith.constant 0 : index
    %c256_85 = arith.constant 256 : index
    %100 = vector.load %arg13[%c0_84, %c256_85] : memref<1x1024xf32, #tpu.memory_space<vmem>>, vector<1x128xf32>
    %c0_86 = arith.constant 0 : index
    %c256_87 = arith.constant 256 : index
    %101 = vector.load %arg12[%c0_86, %c256_87] : memref<128x1024xbf16, #tpu.memory_space<vmem>>, vector<128x128xbf16>
    %cst_88 = arith.constant dense<0.000000e+00> : vector<16x128xf32>
    %102 = tpu.matmul %88, %101, %cst_88 {dimension_numbers = #tpu.dot_dimension_numbers<[1], [0], [0], [1], [0, 0, 1, 1], [], []>} : vector<16x128xbf16>, vector<128x128xbf16>, vector<16x128xf32> -> vector<16x128xf32>
    %103 = vector.broadcast %100 : vector<1x128xf32> to vector<16x128xf32>
    %104 = arith.addf %103, %102 : vector<16x128xf32>
    %105 = arith.maximumf %99, %104 : vector<16x128xf32>
    %c0_89 = arith.constant 0 : index
    %c384_90 = arith.constant 384 : index
    %106 = vector.load %arg13[%c0_89, %c384_90] : memref<1x1024xf32, #tpu.memory_space<vmem>>, vector<1x128xf32>
    %c0_91 = arith.constant 0 : index
    %c384_92 = arith.constant 384 : index
    %107 = vector.load %arg12[%c0_91, %c384_92] : memref<128x1024xbf16, #tpu.memory_space<vmem>>, vector<128x128xbf16>
    %cst_93 = arith.constant dense<0.000000e+00> : vector<16x128xf32>
    %108 = tpu.matmul %88, %107, %cst_93 {dimension_numbers = #tpu.dot_dimension_numbers<[1], [0], [0], [1], [0, 0, 1, 1], [], []>} : vector<16x128xbf16>, vector<128x128xbf16>, vector<16x128xf32> -> vector<16x128xf32>
    %109 = vector.broadcast %106 : vector<1x128xf32> to vector<16x128xf32>
    %110 = arith.addf %109, %108 : vector<16x128xf32>
    %111 = arith.maximumf %105, %110 : vector<16x128xf32>
    %c0_94 = arith.constant 0 : index
    %c512_95 = arith.constant 512 : index
    %112 = vector.load %arg13[%c0_94, %c512_95] : memref<1x1024xf32, #tpu.memory_space<vmem>>, vector<1x128xf32>
    %c0_96 = arith.constant 0 : index
    %c512_97 = arith.constant 512 : index
    %113 = vector.load %arg12[%c0_96, %c512_97] : memref<128x1024xbf16, #tpu.memory_space<vmem>>, vector<128x128xbf16>
    %cst_98 = arith.constant dense<0.000000e+00> : vector<16x128xf32>
    %114 = tpu.matmul %88, %113, %cst_98 {dimension_numbers = #tpu.dot_dimension_numbers<[1], [0], [0], [1], [0, 0, 1, 1], [], []>} : vector<16x128xbf16>, vector<128x128xbf16>, vector<16x128xf32> -> vector<16x128xf32>
    %115 = vector.broadcast %112 : vector<1x128xf32> to vector<16x128xf32>
    %116 = arith.addf %115, %114 : vector<16x128xf32>
    %117 = arith.maximumf %111, %116 : vector<16x128xf32>
    %c0_99 = arith.constant 0 : index
    %c640_100 = arith.constant 640 : index
    %118 = vector.load %arg13[%c0_99, %c640_100] : memref<1x1024xf32, #tpu.memory_space<vmem>>, vector<1x128xf32>
    %c0_101 = arith.constant 0 : index
    %c640_102 = arith.constant 640 : index
    %119 = vector.load %arg12[%c0_101, %c640_102] : memref<128x1024xbf16, #tpu.memory_space<vmem>>, vector<128x128xbf16>
    %cst_103 = arith.constant dense<0.000000e+00> : vector<16x128xf32>
    %120 = tpu.matmul %88, %119, %cst_103 {dimension_numbers = #tpu.dot_dimension_numbers<[1], [0], [0], [1], [0, 0, 1, 1], [], []>} : vector<16x128xbf16>, vector<128x128xbf16>, vector<16x128xf32> -> vector<16x128xf32>
    %121 = vector.broadcast %118 : vector<1x128xf32> to vector<16x128xf32>
    %122 = arith.addf %121, %120 : vector<16x128xf32>
    %123 = arith.maximumf %117, %122 : vector<16x128xf32>
    %c0_104 = arith.constant 0 : index
    %c768_105 = arith.constant 768 : index
    %124 = vector.load %arg13[%c0_104, %c768_105] : memref<1x1024xf32, #tpu.memory_space<vmem>>, vector<1x128xf32>
    %c0_106 = arith.constant 0 : index
    %c768_107 = arith.constant 768 : index
    %125 = vector.load %arg12[%c0_106, %c768_107] : memref<128x1024xbf16, #tpu.memory_space<vmem>>, vector<128x128xbf16>
    %cst_108 = arith.constant dense<0.000000e+00> : vector<16x128xf32>
    %126 = tpu.matmul %88, %125, %cst_108 {dimension_numbers = #tpu.dot_dimension_numbers<[1], [0], [0], [1], [0, 0, 1, 1], [], []>} : vector<16x128xbf16>, vector<128x128xbf16>, vector<16x128xf32> -> vector<16x128xf32>
    %127 = vector.broadcast %124 : vector<1x128xf32> to vector<16x128xf32>
    %128 = arith.addf %127, %126 : vector<16x128xf32>
    %129 = arith.maximumf %123, %128 : vector<16x128xf32>
    %c0_109 = arith.constant 0 : index
    %c896_110 = arith.constant 896 : index
    %130 = vector.load %arg13[%c0_109, %c896_110] : memref<1x1024xf32, #tpu.memory_space<vmem>>, vector<1x128xf32>
    %c0_111 = arith.constant 0 : index
    %c896_112 = arith.constant 896 : index
    %131 = vector.load %arg12[%c0_111, %c896_112] : memref<128x1024xbf16, #tpu.memory_space<vmem>>, vector<128x128xbf16>
    %cst_113 = arith.constant dense<0.000000e+00> : vector<16x128xf32>
    %132 = tpu.matmul %88, %131, %cst_113 {dimension_numbers = #tpu.dot_dimension_numbers<[1], [0], [0], [1], [0, 0, 1, 1], [], []>} : vector<16x128xbf16>, vector<128x128xbf16>, vector<16x128xf32> -> vector<16x128xf32>
    %133 = vector.broadcast %130 : vector<1x128xf32> to vector<16x128xf32>
    %134 = arith.addf %133, %132 : vector<16x128xf32>
    %135 = arith.maximumf %129, %134 : vector<16x128xf32>
    %136 = arith.truncf %135 : vector<16x128xf32> to vector<16x128xbf16>
    %c0_114 = arith.constant 0 : index
    %c0_115 = arith.constant 0 : index
    %137 = vector.load %arg14[%c0_114, %c0_115] : memref<128x128xbf16, #tpu.memory_space<vmem>>, vector<128x128xbf16>
    %cst_116 = arith.constant dense<0.000000e+00> : vector<16x128xf32>
    %138 = tpu.matmul %88, %137, %cst_116 {dimension_numbers = #tpu.dot_dimension_numbers<[1], [0], [0], [1], [0, 0, 1, 1], [], []>} : vector<16x128xbf16>, vector<128x128xbf16>, vector<16x128xf32> -> vector<16x128xf32>
    %c0_117 = arith.constant 0 : index
    %c0_118 = arith.constant 0 : index
    %139 = vector.load %arg15[%c0_117, %c0_118] : memref<128x128xbf16, #tpu.memory_space<vmem>>, vector<128x128xbf16>
    %cst_119 = arith.constant dense<0.000000e+00> : vector<16x128xf32>
    %140 = tpu.matmul %136, %139, %cst_119 {dimension_numbers = #tpu.dot_dimension_numbers<[1], [0], [0], [1], [0, 0, 1, 1], [], []>} : vector<16x128xbf16>, vector<128x128xbf16>, vector<16x128xf32> -> vector<16x128xf32>
    %141 = arith.addf %138, %140 : vector<16x128xf32>
    %c0_120 = arith.constant 0 : index
    %c0_121 = arith.constant 0 : index
    %142 = vector.load %arg16[%c0_120, %c0_121] : memref<1x128xf32, #tpu.memory_space<vmem>>, vector<1x128xf32>
    %143 = vector.broadcast %142 : vector<1x128xf32> to vector<16x128xf32>
    %144 = arith.addf %141, %143 : vector<16x128xf32>
    %cst_122 = arith.constant dense<0xFF800000> : vector<16xf32>
    %145 = vector.multi_reduction <maximumf>, %144, %cst_122 [1] : vector<16x128xf32> to vector<16xf32>
    %146 = vector.shape_cast %145 : vector<16xf32> to vector<16x1xf32>
    %147 = vector.shape_cast %146 : vector<16x1xf32> to vector<16x1xf32>
    %148 = vector.broadcast %147 : vector<16x1xf32> to vector<16x128xf32>
    %c0_123 = arith.constant 0 : index
    %c0_124 = arith.constant 0 : index
    %149 = vector.load %arg17[%c0_123, %c0_124] : memref<16x128xf32, #tpu.memory_space<vmem>>, vector<16x128xf32>
    tpu.vector_store %arg17[%c0_123, %c0_124], %148 {strides = array<i32>} : memref<16x128xf32, #tpu.memory_space<vmem>>, vector<16x128xf32>,
    return
  }
  func.func @transform_0(%arg0: i32) -> (i32, i32) {
    %c0_i32 = arith.constant 0 : i32
    %c0_i32_0 = arith.constant 0 : i32
    return %arg0, %c0_i32 : i32, i32
  }
  func.func @transform_1(%arg0: i32) -> (i32, i32) {
    %c0_i32 = arith.constant 0 : i32
    %c0_i32_0 = arith.constant 0 : i32
    return %arg0, %c0_i32 : i32, i32
  }
  func.func @transform_2(%arg0: i32) -> (i32, i32) {
    %c0_i32 = arith.constant 0 : i32
    %c0_i32_0 = arith.constant 0 : i32
    return %arg0, %c0_i32 : i32, i32
  }
  func.func @transform_3(%arg0: i32) -> (i32, i32) {
    %c0_i32 = arith.constant 0 : i32
    %c0_i32_0 = arith.constant 0 : i32
    return %arg0, %c0_i32 : i32, i32
  }
  func.func @transform_4(%arg0: i32) -> (i32, i32) {
    %c0_i32 = arith.constant 0 : i32
    %c0_i32_0 = arith.constant 0 : i32
    %c0_i32_1 = arith.constant 0 : i32
    return %c0_i32, %c0_i32_0 : i32, i32
  }
  func.func @transform_5(%arg0: i32) -> (i32, i32) {
    %c0_i32 = arith.constant 0 : i32
    %c0_i32_0 = arith.constant 0 : i32
    %c0_i32_1 = arith.constant 0 : i32
    return %c0_i32, %c0_i32_0 : i32, i32
  }
  func.func @transform_6(%arg0: i32) -> (i32, i32) {
    %c0_i32 = arith.constant 0 : i32
    %c0_i32_0 = arith.constant 0 : i32
    %c0_i32_1 = arith.constant 0 : i32
    return %c0_i32, %c0_i32_0 : i32, i32
  }
  func.func @transform_7(%arg0: i32) -> (i32, i32) {
    %c0_i32 = arith.constant 0 : i32
    %c0_i32_0 = arith.constant 0 : i32
    %c0_i32_1 = arith.constant 0 : i32
    return %c0_i32, %c0_i32_0 : i32, i32
  }
  func.func @transform_8(%arg0: i32) -> (i32, i32) {
    %c0_i32 = arith.constant 0 : i32
    %c0_i32_0 = arith.constant 0 : i32
    %c0_i32_1 = arith.constant 0 : i32
    return %c0_i32, %c0_i32_0 : i32, i32
  }
  func.func @transform_9(%arg0: i32) -> (i32, i32) {
    %c0_i32 = arith.constant 0 : i32
    %c0_i32_0 = arith.constant 0 : i32
    %c0_i32_1 = arith.constant 0 : i32
    return %c0_i32, %c0_i32_0 : i32, i32
  }
  func.func @transform_10(%arg0: i32) -> (i32, i32) {
    %c0_i32 = arith.constant 0 : i32
    %c0_i32_0 = arith.constant 0 : i32
    %c0_i32_1 = arith.constant 0 : i32
    return %c0_i32, %c0_i32_0 : i32, i32
  }
  func.func @transform_11(%arg0: i32) -> (i32, i32) {
    %c0_i32 = arith.constant 0 : i32
    %c0_i32_0 = arith.constant 0 : i32
    %c0_i32_1 = arith.constant 0 : i32
    return %c0_i32, %c0_i32_0 : i32, i32
  }
  func.func @transform_12(%arg0: i32) -> (i32, i32) {
    %c0_i32 = arith.constant 0 : i32
    %c0_i32_0 = arith.constant 0 : i32
    %c0_i32_1 = arith.constant 0 : i32
    return %c0_i32, %c0_i32_0 : i32, i32
  }
  func.func @transform_13(%arg0: i32) -> (i32, i32) {
    %c0_i32 = arith.constant 0 : i32
    %c0_i32_0 = arith.constant 0 : i32
    %c0_i32_1 = arith.constant 0 : i32
    return %c0_i32, %c0_i32_0 : i32, i32
  }
  func.func @transform_14(%arg0: i32) -> (i32, i32) {
    %c0_i32 = arith.constant 0 : i32
    %c0_i32_0 = arith.constant 0 : i32
    %c0_i32_1 = arith.constant 0 : i32
    return %c0_i32, %c0_i32_0 : i32, i32
  }
  func.func @transform_15(%arg0: i32) -> (i32, i32) {
    %c0_i32 = arith.constant 0 : i32
    %c0_i32_0 = arith.constant 0 : i32
    %c0_i32_1 = arith.constant 0 : i32
    return %c0_i32, %c0_i32_0 : i32, i32
  }
  func.func @transform_16(%arg0: i32) -> (i32, i32) {
    %c0_i32 = arith.constant 0 : i32
    %c0_i32_0 = arith.constant 0 : i32
    return %arg0, %c0_i32 : i32, i32
  }
}

</mosaic_0001>

<bundles_post_ra>
// kernel: tpu_custom_call.1
= control target key start
LH: loop header
LB: loop body
LE: loop exit
PB: predicated region body
PF: predicated region fallthrough
CT: control target
= control target key end

     0   :  { %s5626_s0 = inlined_call_operand.hbm [shape: bf16[16,128], index: 0, kind: input, shape index: {}]   ;;  %s5627_s1 = inlined_call_operand.hbm [shape: bf16[16,128], index: 1, kind: input, shape index: {}]   ;;  %s5628_s2 = inlined_call_operand.hbm [shape: bf16[16,128], index: 2, kind: input, shape index: {}]   ;;  %s5629_s3 = inlined_call_operand.hbm [shape: bf16[16,128], index: 3, kind: input, shape index: {}]   ;;  %s5630_s4 = inlined_call_operand.hbm [shape: bf16[128,128], index: 4, kind: input, shape index: {}]   ;;  %s5631_s5 = inlined_call_operand.hbm [shape: bf16[128,128], index: 5, kind: input, shape index: {}]   ;;  %s5632_s6 = inlined_call_operand.hbm [shape: bf16[128,128], index: 6, kind: input, shape index: {}]   ;;  %s5633_s7 = inlined_call_operand.hbm [shape: f32[1,128], index: 7, kind: input, shape index: {}]   ;;  %s5634_s8 = inlined_call_operand.hbm [shape: bf16[128,1024], index: 8, kind: input, shape index: {}]   ;;  %s5635_s9 = inlined_call_operand.hbm [shape: bf16[128,1024], index: 9, kind: input, shape index: {}]   ;;  %s5636_s10 = inlined_call_operand.vmem [shape: f32[1,1024], index: 10, kind: input, shape index: {}]   ;;  %s5637_s11 = inlined_call_operand.hbm [shape: bf16[128,1024], index: 11, kind: input, shape index: {}]   ;;  %s5638_s12 = inlined_call_operand.vmem [shape: f32[1,1024], index: 12, kind: input, shape index: {}]   ;;  %s5639_s13 = inlined_call_operand.hbm [shape: bf16[128,128], index: 13, kind: input, shape index: {}]   ;;  %s5640_s14 = inlined_call_operand.hbm [shape: bf16[128,128], index: 14, kind: input, shape index: {}]   ;;  %s5641_s15 = inlined_call_operand.vmem [shape: f32[1,128], index: 15, kind: input, shape index: {}]   ;;  %s5642_s16 = inlined_call_operand.hbm [shape: f32[16,128], index: 16, kind: output, shape index: {}]  }
   0x1   :  { %5643 = sst [smem:[#allocation32_spill]] %s5626_s0 }
   0x2   :  { %21 = vsyncpa [#allocation3], 0 }
   0x3   :  { %22 = vsyncpa [#allocation6], 0 }
   0x4   :  { %23 = vsyncpa [#allocation9], 0 }
   0x5   :  { %24 = vsyncpa [#allocation12], 0 }
   0x6   :  { %25 = vsyncpa [#allocation15], 0 }
   0x7   :  { %26 = vsyncpa [#allocation18], 0 }
   0x8   :  { %27 = vsyncpa [#allocation21], 0 }
   0x9   :  { %28 = vsyncpa [#allocation4], 0  ;;  %s5009_s21 = smov [#allocation5]   ;;  %s5010_s23 = smov [#allocation8]  }
   0xa   :  { %s46_s22 = sshll.u32 %s5009_s21, 4  ;;  %s70_s24 = sshll.u32 %s5010_s23, 4  ;;  %s47_s22 = int_to_ptr.vmem [resolvable:$true] %s46_s22  ;;  %s71_s24 = int_to_ptr.vmem [resolvable:$true] %s70_s24 }
   0xb   :  { %s4721_s25 = scalar_lea.vmem %s47_s22, 128  ;;  %p4726_p1 = scmp.lt.s32.totalorder %s47_s22, %s47_s22 }
   0xc   :  { %p4722_p0 = scmp.ne.s32.totalorder %s47_s22, %s4721_s25  ;;  %p4727_p2 = scmp.lt.s32.totalorder %s4721_s25, %s4721_s25 }
   0xe   :  { %p4728_p3 = por %p4727_p2, %p4726_p1 }
  0x10   :  { %p4729_p4 = pnand %p4728_p3, %p4722_p0 }
  0x12   :  { %4732 = shalt.err (!%p4729_p4)
}
  0x13   :  { %s5011_s26 = smov 64   ;;  %s5012_s27 = smov 4  }
  0x14   :  { %52 = dma.hbm_to_vmem [thread:$0]  %s5627_s1, 128, %s47_s22, [#allocation6], %s5011_s26, %s5011_s26, %s5012_s27  }
  0x15   :  { %s4741_s30 = scalar_lea.vmem %s71_s24, 128  ;;  %p4746_p6 = scmp.lt.s32.totalorder %s71_s24, %s71_s24 }
  0x16   :  { %p4742_p5 = scmp.ne.s32.totalorder %s71_s24, %s4741_s30  ;;  %p4747_p7 = scmp.lt.s32.totalorder %s4741_s30, %s4741_s30 }
  0x18   :  { %p4748_p8 = por %p4747_p7, %p4746_p6 }
  0x1a   :  { %p4749_p9 = pnand %p4748_p8, %p4742_p5 }
  0x1c   :  { %4752 = shalt.err (!%p4749_p9)
}
  0x1d   :  { %76 = dma.hbm_to_vmem [thread:$0]  %s5629_s3, 128, %s71_s24, [#allocation9], %s5011_s26, %s5011_s26, %s5012_s27  }
  0x1e   :  { %s5013_s18 = smov [#allocation11]   ;;  %s5014_s20 = smov [#allocation14]  }
  0x1f   :  { %s94_s19 = sshll.u32 %s5013_s18, 4  ;;  %s119_s21 = sshll.u32 %s5014_s20, 4  ;;  %s95_s19 = int_to_ptr.vmem [resolvable:$true] %s94_s19  ;;  %s120_s21 = int_to_ptr.vmem [resolvable:$true] %s119_s21 }
  0x20   :  { %s4761_s1 = scalar_lea.vmem %s95_s19, 1024  ;;  %p4766_p11 = scmp.lt.s32.totalorder %s95_s19, %s95_s19 }
  0x21   :  { %p4762_p10 = scmp.ne.s32.totalorder %s95_s19, %s4761_s1  ;;  %p4767_p12 = scmp.lt.s32.totalorder %s4761_s1, %s4761_s1 }
  0x23   :  { %p4768_p13 = por %p4767_p12, %p4766_p11 }
  0x25   :  { %p4769_p0 = pnand %p4768_p13, %p4762_p10 }
  0x27   :  { %4772 = shalt.err (!%p4769_p0)
}
  0x28   :  { %100 = dma.hbm_to_vmem [thread:$0]  %s5631_s5, 1024, %s95_s19, [#allocation12], %s5011_s26, %s5011_s26, %s5012_s27  }
  0x29   :  { %s4781_s3 = scalar_lea.vmem %s120_s21, 16  ;;  %s4785_s24 = scalar_lea.vmem %s120_s21, 32 }
  0x2a   :  { %p4782_p1 = scmp.ne.s32.totalorder %s120_s21, %s4781_s3  ;;  %p4786_p2 = scmp.lt.s32.totalorder %s120_s21, %s120_s21 }
  0x2b   :  { %p4787_p3 = scmp.lt.s32.totalorder %s4785_s24, %s4781_s3 }
  0x2d   :  { %p4788_p4 = por %p4787_p3, %p4786_p2 }
  0x2f   :  { %p4789_p5 = pnand %p4788_p4, %p4782_p1 }
  0x31   :  { %4792 = shalt.err (!%p4789_p5)
}
  0x32   :  { %122 = dma.hbm_to_vmem [thread:$0]  %s5633_s7, 16, %s120_s21, [#allocation15]  }
  0x33   :  { %s5015_s29 = smov [#allocation17]   ;;  %s5016_s0 = smov [#allocation20]  }
  0x34   :  { %s140_s30 = sshll.u32 %s5015_s29, 4  ;;  %s168_s17 = sshll.u32 %s5016_s0, 4  ;;  %s141_s30 = int_to_ptr.vmem [resolvable:$true] %s140_s30  ;;  %s169_s17 = int_to_ptr.vmem [resolvable:$true] %s168_s17 }
  0x35   :  { %s4801_s18 = scalar_lea.vmem %s141_s30, 8192  ;;  %p4806_p7 = scmp.lt.s32.totalorder %s141_s30, %s141_s30 }
  0x36   :  { %p4802_p6 = scmp.ne.s32.totalorder %s141_s30, %s4801_s18  ;;  %p4807_p8 = scmp.lt.s32.totalorder %s4801_s18, %s4801_s18 }
  0x38   :  { %p4808_p9 = por %p4807_p8, %p4806_p7 }
  0x3a   :  { %p4809_p10 = pnand %p4808_p9, %p4802_p6 }
  0x3c   :  { %4812 = shalt.err (!%p4809_p10)
}
  0x3d   :  { %s5017_s5 = smov 512   ;;  %s5018_s19 = smov 32  }
  0x3e   :  { %146 = dma.hbm_to_vmem [thread:$0]  %s5635_s9, 8192, %s141_s30, [#allocation18], %s5017_s5, %s5017_s5, %s5018_s19  }
  0x3f   :  { %s4821_s21 = scalar_lea.vmem %s169_s17, 1024  ;;  %p4826_p12 = scmp.lt.s32.totalorder %s169_s17, %s169_s17 }
  0x40   :  { %p4822_p11 = scmp.ne.s32.totalorder %s169_s17, %s4821_s21  ;;  %p4827_p13 = scmp.lt.s32.totalorder %s4821_s21, %s4821_s21 }
  0x42   :  { %p4828_p0 = por %p4827_p13, %p4826_p12 }
  0x44   :  { %p4829_p1 = pnand %p4828_p0, %p4822_p11 }
  0x46   :  { %4832 = shalt.err (!%p4829_p1)
}
  0x47   :  { %174 = dma.hbm_to_vmem [thread:$0]  %s5639_s13, 1024, %s169_s17, [#allocation21], %s5011_s26, %s5011_s26, %s5012_s27  }
  0x48   :  { %s5019_s23 = smov [#allocation2]   ;;  %s5020_s24 = smov [#allocation7]  }
  0x49   :  { %s34_s3 = sshll.u32 %s5019_s23, 4  ;;  %s58_s25 = sshll.u32 %s5020_s24, 4  ;;  %s35_s3 = int_to_ptr.vmem [resolvable:$true] %s34_s3  ;;  %s59_s25 = int_to_ptr.vmem [resolvable:$true] %s58_s25 }
  0x4a   :  { %s4841_s9 = scalar_lea.vmem %s35_s3, 128  ;;  %p4846_p3 = scmp.lt.s32.totalorder %s35_s3, %s35_s3 }
  0x4b   :  { %p4842_p2 = scmp.ne.s32.totalorder %s35_s3, %s4841_s9  ;;  %p4847_p4 = scmp.lt.s32.totalorder %s4841_s9, %s4841_s9 }
  0x4d   :  { %p4848_p5 = por %p4847_p4, %p4846_p3 }
  0x4f   :  { %p4849_p6 = pnand %p4848_p5, %p4842_p2 }
  0x51   :  { %4852 = shalt.err (!%p4849_p6)
}
  0x52   :  { %s5644_s30 = sld [smem:[#allocation32_spill]]  ;;  %s4861_s13 = scalar_lea.vmem %s59_s25, 128 }
  0x53   :  { %p4862_p7 = scmp.ne.s32.totalorder %s59_s25, %s4861_s13  ;;  %p4866_p8 = scmp.lt.s32.totalorder %s59_s25, %s59_s25 }
  0x54   :  { %p4867_p9 = scmp.lt.s32.totalorder %s4861_s13, %s4861_s13 }
  0x56   :  { %p4868_p10 = por %p4867_p9, %p4866_p8 }
  0x58   :  { %40 = dma.hbm_to_vmem [thread:$0]  %s5644_s30, 128, %s35_s3, [#allocation3], %s5011_s26, %s5011_s26, %s5012_s27  }
  0x59   :  { %p4869_p11 = pnand %p4868_p10, %p4862_p7 }
  0x5b   :  { %4872 = shalt.err (!%p4869_p11)
}
  0x5c   :  { %64 = dma.hbm_to_vmem [thread:$0]  %s5628_s2, 128, %s59_s25, [#allocation6], %s5011_s26, %s5011_s26, %s5012_s27  }
  0x5d   :  { %s5021_s18 = smov [#allocation10]   ;;  %s5022_s7 = smov [#allocation13]  }
  0x5e   :  { %s82_s20 = sshll.u32 %s5021_s18, 4  ;;  %s106_s21 = sshll.u32 %s5022_s7, 4  ;;  %s83_s20 = int_to_ptr.vmem [resolvable:$true] %s82_s20  ;;  %s107_s21 = int_to_ptr.vmem [resolvable:$true] %s106_s21 }
  0x5f   :  { %s4881_s1 = scalar_lea.vmem %s83_s20, 1024  ;;  %p4886_p13 = scmp.lt.s32.totalorder %s83_s20, %s83_s20 }
  0x60   :  { %p4882_p12 = scmp.ne.s32.totalorder %s83_s20, %s4881_s1  ;;  %p4887_p0 = scmp.lt.s32.totalorder %s4881_s1, %s4881_s1 }
  0x62   :  { %p4888_p1 = por %p4887_p0, %p4886_p13 }
  0x64   :  { %p4889_p2 = pnand %p4888_p1, %p4882_p12 }
  0x66   :  { %4892 = shalt.err (!%p4889_p2)
}
  0x67   :  { %88 = dma.hbm_to_vmem [thread:$0]  %s5630_s4, 1024, %s83_s20, [#allocation9], %s5011_s26, %s5011_s26, %s5012_s27  }
  0x68   :  { %s4901_s2 = scalar_lea.vmem %s107_s21, 1024  ;;  %p4906_p4 = scmp.lt.s32.totalorder %s107_s21, %s107_s21 }
  0x69   :  { %p4902_p3 = scmp.ne.s32.totalorder %s107_s21, %s4901_s2  ;;  %p4907_p5 = scmp.lt.s32.totalorder %s4901_s2, %s4901_s2 }
  0x6b   :  { %p4908_p6 = por %p4907_p5, %p4906_p4 }
  0x6d   :  { %p4909_p7 = pnand %p4908_p6, %p4902_p3 }
  0x6f   :  { %4912 = shalt.err (!%p4909_p7)
}
  0x70   :  { %112 = dma.hbm_to_vmem [thread:$0]  %s5632_s6, 1024, %s107_s21, [#allocation12], %s5011_s26, %s5011_s26, %s5012_s27  }
  0x71   :  { %s5023_s25 = smov [#allocation16]   ;;  %s5024_s28 = smov [#allocation19]  }
  0x72   :  { %s128_s9 = sshll.u32 %s5023_s25, 4  ;;  %s154_s29 = sshll.u32 %s5024_s28, 4  ;;  %s129_s9 = int_to_ptr.vmem [resolvable:$true] %s128_s9  ;;  %s155_s29 = int_to_ptr.vmem [resolvable:$true] %s154_s29 }
  0x73   :  { %s4921_s4 = scalar_lea.vmem %s129_s9, 8192  ;;  %p4926_p9 = scmp.lt.s32.totalorder %s129_s9, %s129_s9 }
  0x74   :  { %p4922_p8 = scmp.ne.s32.totalorder %s129_s9, %s4921_s4  ;;  %p4927_p10 = scmp.lt.s32.totalorder %s4921_s4, %s4921_s4 }
  0x76   :  { %p4928_p11 = por %p4927_p10, %p4926_p9 }
  0x78   :  { %p4929_p12 = pnand %p4928_p11, %p4922_p8 }
  0x7a   :  { %4932 = shalt.err (!%p4929_p12)
}
  0x7b   :  { %134 = dma.hbm_to_vmem [thread:$0]  %s5634_s8, 8192, %s129_s9, [#allocation15], %s5017_s5, %s5017_s5, %s5018_s19  }
  0x7c   :  { %s4941_s6 = scalar_lea.vmem %s155_s29, 8192  ;;  %p4946_p0 = scmp.lt.s32.totalorder %s155_s29, %s155_s29 }
  0x7d   :  { %p4942_p13 = scmp.ne.s32.totalorder %s155_s29, %s4941_s6  ;;  %p4947_p1 = scmp.lt.s32.totalorder %s4941_s6, %s4941_s6 }
  0x7f   :  { %p4948_p2 = por %p4947_p1, %p4946_p0 }
  0x81   :  { %p4949_p3 = pnand %p4948_p2, %p4942_p13 }
  0x83   :  { %4952 = shalt.err (!%p4949_p3)
}
  0x84   :  { %160 = dma.hbm_to_vmem [thread:$0]  %s5637_s11, 8192, %s155_s29, [#allocation18], %s5017_s5, %s5017_s5, %s5018_s19  }
  0x85   :  { %s5025_s18 = smov [#allocation22]  }
  0x86   :  { %s180_s20 = sshll.u32 %s5025_s18, 4  ;;  %s181_s20 = int_to_ptr.vmem [resolvable:$true] %s180_s20 }
  0x87   :  { %s4961_s7 = scalar_lea.vmem %s181_s20, 1024  ;;  %p4966_p5 = scmp.lt.s32.totalorder %s181_s20, %s181_s20 }
  0x88   :  { %p4962_p4 = scmp.ne.s32.totalorder %s181_s20, %s4961_s7  ;;  %p4967_p6 = scmp.lt.s32.totalorder %s4961_s7, %s4961_s7 }
  0x8a   :  { %p4968_p7 = por %p4967_p6, %p4966_p5 }
  0x8c   :  { %p4969_p8 = pnand %p4968_p7, %p4962_p4 }
  0x8e   :  { %4972 = shalt.err (!%p4969_p8)
}
  0x8f   :  { %186 = dma.hbm_to_vmem [thread:$0]  %s5640_s14, 1024, %s181_s20, [#allocation21], %s5011_s26, %s5011_s26, %s5012_s27  }
  0x90   :  { %4993 = dma.done.wait [#allocation3], 128  }
  0x91   :  { %4994 = vsyncadd [#allocation3], 4294967168 }
  0x92   :  { %4995 = dma.done.wait [#allocation6], 256  }
  0x93   :  { %4996 = vsyncadd [#allocation6], 4294967040 }
  0x94   :  { %4997 = dma.done.wait [#allocation9], 1152  }
  0x95   :  { %4998 = vsyncadd [#allocation9], 4294966144 }
  0x96   :  { %4999 = dma.done.wait [#allocation12], 2048  }
  0x97   :  { %5000 = vsyncadd [#allocation12], 4294965248 }
  0x98   :  { %5001 = dma.done.wait [#allocation15], 8208  }
  0x99   :  { %5002 = vsyncadd [#allocation15], 4294959088 }
  0x9a   :  { %5003 = dma.done.wait [#allocation18], 16384  }
  0x9b   :  { %5004 = vsyncadd [#allocation18], 4294950912 }
  0x9c   :  { %5005 = dma.done.wait [#allocation21], 2048  }
  0x9d   :  { %5006 = vsyncadd [#allocation21], 4294965248  ;;  %v5026_v0 = vmov 0.0   ;;  %vm5027_vm0 = vmmov 0   ;;  %v4665_v1 = vld [vmem:[#allocation11 + $0x38] sm:$0xff]   ;;  %v4667_v3 = vld [vmem:[#allocation11 + $0x30] sm:$0xff]  }
  0x9e   :  { %4063 = vmatprep.subr.bf16.mxu0 %v5026_v0  ;;  %4083 = vmatprep.subr.bf16.mxu1 %v5026_v0  ;;  %v4666_v2 = vld [vmem:[#allocation10 + $0x38] sm:$0xff]   ;;  %v4668_v4 = vld [vmem:[#allocation10 + $0x30] sm:$0xff]   ;;  %v4669_v5 = vld [vmem:[#allocation11 + $0x28] sm:$0xff]   ;;  %s5028_s19 = smov [#allocation23]  }
  0x9f   :  { %4079 = vmatprep.mubr.msk.bf16.mxu0 %vm5027_vm0, %v5026_v0  ;;  %4099 = vmatprep.mubr.msk.bf16.mxu1 %vm5027_vm0, %v5026_v0  ;;  %v4670_v6 = vld [vmem:[#allocation10 + $0x28] sm:$0xff]   ;;  %v4671_v7 = vld [vmem:[#allocation11 + $0x20] sm:$0xff]   ;;  %v4673_v9 = vld [vmem:[#allocation11 + $0x18] sm:$0xff]   ;;  %s3530_s1 = sshll.u32 %s5028_s19, 4  ;;  %s3531_s1 = int_to_ptr.vmem [resolvable:$true] %s3530_s1 }
  0xa0   :  { %4064 = vmatpush3.bf16.msra.mxu0 %v4665_v1  ;;  %4084 = vmatpush3.bf16.msra.mxu1 %v4666_v2  ;;  %v4672_v8 = vld [vmem:[#allocation10 + $0x20] sm:$0xff]   ;;  %v4674_v10 = vld [vmem:[#allocation10 + $0x18] sm:$0xff]   ;;  %v4675_v11 = vld [vmem:[#allocation11 + $0x10] sm:$0xff]   ;;  %s4973_s22 = scalar_lea.vmem %s3531_s1, 256  ;;  %p4978_p10 = scmp.lt.s32.totalorder %s3531_s1, %s3531_s1 }
  0xa1   :  { %4065 = vmatprep.subr.bf16.mxu0 %v5026_v0  ;;  %4085 = vmatprep.subr.bf16.mxu1 %v5026_v0  ;;  %v4676_v12 = vld [vmem:[#allocation10 + $0x10] sm:$0xff]   ;;  %v4677_v13 = vld [vmem:[#allocation11 + $0x8] sm:$0xff]   ;;  %v4679_v15 = vld [vmem:[#allocation11] sm:$0xff]   ;;  %p4974_p9 = scmp.ne.s32.totalorder %s3531_s1, %s4973_s22  ;;  %p4979_p11 = scmp.lt.s32.totalorder %s4973_s22, %s4973_s22 }
  0xa2   :  { %v4678_v14 = vld [vmem:[#allocation10 + $0x8] sm:$0xff]   ;;  %v4680_v16 = vld [vmem:[#allocation10] sm:$0xff]   ;;  %v4681_v17 = vld [vmem:[#allocation7] sm:$0xff]  }
  0xa3   :  { %v4682_v18 = vld [vmem:[#allocation5] sm:$0xff]   ;;  %v4683_v19 = vld [vmem:[#allocation13 + $0x38] sm:$0xff]   ;;  %v4684_v20 = vld [vmem:[#allocation13 + $0x30] sm:$0xff]   ;;  %p4980_p12 = por %p4979_p11, %p4978_p10 }
  0xa4   :  { %4066 = vmatpush3.bf16.msra.mxu0 %v4667_v3  ;;  %4086 = vmatpush3.bf16.msra.mxu1 %v4668_v4  ;;  %v4685_v21 = vld [vmem:[#allocation13 + $0x28] sm:$0xff]   ;;  %v4686_v22 = vld [vmem:[#allocation13 + $0x20] sm:$0xff]   ;;  %v4687_v23 = vld [vmem:[#allocation13 + $0x18] sm:$0xff]  }
  0xa5   :  { %4067 = vmatprep.subr.bf16.mxu0 %v5026_v0  ;;  %4087 = vmatprep.subr.bf16.mxu1 %v5026_v0  ;;  %v4688_v24 = vld [vmem:[#allocation13 + $0x10] sm:$0xff]   ;;  %v4689_v25 = vld [vmem:[#allocation13 + $0x8] sm:$0xff]   ;;  %v4690_v26 = vld [vmem:[#allocation13] sm:$0xff]   ;;  %p4981_p13 = pnand %p4980_p12, %p4974_p9 }
  0xa6   :  { %v4691_v27 = vld [vmem:[#allocation8] sm:$0xff]   ;;  %v599_v28 = vld [vmem:[#allocation16 + $0x1c0] sm:$0xf] }
  0xa7   :  { %v600_v29 = vld [vmem:[#allocation16 + $0x1e0] sm:$0xf] }
  0xa8   :  { %4068 = vmatpush3.bf16.msra.mxu0 %v4669_v5  ;;  %4088 = vmatpush3.bf16.msra.mxu1 %v4670_v6  ;;  %v597_v30 = vld [vmem:[#allocation16 + $0x180] sm:$0xf]  ;;  %v3584_v31 = vcombine.low %v599_v28, %v600_v29  ;;  %v816_v29 = vld [vmem:[#allocation16 + $0x84] sm:$0xf] }
  0xa9   :  { %4069 = vmatprep.subr.bf16.mxu0 %v5026_v0  ;;  %4089 = vmatprep.subr.bf16.mxu1 %v5026_v0  ;;  %v598_v32 = vld [vmem:[#allocation16 + $0x1a0] sm:$0xf] }
  0xaa   :  { %v718_v33 = vld [vmem:[#allocation17 + $0x1c0] sm:$0xf]  ;;  %v3583_v35 = vcombine.low %v597_v30, %v598_v32  ;;  %v817_v30 = vld [vmem:[#allocation16 + $0xa4] sm:$0xf] }
  0xab   :  { %v719_v34 = vld [vmem:[#allocation17 + $0x1e0] sm:$0xf]  ;;  %v814_v32 = vld [vmem:[#allocation16 + $0x44] sm:$0xf] }
  0xac   :  { %4070 = vmatpush3.bf16.msra.mxu0 %v4671_v7  ;;  %4090 = vmatpush3.bf16.msra.mxu1 %v4672_v8  ;;  %v3593_v36 = vcombine.low %v718_v33, %v719_v34  ;;  %v716_v37 = vld [vmem:[#allocation17 + $0x180] sm:$0xf]  ;;  %v815_v33 = vld [vmem:[#allocation16 + $0x64] sm:$0xf] }
  0xad   :  { %4071 = vmatprep.subr.bf16.mxu0 %v5026_v0  ;;  %4091 = vmatprep.subr.bf16.mxu1 %v5026_v0  ;;  %v717_v38 = vld [vmem:[#allocation17 + $0x1a0] sm:$0xf]  ;;  %v3595_v34 = vcombine.low %v814_v32, %v815_v33  ;;  %v1495_v32 = vld [vmem:[#allocation16 + $0x1d0] sm:$0xf] }
  0xae   :  { %v595_v39 = vld [vmem:[#allocation16 + $0x140] sm:$0xf]  ;;  %v3592_v41 = vcombine.low %v716_v37, %v717_v38  ;;  %v1049_v38 = vld [vmem:[#allocation16 + $0x1c8] sm:$0xf]  ;;  %v1496_v33 = vld [vmem:[#allocation16 + $0x1f0] sm:$0xf] }
  0xaf   :  { %v596_v40 = vld [vmem:[#allocation16 + $0x160] sm:$0xf] }
  0xb0   :  { %4072 = vmatpush3.bf16.msra.mxu0 %v4673_v9  ;;  %4092 = vmatpush3.bf16.msra.mxu1 %v4674_v10  ;;  %v3582_v42 = vcombine.low %v595_v39, %v596_v40  ;;  %v593_v43 = vld [vmem:[#allocation16 + $0x100] sm:$0xf]  ;;  %v826_v9 = vld [vmem:[#allocation16 + $0x1c4] sm:$0xf]  ;;  %v1050_v39 = vld [vmem:[#allocation16 + $0x1e8] sm:$0xf] }
  0xb1   :  { %4073 = vmatprep.subr.bf16.mxu0 %v5026_v0  ;;  %4093 = vmatprep.subr.bf16.mxu1 %v5026_v0  ;;  %v594_v44 = vld [vmem:[#allocation16 + $0x120] sm:$0xf]  ;;  %v3618_v40 = vcombine.low %v1049_v38, %v1050_v39  ;;  %v1491_v38 = vld [vmem:[#allocation16 + $0x150] sm:$0xf] }
  0xb2   :  { %v3581_v45 = vcombine.low %v593_v43, %v594_v44  ;;  %v591_v46 = vld [vmem:[#allocation16 + $0xc0] sm:$0xf]  ;;  %v1045_v44 = vld [vmem:[#allocation16 + $0x148] sm:$0xf]  ;;  %v1492_v39 = vld [vmem:[#allocation16 + $0x170] sm:$0xf] }
  0xb3   :  { %v592_v47 = vld [vmem:[#allocation16 + $0xe0] sm:$0xf] }
  0xb4   :  { %4074 = vmatpush3.bf16.msra.mxu0 %v4675_v11  ;;  %4094 = vmatpush3.bf16.msra.mxu1 %v4676_v12  ;;  %v714_v48 = vld [vmem:[#allocation17 + $0x140] sm:$0xf]  ;;  %v3580_v49 = vcombine.low %v591_v46, %v592_v47  ;;  %v827_v12 = vld [vmem:[#allocation16 + $0x1e4] sm:$0xf]  ;;  %v1043_v47 = vld [vmem:[#allocation16 + $0x108] sm:$0xf] }
  0xb5   :  { %4075 = vmatprep.subr.bf16.mxu0 %v5026_v0  ;;  %4095 = vmatprep.subr.bf16.mxu1 %v5026_v0  ;;  %v715_v50 = vld [vmem:[#allocation17 + $0x160] sm:$0xf] }
  0xb6   :  { %v3591_v51 = vcombine.low %v714_v48, %v715_v50  ;;  %v589_v52 = vld [vmem:[#allocation16 + $0x80] sm:$0xf]  ;;  %v1044_v48 = vld [vmem:[#allocation16 + $0x128] sm:$0xf] }
  0xb7   :  { %v590_v53 = vld [vmem:[#allocation16 + $0xa0] sm:$0xf]  ;;  %v1041_v50 = vld [vmem:[#allocation16 + $0xc8] sm:$0xf] }
  0xb8   :  { %4076 = vmatpush3.bf16.msra.mxu0 %v4677_v13  ;;  %4096 = vmatpush3.bf16.msra.mxu1 %v4678_v14  ;;  %v712_v54 = vld [vmem:[#allocation17 + $0x100] sm:$0xf]  ;;  %v3579_v55 = vcombine.low %v589_v52, %v590_v53  ;;  %v3601_v13 = vcombine.low %v826_v9, %v827_v12  ;;  %v1039_v53 = vld [vmem:[#allocation16 + $0x88] sm:$0xf]  ;;  %v1267_v9 = vld [vmem:[#allocation16 + $0x12c] sm:$0xf] }
  0xb9   :  { %4077 = vmatprep.subr.bf16.mxu0 %v5026_v0  ;;  %4097 = vmatprep.subr.bf16.mxu1 %v5026_v0  ;;  %v713_v56 = vld [vmem:[#allocation17 + $0x120] sm:$0xf]  ;;  %v1264_v12 = vld [vmem:[#allocation16 + $0xcc] sm:$0xf] }
  0xba   :  { %v3590_v57 = vcombine.low %v712_v54, %v713_v56  ;;  %v587_v58 = vld [vmem:[#allocation16 + $0x40] sm:$0xf]  ;;  %v1040_v54 = vld [vmem:[#allocation16 + $0xa8] sm:$0xf] }
  0xbb   :  { %v588_v59 = vld [vmem:[#allocation16 + $0x60] sm:$0xf]  ;;  %v1037_v56 = vld [vmem:[#allocation16 + $0x48] sm:$0xf] }
  0xbc   :  { %4078 = vmatpush3.bf16.msra.mxu0 %v4679_v15  ;;  %4098 = vmatpush3.bf16.msra.mxu1 %v4680_v16  ;;  %v710_v60 = vld [vmem:[#allocation17 + $0xc0] sm:$0xf]  ;;  %v3578_v61 = vcombine.low %v587_v58, %v588_v59  ;;  %v824_v16 = vld [vmem:[#allocation16 + $0x184] sm:$0xf]  ;;  %v1035_v59 = vld [vmem:[#allocation16 + $0x8] sm:$0xf] }
  0xbd   :  { %4103 = vmatprep.subr.bf16.mxu0 %v5026_v0  ;;  %4123 = vmatprep.subr.bf16.mxu1 %v5026_v0  ;;  %v711_v62 = vld [vmem:[#allocation17 + $0xe0] sm:$0xf] }
  0xbe   :  { %v3589_v63 = vcombine.low %v710_v60, %v711_v62  ;;  %v585_v1 = vld [vmem:[#allocation16] sm:$0xf]  ;;  %v1036_v60 = vld [vmem:[#allocation16 + $0x28] sm:$0xf]  ;;  %v1272_v62 = vld [vmem:[#allocation16 + $0x1cc] sm:$0xf] }
  0xbf   :  { %4080 = vmatmul.mubr.bf16.vlgmr.msra.gmra.mxu0 %v4681_v17  ;;  %4100 = vmatmul.mubr.bf16.vlgmr.msra.gmra.mxu1 %v4682_v18  ;;  %v586_v2 = vld [vmem:[#allocation16 + $0x20] sm:$0xf]  ;;  %v825_v18 = vld [vmem:[#allocation16 + $0x1a4] sm:$0xf] }
  0xc0   :  { %4104 = vmatpush3.bf16.msra.mxu0 %v4683_v19  ;;  %4119 = vmatprep.mubr.msk.bf16.mxu0 %vm5027_vm0, %v5026_v0  ;;  %v708_v3 = vld [vmem:[#allocation17 + $0x80] sm:$0xf]  ;;  %v3577_v4 = vcombine.low %v585_v1, %v586_v2  ;;  %v3600_v19 = vcombine.low %v824_v16, %v825_v18  ;;  %v1270_v2 = vld [vmem:[#allocation16 + $0x18c] sm:$0xf] }
  0xc1   :  { %4105 = vmatprep.subr.bf16.mxu0 %v5026_v0  ;;  %4139 = vmatprep.mubr.msk.bf16.mxu1 %vm5027_vm0, %v5026_v0  ;;  %v709_v5 = vld [vmem:[#allocation17 + $0xa0] sm:$0xf] }
  0xc2   :  { %4124 = vmatpush3.bf16.msra.mxu1 %v3584_v31  ;;  %v3588_v6 = vcombine.low %v708_v3, %v709_v5  ;;  %v706_v7 = vld [vmem:[#allocation17 + $0x40] sm:$0xf]  ;;  %v3596_v31 = vcombine.low %v816_v29, %v817_v30  ;;  %v1271_v3 = vld [vmem:[#allocation16 + $0x1ac] sm:$0xf] }
  0xc3   :  { %4125 = vmatprep.subr.bf16.mxu1 %v5026_v0  ;;  %v707_v8 = vld [vmem:[#allocation17 + $0x60] sm:$0xf]  ;;  %v1268_v5 = vld [vmem:[#allocation16 + $0x14c] sm:$0xf] }
  0xc4   :  { %4106 = vmatpush3.bf16.msra.mxu0 %v4684_v20  ;;  %v5241_v10 = vld [vmem:[#allocation2] sm:$0xff]   ;;  %v3587_v11 = vcombine.low %v706_v7, %v707_v8  ;;  %v1266_v8 = vld [vmem:[#allocation16 + $0x10c] sm:$0xf] }
  0xc5   :  { %4107 = vmatprep.subr.bf16.mxu0 %v5026_v0  ;;  %v704_v14 = vld [vmem:[#allocation17] sm:$0xf]  ;;  %v822_v20 = vld [vmem:[#allocation16 + $0x144] sm:$0xf]  ;;  %v1258_v29 = vld [vmem:[#allocation16 + $0xc] sm:$0xf] }
  0xc6   :  { %4126 = vmatpush3.bf16.msra.mxu1 %v3583_v35  ;;  %v705_v15 = vld [vmem:[#allocation17 + $0x20] sm:$0xf]  ;;  %v812_v35 = vld [vmem:[#allocation16 + $0x4] sm:$0xf]  ;;  %v1259_v30 = vld [vmem:[#allocation16 + $0x2c] sm:$0xf] }
  0xc7   :  { %4127 = vmatprep.subr.bf16.mxu1 %v5026_v0  ;;  %v3586_v17 = vcombine.low %v704_v14, %v705_v15 }
  0xc8   :  { %4108 = vmatpush3.bf16.msra.mxu0 %v4685_v21  ;;  %v823_v21 = vld [vmem:[#allocation16 + $0x164] sm:$0xf] }
  0xc9   :  { %4109 = vmatprep.subr.bf16.mxu0 %v5026_v0 }
  0xca   :  { %4128 = vmatpush3.bf16.msra.mxu1 %v3582_v42  ;;  %v1048_v42 = vld [vmem:[#allocation16 + $0x1a8] sm:$0xf] }
  0xcb   :  { %4129 = vmatprep.subr.bf16.mxu1 %v5026_v0 }
  0xcc   :  { %4110 = vmatpush3.bf16.msra.mxu0 %v4686_v22  ;;  %v3599_v22 = vcombine.low %v822_v20, %v823_v21  ;;  %v1263_v20 = vld [vmem:[#allocation16 + $0xac] sm:$0xf] }
  0xcd   :  { %4111 = vmatprep.subr.bf16.mxu0 %v5026_v0 }
  0xce   :  { %4130 = vmatpush3.bf16.msra.mxu1 %v3581_v45  ;;  %v1046_v45 = vld [vmem:[#allocation16 + $0x168] sm:$0xf] }
  0xcf   :  { %4131 = vmatprep.subr.bf16.mxu1 %v5026_v0  ;;  %v3616_v46 = vcombine.low %v1045_v44, %v1046_v45  ;;  %v1487_v45 = vld [vmem:[#allocation16 + $0xd0] sm:$0xf] }
  0xd0   :  { %4112 = vmatpush3.bf16.msra.mxu0 %v4687_v23  ;;  %v820_v23 = vld [vmem:[#allocation16 + $0x104] sm:$0xf] }
  0xd1   :  { %4113 = vmatprep.subr.bf16.mxu0 %v5026_v0 }
  0xd2   :  { %4132 = vmatpush3.bf16.msra.mxu1 %v3580_v49  ;;  %v3615_v49 = vcombine.low %v1043_v47, %v1044_v48 }
  0xd3   :  { %4133 = vmatprep.subr.bf16.mxu1 %v5026_v0 }
  0xd4   :  { %4114 = vmatpush3.bf16.msra.mxu0 %v4688_v24  ;;  %v821_v24 = vld [vmem:[#allocation16 + $0x124] sm:$0xf] }
  0xd5   :  { %4115 = vmatprep.subr.bf16.mxu0 %v5026_v0 }
  0xd6   :  { %4134 = vmatpush3.bf16.msra.mxu1 %v3579_v55  ;;  %v3613_v55 = vcombine.low %v1039_v53, %v1040_v54  ;;  %v1485_v53 = vld [vmem:[#allocation16 + $0x90] sm:$0xf] }
  0xd7   :  { %4135 = vmatprep.subr.bf16.mxu1 %v5026_v0  ;;  %v1486_v54 = vld [vmem:[#allocation16 + $0xb0] sm:$0xf] }
  0xd8   :  { %4116 = vmatpush3.bf16.msra.mxu0 %v4689_v25  ;;  %v3598_v25 = vcombine.low %v820_v23, %v821_v24 }
  0xd9   :  { %4117 = vmatprep.subr.bf16.mxu0 %v5026_v0 }
  0xda   :  { %4136 = vmatpush3.bf16.msra.mxu1 %v3578_v61  ;;  %v3611_v61 = vcombine.low %v1035_v59, %v1036_v60 }
  0xdb   :  { %4137 = vmatprep.subr.bf16.mxu1 %v5026_v0 }
  0xdc   :  { %4118 = vmatpush3.bf16.msra.mxu0 %v4690_v26  ;;  %v818_v26 = vld [vmem:[#allocation16 + $0xc4] sm:$0xf] }
  0xdd   :  { %4143 = vmatprep.subr.bf16.mxu0 %v5026_v0 }
  0xde   :  { %4138 = vmatpush3.bf16.msra.mxu1 %v3577_v4  ;;  %v3634_v4 = vcombine.low %v1270_v2, %v1271_v3  ;;  %v1482_v2 = vld [vmem:[#allocation16 + $0x30] sm:$0xf] }
  0xdf   :  { %4120 = vmatmul.mubr.bf16.vlgmr.msra.gmra.mxu0 %v4691_v27  ;;  %4163 = vmatprep.subr.bf16.mxu1 %v5026_v0  ;;  %v819_v27 = vld [vmem:[#allocation16 + $0xe4] sm:$0xf] }
  0xe0   :  { %4159 = vmatprep.mubr.msk.bf16.mxu0 %vm5027_vm0, %v5026_v0  ;;  %4144 = vmatpush3.bf16.msra.mxu0 %v3593_v36  ;;  %v3597_v28 = vcombine.low %v818_v26, %v819_v27  ;;  %v813_v36 = vld [vmem:[#allocation16 + $0x24] sm:$0xf]  ;;  %v1260_v26 = vld [vmem:[#allocation16 + $0x4c] sm:$0xf] }
  0xe1   :  { %4145 = vmatprep.subr.bf16.mxu0 %v5026_v0  ;;  %4140 = vmatmul.mubr.bf16.vlgmr.msra.gmra.mxu1 %v5241_v10  ;;  %v3594_v37 = vcombine.low %v812_v35, %v813_v36  ;;  %v1261_v27 = vld [vmem:[#allocation16 + $0x6c] sm:$0xf]  ;;  %v1493_v35 = vld [vmem:[#allocation16 + $0x190] sm:$0xf] }
  0xe2   :  { %4164 = vmatpush3.bf16.msra.mxu1 %v3601_v13  ;;  %4179 = vmatprep.mubr.msk.bf16.mxu1 %vm5027_vm0, %v5026_v0  ;;  %v1265_v13 = vld [vmem:[#allocation16 + $0xec] sm:$0xf]  ;;  %v1494_v36 = vld [vmem:[#allocation16 + $0x1b0] sm:$0xf] }
  0xe3   :  { %4165 = vmatprep.subr.bf16.mxu1 %v5026_v0  ;;  %v3631_v15 = vcombine.low %v1264_v12, %v1265_v13 }
  0xe4   :  { %4146 = vmatpush3.bf16.msra.mxu0 %v3592_v41  ;;  %v1047_v41 = vld [vmem:[#allocation16 + $0x188] sm:$0xf] }
  0xe5   :  { %4147 = vmatprep.subr.bf16.mxu0 %v5026_v0  ;;  %v3617_v43 = vcombine.low %v1047_v41, %v1048_v42  ;;  %v1489_v41 = vld [vmem:[#allocation16 + $0x110] sm:$0xf] }
  0xe6   :  { %4166 = vmatpush3.bf16.msra.mxu1 %v3600_v19  ;;  %v1262_v19 = vld [vmem:[#allocation16 + $0x8c] sm:$0xf]  ;;  %v1490_v42 = vld [vmem:[#allocation16 + $0x130] sm:$0xf] }
  0xe7   :  { %4167 = vmatprep.subr.bf16.mxu1 %v5026_v0 }
  0xe8   :  { %4148 = vmatpush3.bf16.msra.mxu0 %v3591_v51  ;;  %v1042_v51 = vld [vmem:[#allocation16 + $0xe8] sm:$0xf] }
  0xe9   :  { %4149 = vmatprep.subr.bf16.mxu0 %v5026_v0  ;;  %v3614_v52 = vcombine.low %v1041_v50, %v1042_v51  ;;  %v3575_v50 = vld [vmem:[#allocation14] ss:$0 sm:$0xff] }
  0xea   :  { %4168 = vmatpush3.bf16.msra.mxu1 %v3599_v22  ;;  %v3630_v22 = vcombine.low %v1262_v19, %v1263_v20  ;;  %v1714_v19 = vld [vmem:[#allocation16 + $0x154] sm:$0xf] }
  0xeb   :  { %4169 = vmatprep.subr.bf16.mxu1 %v5026_v0  ;;  %v1715_v20 = vld [vmem:[#allocation16 + $0x174] sm:$0xf] }
  0xec   :  { %4150 = vmatpush3.bf16.msra.mxu0 %v3590_v57  ;;  %v1038_v57 = vld [vmem:[#allocation16 + $0x68] sm:$0xf] }
  0xed   :  { %4151 = vmatprep.subr.bf16.mxu0 %v5026_v0  ;;  %v3612_v58 = vcombine.low %v1037_v56, %v1038_v57  ;;  %v3647_v57 = vcombine.low %v1485_v53, %v1486_v54  ;;  %v925_v53 = vld [vmem:[#allocation17 + $0x4] sm:$0xf] }
  0xee   :  { %4170 = vmatpush3.bf16.msra.mxu1 %v3598_v25  ;;  %v926_v54 = vld [vmem:[#allocation17 + $0x24] sm:$0xf] }
  0xef   :  { %4171 = vmatprep.subr.bf16.mxu1 %v5026_v0 }
  0xf0   :  { %4152 = vmatpush3.bf16.msra.mxu0 %v3589_v63  ;;  %v1273_v63 = vld [vmem:[#allocation16 + $0x1ec] sm:$0xf] }
  0xf1   :  { %4153 = vmatprep.subr.bf16.mxu0 %v5026_v0  ;;  %v3635_v1 = vcombine.low %v1272_v62, %v1273_v63  ;;  %v1484_v62 = vld [vmem:[#allocation16 + $0x70] sm:$0xf] }
  0xf2   :  { %4172 = vmatpush3.bf16.msra.mxu1 %v3597_v28  ;;  %v3629_v28 = vcombine.low %v1260_v26, %v1261_v27  ;;  %v1713_v26 = vld [vmem:[#allocation16 + $0x134] sm:$0xf] }
  0xf3   :  { %4173 = vmatprep.subr.bf16.mxu1 %v5026_v0 }
  0xf4   :  { %4154 = vmatpush3.bf16.msra.mxu0 %v3588_v6  ;;  %v1269_v6 = vld [vmem:[#allocation16 + $0x16c] sm:$0xf] }
  0xf5   :  { %4155 = vmatprep.subr.bf16.mxu0 %v5026_v0  ;;  %v3633_v7 = vcombine.low %v1268_v5, %v1269_v6  ;;  %v1719_v5 = vld [vmem:[#allocation16 + $0x1f4] sm:$0xf] }
  0xf6   :  { %4174 = vmatpush3.bf16.msra.mxu1 %v3596_v31  ;;  %v3628_v31 = vcombine.low %v1258_v29, %v1259_v30  ;;  %v933_v29 = vld [vmem:[#allocation17 + $0x104] sm:$0xf] }
  0xf7   :  { %4175 = vmatprep.subr.bf16.mxu1 %v5026_v0  ;;  %v934_v30 = vld [vmem:[#allocation17 + $0x124] sm:$0xf] }
  0xf8   :  { %4156 = vmatpush3.bf16.msra.mxu0 %v3587_v11  ;;  %v3632_v11 = vcombine.low %v1266_v8, %v1267_v9  ;;  %v940_v8 = vld [vmem:[#allocation17 + $0x1e4] sm:$0xf]  ;;  %v1716_v9 = vld [vmem:[#allocation16 + $0x194] sm:$0xf] }
  0xf9   :  { %4157 = vmatprep.subr.bf16.mxu0 %v5026_v0 }
  0xfa   :  { %4176 = vmatpush3.bf16.msra.mxu1 %v3595_v34  ;;  %v3652_v34 = vcombine.low %v1495_v32, %v1496_v33  ;;  %v1711_v32 = vld [vmem:[#allocation16 + $0xf4] sm:$0xf] }
  0xfb   :  { %4177 = vmatprep.subr.bf16.mxu1 %v5026_v0 }
  0xfc   :  { %4158 = vmatpush3.bf16.msra.mxu0 %v3586_v17 }
  0xfd   :  { %4183 = vmatprep.subr.bf16.mxu0 %v5026_v0 }
  0xfe   :  { %4178 = vmatpush3.bf16.msra.mxu1 %v3594_v37  ;;  %v3651_v37 = vcombine.low %v1493_v35, %v1494_v36  ;;  %v931_v35 = vld [vmem:[#allocation17 + $0xc4] sm:$0xf] }
  0xff   :  { %4203 = vmatprep.subr.bf16.mxu1 %v5026_v0  ;;  %v932_v36 = vld [vmem:[#allocation17 + $0xe4] sm:$0xf] }
 0x101   :  { %4180 = vmatmul.mubr.bf16.vlgmr.msra.gmra.mxu1 %v5241_v10 }
 0x102   :  { %4204 = vmatpush3.bf16.msra.mxu1 %v3618_v40  ;;  %4219 = vmatprep.mubr.msk.bf16.mxu1 %vm5027_vm0, %v5026_v0  ;;  %v3650_v40 = vcombine.low %v1491_v38, %v1492_v39  ;;  %v1709_v38 = vld [vmem:[#allocation16 + $0xb4] sm:$0xf] }
 0x103   :  { %4205 = vmatprep.subr.bf16.mxu1 %v5026_v0 }
 0x106   :  { %4206 = vmatpush3.bf16.msra.mxu1 %v3617_v43  ;;  %v3649_v43 = vcombine.low %v1489_v41, %v1490_v42  ;;  %v929_v41 = vld [vmem:[#allocation17 + $0x84] sm:$0xf] }
 0x107   :  { %4207 = vmatprep.subr.bf16.mxu1 %v5026_v0  ;;  %v930_v42 = vld [vmem:[#allocation17 + $0xa4] sm:$0xf] }
 0x10a   :  { %4208 = vmatpush3.bf16.msra.mxu1 %v3616_v46  ;;  %v1488_v46 = vld [vmem:[#allocation16 + $0xf0] sm:$0xf] }
 0x10b   :  { %4209 = vmatprep.subr.bf16.mxu1 %v5026_v0  ;;  %v3648_v48 = vcombine.low %v1487_v45, %v1488_v46  ;;  %v3605_v46 = vcombine.low %v929_v41, %v930_v42  ;;  %v1149_v41 = vld [vmem:[#allocation17 + $0x28] sm:$0xf]  ;;  %v2164_v42 = vld [vmem:[#allocation16 + $0x1dc] sm:$0xf] }
 0x10e   :  { %4210 = vmatpush3.bf16.msra.mxu1 %v3615_v49 }
 0x10f   :  { %4211 = vmatprep.subr.bf16.mxu1 %v5026_v0 }
 0x112   :  { %4212 = vmatpush3.bf16.msra.mxu1 %v3614_v52 }
 0x113   :  { %4213 = vmatprep.subr.bf16.mxu1 %v5026_v0 }
 0x116   :  { %4214 = vmatpush3.bf16.msra.mxu1 %v3613_v55 }
 0x117   :  { %4215 = vmatprep.subr.bf16.mxu1 %v5026_v0 }
 0x11a   :  { %4216 = vmatpush3.bf16.msra.mxu1 %v3612_v58 }
 0x11b   :  { %4217 = vmatprep.subr.bf16.mxu1 %v5026_v0 }
 0x11e   :  { %4218 = vmatpush3.bf16.msra.mxu1 %v3611_v61  ;;  %v1483_v61 = vld [vmem:[#allocation16 + $0x50] sm:$0xf] }
 0x11f   :  { %4243 = vmatprep.subr.bf16.mxu1 %v5026_v0  ;;  %v3646_v63 = vcombine.low %v1483_v61, %v1484_v62  ;;  %v1939_v61 = vld [vmem:[#allocation16 + $0x198] sm:$0xf] }
 0x120   :  { %v1940_v62 = vld [vmem:[#allocation16 + $0x1b8] sm:$0xf] }
 0x121   :  { %4220 = vmatmul.mubr.bf16.vlgmr.msra.gmra.mxu1 %v5241_v10 }
 0x122   :  { %4244 = vmatpush3.bf16.msra.mxu1 %v3635_v1  ;;  %4259 = vmatprep.mubr.msk.bf16.mxu1 %vm5027_vm0, %v5026_v0  ;;  %v1481_v1 = vld [vmem:[#allocation16 + $0x10] sm:$0xf] }
 0x123   :  { %4245 = vmatprep.subr.bf16.mxu1 %v5026_v0  ;;  %v3645_v3 = vcombine.low %v1481_v1, %v1482_v2  ;;  %v1160_v2 = vld [vmem:[#allocation17 + $0x188] sm:$0xf] }
 0x126   :  { %4246 = vmatpush3.bf16.msra.mxu1 %v3634_v4  ;;  %v1718_v4 = vld [vmem:[#allocation16 + $0x1d4] sm:$0xf] }
 0x127   :  { %4247 = vmatprep.subr.bf16.mxu1 %v5026_v0  ;;  %v3669_v6 = vcombine.low %v1718_v4, %v1719_v5  ;;  %v1937_v4 = vld [vmem:[#allocation16 + $0x158] sm:$0xf] }
 0x128   :  { %v1938_v5 = vld [vmem:[#allocation16 + $0x178] sm:$0xf] }
 0x12a   :  { %4248 = vmatpush3.bf16.msra.mxu1 %v3633_v7  ;;  %v939_v7 = vld [vmem:[#allocation17 + $0x1c4] sm:$0xf] }
 0x12b   :  { %4249 = vmatprep.subr.bf16.mxu1 %v5026_v0 }
 0x12e   :  { %4250 = vmatpush3.bf16.msra.mxu1 %v3632_v11  ;;  %v1717_v11 = vld [vmem:[#allocation16 + $0x1b4] sm:$0xf] }
 0x12f   :  { %4251 = vmatprep.subr.bf16.mxu1 %v5026_v0  ;;  %v3668_v13 = vcombine.low %v1716_v9, %v1717_v11  ;;  %v1159_v9 = vld [vmem:[#allocation17 + $0x168] sm:$0xf]  ;;  %v1935_v11 = vld [vmem:[#allocation16 + $0x118] sm:$0xf] }
 0x132   :  { %4252 = vmatpush3.bf16.msra.mxu1 %v3631_v15  ;;  %v3610_v15 = vcombine.low %v939_v7, %v940_v8  ;;  %v1158_v8 = vld [vmem:[#allocation17 + $0x148] sm:$0xf] }
 0x133   :  { %4253 = vmatprep.subr.bf16.mxu1 %v5026_v0 }
 0x136   :  { %4254 = vmatpush3.bf16.msra.mxu1 %v3630_v22 }
 0x137   :  { %4255 = vmatprep.subr.bf16.mxu1 %v5026_v0 }
 0x13a   :  { %4256 = vmatpush3.bf16.msra.mxu1 %v3629_v28 }
 0x13b   :  { %4257 = vmatprep.subr.bf16.mxu1 %v5026_v0 }
 0x13e   :  { %4258 = vmatpush3.bf16.msra.mxu1 %v3628_v31  ;;  %v1710_v31 = vld [vmem:[#allocation16 + $0xd4] sm:$0xf] }
 0x13f   :  { %4283 = vmatprep.subr.bf16.mxu1 %v5026_v0  ;;  %v3665_v33 = vcombine.low %v1710_v31, %v1711_v32  ;;  %v1930_v31 = vld [vmem:[#allocation16 + $0x78] sm:$0xf] }
 0x141   :  { %4260 = vmatmul.mubr.bf16.vlgmr.msra.gmra.mxu1 %v5241_v10 }
 0x142   :  { %4284 = vmatpush3.bf16.msra.mxu1 %v3652_v34  ;;  %4299 = vmatprep.mubr.msk.bf16.mxu1 %vm5027_vm0, %v5026_v0  ;;  %v3607_v34 = vcombine.low %v933_v29, %v934_v30  ;;  %v1153_v29 = vld [vmem:[#allocation17 + $0xa8] sm:$0xf]  ;;  %v1929_v30 = vld [vmem:[#allocation16 + $0x58] sm:$0xf] }
 0x143   :  { %4285 = vmatprep.subr.bf16.mxu1 %v5026_v0  ;;  %v3680_v32 = vcombine.low %v1929_v30, %v1930_v31  ;;  %v1371_v31 = vld [vmem:[#allocation17 + $0xc] sm:$0xf] }
 0x146   :  { %4286 = vmatpush3.bf16.msra.mxu1 %v3651_v37  ;;  %v1708_v37 = vld [vmem:[#allocation16 + $0x94] sm:$0xf] }
 0x147   :  { %4287 = vmatprep.subr.bf16.mxu1 %v5026_v0  ;;  %v3664_v39 = vcombine.low %v1708_v37, %v1709_v38  ;;  %v1928_v37 = vld [vmem:[#allocation16 + $0x38] sm:$0xf] }
 0x14a   :  { %4288 = vmatpush3.bf16.msra.mxu1 %v3650_v40  ;;  %v3606_v40 = vcombine.low %v931_v35, %v932_v36  ;;  %v1151_v35 = vld [vmem:[#allocation17 + $0x68] sm:$0xf]  ;;  %v1927_v36 = vld [vmem:[#allocation16 + $0x18] sm:$0xf] }
 0x14b   :  { %4289 = vmatprep.subr.bf16.mxu1 %v5026_v0  ;;  %v3679_v38 = vcombine.low %v1927_v36, %v1928_v37  ;;  %v1609_v36 = vld [vmem:[#allocation17 + $0x1f0] sm:$0xf] }
 0x14e   :  { %4290 = vmatpush3.bf16.msra.mxu1 %v3649_v43  ;;  %v1706_v43 = vld [vmem:[#allocation16 + $0x54] sm:$0xf] }
 0x14f   :  { %4291 = vmatprep.subr.bf16.mxu1 %v5026_v0 }
 0x152   :  { %4292 = vmatpush3.bf16.msra.mxu1 %v3648_v48  ;;  %v928_v48 = vld [vmem:[#allocation17 + $0x64] sm:$0xf] }
 0x153   :  { %4293 = vmatprep.subr.bf16.mxu1 %v5026_v0 }
 0x156   :  { %4294 = vmatpush3.bf16.msra.mxu1 %v3647_v57 }
 0x157   :  { %4295 = vmatprep.subr.bf16.mxu1 %v5026_v0 }
 0x15a   :  { %4296 = vmatpush3.bf16.msra.mxu1 %v3646_v63  ;;  %v3685_v63 = vcombine.low %v1939_v61, %v1940_v62  ;;  %v1381_v62 = vld [vmem:[#allocation17 + $0x14c] sm:$0xf] }
 0x15b   :  { %4297 = vmatprep.subr.bf16.mxu1 %v5026_v0 }
 0x15e   :  { %4298 = vmatpush3.bf16.msra.mxu1 %v3645_v3  ;;  %v1161_v3 = vld [vmem:[#allocation17 + $0x1a8] sm:$0xf] }
 0x15f   :  { %4323 = vmatprep.subr.bf16.mxu1 %v5026_v0  ;;  %v3626_v7 = vcombine.low %v1160_v2, %v1161_v3  ;;  %v2159_v2 = vld [vmem:[#allocation16 + $0x13c] sm:$0xf] }
 0x161   :  { %4300 = vmatmul.mubr.bf16.vlgmr.msra.gmra.mxu1 %v5241_v10 }
 0x162   :  { %4324 = vmatpush3.bf16.msra.mxu1 %v3669_v6  ;;  %4339 = vmatprep.mubr.msk.bf16.mxu1 %vm5027_vm0, %v5026_v0  ;;  %v3684_v6 = vcombine.low %v1937_v4, %v1938_v5  ;;  %v1379_v5 = vld [vmem:[#allocation17 + $0x10c] sm:$0xf] }
 0x163   :  { %4325 = vmatprep.subr.bf16.mxu1 %v5026_v0 }
 0x166   :  { %4326 = vmatpush3.bf16.msra.mxu1 %v3668_v13 }
 0x167   :  { %4327 = vmatprep.subr.bf16.mxu1 %v5026_v0 }
 0x17f   :  { %v353_v14 = vpop.f32.mrf.mxu0  ;;  %v448_v16 = vpop.f32.mrf.mxu1 }
 0x180   :  { %v449_v44 = vadd.f32 %v448_v16, %v353_v14  ;;  %v937_v16 = vld [vmem:[#allocation17 + $0x184] sm:$0xf] }
 0x181   :  { %v4081_v17 = vpop.f32.mrf.mxu0  ;;  %v4101_v18 = vpop.f32.mrf.mxu1 }
 0x182   :  { %v938_v18 = vld [vmem:[#allocation17 + $0x1a4] sm:$0xf] }
 0x183   :  { %v356_v21 = vpop.f32.mrf.mxu0  ;;  %v451_v23 = vpop.f32.mrf.mxu1  ;;  %v3609_v22 = vcombine.low %v937_v16, %v938_v18  ;;  %v1157_v16 = vld [vmem:[#allocation17 + $0x128] sm:$0xf]  ;;  %v1933_v18 = vld [vmem:[#allocation16 + $0xd8] sm:$0xf] }
 0x184   :  { %v452_v52 = vadd.f32 %v451_v23, %v356_v21  ;;  %v3667_v21 = vcombine.low %v1714_v19, %v1715_v20  ;;  %v935_v23 = vld [vmem:[#allocation17 + $0x144] sm:$0xf]  ;;  %v1934_v19 = vld [vmem:[#allocation16 + $0xf8] sm:$0xf] }
 0x185   :  { %v4082_v24 = vpop.f32.mrf.mxu0  ;;  %v4102_v25 = vpop.f32.mrf.mxu1  ;;  %v3682_v20 = vcombine.low %v1933_v18, %v1934_v19  ;;  %v1375_v19 = vld [vmem:[#allocation17 + $0x8c] sm:$0xf] }
 0x186   :  { %v936_v24 = vld [vmem:[#allocation17 + $0x164] sm:$0xf]  ;;  %4328 = vmatpush3.bf16.msra.mxu1 %v3667_v21  ;;  %v1712_v25 = vld [vmem:[#allocation16 + $0x114] sm:$0xf] }
 0x187   :  { %4329 = vmatprep.subr.bf16.mxu1 %v5026_v0  ;;  %v3666_v27 = vcombine.low %v1712_v25, %v1713_v26  ;;  %v3608_v28 = vcombine.low %v935_v23, %v936_v24  ;;  %v1155_v23 = vld [vmem:[#allocation17 + $0xe8] sm:$0xf]  ;;  %v1931_v24 = vld [vmem:[#allocation16 + $0x98] sm:$0xf] }
 0x188   :  { %v1932_v25 = vld [vmem:[#allocation16 + $0xb8] sm:$0xf] }
 0x189   :  { %v3681_v26 = vcombine.low %v1931_v24, %v1932_v25  ;;  %v1373_v25 = vld [vmem:[#allocation17 + $0x4c] sm:$0xf] }
 0x18a   :  { %4330 = vmatpush3.bf16.msra.mxu1 %v3666_v27 }
 0x18b   :  { %4331 = vmatprep.subr.bf16.mxu1 %v5026_v0 }
 0x18e   :  { %4332 = vmatpush3.bf16.msra.mxu1 %v3665_v33 }
 0x18f   :  { %4333 = vmatprep.subr.bf16.mxu1 %v5026_v0 }
 0x192   :  { %4334 = vmatpush3.bf16.msra.mxu1 %v3664_v39 }
 0x193   :  { %4335 = vmatprep.subr.bf16.mxu1 %v5026_v0 }
 0x19f   :  { %v561_v47 = vpop.f32.mrf.mxu0 }
 0x1a0   :  { %v568_v49 = vadd.f32 %v561_v47, %v449_v44  ;;  %v1707_v44 = vld [vmem:[#allocation16 + $0x74] sm:$0xf]  ;;  %v927_v47 = vld [vmem:[#allocation17 + $0x44] sm:$0xf] }
 0x1a1   :  { %v4121_v51 = vpop.f32.mrf.mxu0  ;;  %v3663_v45 = vcombine.low %v1706_v43, %v1707_v44  ;;  %v2165_v43 = vld [vmem:[#allocation16 + $0x1fc] sm:$0xf] }
 0x1a2   :  { %v577_v55 = vadd.f32 %v3575_v50, %v568_v49  ;;  %v1704_v49 = vld [vmem:[#allocation16 + $0x14] sm:$0xf]  ;;  %v3703_v44 = vcombine.low %v2164_v42, %v2165_v43  ;;  %v1604_v43 = vld [vmem:[#allocation17 + $0x150] sm:$0xf] }
 0x1a3   :  { %v564_v56 = vpop.f32.mrf.mxu0  ;;  %4336 = vmatpush3.bf16.msra.mxu1 %v3663_v45 }
 0x1a4   :  { %v569_v58 = vadd.f32 %v564_v56, %v452_v52  ;;  %4709 = vtanh.f32 %v577_v55  ;;  %4337 = vmatprep.subr.bf16.mxu1 %v5026_v0  ;;  %v3604_v52 = vcombine.low %v927_v47, %v928_v48  ;;  %v1941_v55 = vld [vmem:[#allocation16 + $0x1d8] sm:$0xf]  ;;  %v1385_v47 = vld [vmem:[#allocation17 + $0x1cc] sm:$0xf] }
 0x1a5   :  { %v4122_v59 = vpop.f32.mrf.mxu0  ;;  %v1942_v56 = vld [vmem:[#allocation16 + $0x1f8] sm:$0xf]  ;;  %v1386_v48 = vld [vmem:[#allocation17 + $0x1ec] sm:$0xf] }
 0x1a6   :  { %v578_v60 = vadd.f32 %v3575_v50, %v569_v58  ;;  %v1705_v50 = vld [vmem:[#allocation16 + $0x34] sm:$0xf]  ;;  %v3686_v57 = vcombine.low %v1941_v55, %v1942_v56  ;;  %v3603_v58 = vcombine.low %v925_v53, %v926_v54  ;;  %v1162_v59 = vld [vmem:[#allocation17 + $0x1c8] sm:$0xf]  ;;  %v3644_v53 = vcombine.low %v1385_v47, %v1386_v48  ;;  %v1383_v54 = vld [vmem:[#allocation17 + $0x18c] sm:$0xf] }
 0x1a7   :  { %v3662_v51 = vcombine.low %v1704_v49, %v1705_v50  ;;  %v2162_v49 = vld [vmem:[#allocation16 + $0x19c] sm:$0xf]  ;;  %v1384_v56 = vld [vmem:[#allocation17 + $0x1ac] sm:$0xf]  ;;  %v1602_v47 = vld [vmem:[#allocation17 + $0x110] sm:$0xf] }
 0x1a8   :  { %4711 = vtanh.f32 %v578_v60  ;;  %v1163_v60 = vld [vmem:[#allocation17 + $0x1e8] sm:$0xf]  ;;  %v3643_v61 = vcombine.low %v1383_v54, %v1384_v56  ;;  %v1603_v48 = vld [vmem:[#allocation17 + $0x130] sm:$0xf] }
 0x1a9   :  { %4338 = vmatpush3.bf16.msra.mxu1 %v3662_v51  ;;  %v3627_v1 = vcombine.low %v1162_v59, %v1163_v60  ;;  %v2163_v51 = vld [vmem:[#allocation16 + $0x1bc] sm:$0xf]  ;;  %v1599_v54 = vld [vmem:[#allocation17 + $0xb0] sm:$0xf] }
 0x1aa   :  { %4363 = vmatprep.subr.bf16.mxu1 %v5026_v0 }
 0x1ac   :  { %4340 = vmatmul.mubr.bf16.vlgmr.msra.gmra.mxu1 %v5241_v10 }
 0x1ad   :  { %4364 = vmatpush3.bf16.msra.mxu1 %v3686_v57  ;;  %4379 = vmatprep.mubr.msk.bf16.mxu1 %vm5027_vm0, %v5026_v0  ;;  %v2160_v57 = vld [vmem:[#allocation16 + $0x15c] sm:$0xf] }
 0x1ae   :  { %4365 = vmatprep.subr.bf16.mxu1 %v5026_v0 }
 0x1b1   :  { %v4710_v12 = vpop.eup %4709  ;;  %4366 = vmatpush3.bf16.msra.mxu1 %v3685_v63  ;;  %v1382_v63 = vld [vmem:[#allocation17 + $0x16c] sm:$0xf] }
 0x1b2   :  { %4367 = vmatprep.subr.bf16.mxu1 %v5026_v0  ;;  %v3642_v4 = vcombine.low %v1381_v62, %v1382_v63 }
 0x1b5   :  { %v4712_v14 = vpop.eup %4711  ;;  %4368 = vmatpush3.bf16.msra.mxu1 %v3684_v6  ;;  %v1380_v6 = vld [vmem:[#allocation17 + $0x12c] sm:$0xf] }
 0x1b6   :  { %v5293_v17 = vpack.c.bf16 %v4712_v14, %v4710_v12  ;;  %v1936_v12 = vld [vmem:[#allocation16 + $0x138] sm:$0xf]  ;;  %4369 = vmatprep.subr.bf16.mxu1 %v5026_v0  ;;  %v3625_v14 = vcombine.low %v1158_v8, %v1159_v9  ;;  %v2157_v8 = vld [vmem:[#allocation16 + $0xfc] sm:$0xf] }
 0x1b7   :  { %v3683_v13 = vcombine.low %v1935_v11, %v1936_v12  ;;  %v3641_v11 = vcombine.low %v1379_v5, %v1380_v6  ;;  %v1377_v12 = vld [vmem:[#allocation17 + $0xcc] sm:$0xf]  ;;  %v1829_v6 = vld [vmem:[#allocation17 + $0x194] sm:$0xf] }
 0x1b8   :  { %4160 = vmatmul.mubr.bf16.vlgmr.msra.gmra.mxu0 %v5293_v17 }
 0x1b9   :  { %4184 = vmatpush3.bf16.msra.mxu0 %v3610_v15  ;;  %4199 = vmatprep.mubr.msk.bf16.mxu0 %vm5027_vm0, %v5026_v0  ;;  %v1156_v15 = vld [vmem:[#allocation17 + $0x108] sm:$0xf] }
 0x1ba   :  { %4185 = vmatprep.subr.bf16.mxu0 %v5026_v0  ;;  %4370 = vmatpush3.bf16.msra.mxu1 %v3683_v13  ;;  %v3624_v21 = vcombine.low %v1156_v15, %v1157_v16  ;;  %v1378_v13 = vld [vmem:[#allocation17 + $0xec] sm:$0xf]  ;;  %v2155_v15 = vld [vmem:[#allocation16 + $0xbc] sm:$0xf] }
 0x1bb   :  { %4371 = vmatprep.subr.bf16.mxu1 %v5026_v0  ;;  %v3640_v18 = vcombine.low %v1377_v12, %v1378_v13  ;;  %v1828_v12 = vld [vmem:[#allocation17 + $0x174] sm:$0xf] }
 0x1bd   :  { %4186 = vmatpush3.bf16.msra.mxu0 %v3609_v22  ;;  %v1154_v22 = vld [vmem:[#allocation17 + $0xc8] sm:$0xf] }
 0x1be   :  { %4187 = vmatprep.subr.bf16.mxu0 %v5026_v0  ;;  %4372 = vmatpush3.bf16.msra.mxu1 %v3682_v20  ;;  %v3623_v27 = vcombine.low %v1154_v22, %v1155_v23  ;;  %v1376_v20 = vld [vmem:[#allocation17 + $0xac] sm:$0xf]  ;;  %v2153_v22 = vld [vmem:[#allocation16 + $0x7c] sm:$0xf] }
 0x1bf   :  { %4373 = vmatprep.subr.bf16.mxu1 %v5026_v0  ;;  %v3639_v24 = vcombine.low %v1375_v19, %v1376_v20  ;;  %v1824_v19 = vld [vmem:[#allocation17 + $0xf4] sm:$0xf] }
 0x1c1   :  { %4188 = vmatpush3.bf16.msra.mxu0 %v3608_v28  ;;  %v1152_v28 = vld [vmem:[#allocation17 + $0x88] sm:$0xf] }
 0x1c2   :  { %4189 = vmatprep.subr.bf16.mxu0 %v5026_v0  ;;  %4374 = vmatpush3.bf16.msra.mxu1 %v3681_v26  ;;  %v3622_v33 = vcombine.low %v1152_v28, %v1153_v29  ;;  %v1374_v26 = vld [vmem:[#allocation17 + $0x6c] sm:$0xf]  ;;  %v2151_v28 = vld [vmem:[#allocation16 + $0x3c] sm:$0xf] }
 0x1c3   :  { %4375 = vmatprep.subr.bf16.mxu1 %v5026_v0  ;;  %v3638_v30 = vcombine.low %v1373_v25, %v1374_v26  ;;  %v1820_v25 = vld [vmem:[#allocation17 + $0x74] sm:$0xf] }
 0x1c5   :  { %4190 = vmatpush3.bf16.msra.mxu0 %v3607_v34  ;;  %v1150_v34 = vld [vmem:[#allocation17 + $0x48] sm:$0xf] }
 0x1c6   :  { %4191 = vmatprep.subr.bf16.mxu0 %v5026_v0  ;;  %4376 = vmatpush3.bf16.msra.mxu1 %v3680_v32  ;;  %v3621_v39 = vcombine.low %v1150_v34, %v1151_v35  ;;  %v1372_v32 = vld [vmem:[#allocation17 + $0x2c] sm:$0xf]  ;;  %v1608_v35 = vld [vmem:[#allocation17 + $0x1d0] sm:$0xf] }
 0x1c7   :  { %4377 = vmatprep.subr.bf16.mxu1 %v5026_v0 }
 0x1c9   :  { %4192 = vmatpush3.bf16.msra.mxu0 %v3606_v40  ;;  %v1148_v40 = vld [vmem:[#allocation17 + $0x8] sm:$0xf] }
 0x1ca   :  { %4193 = vmatprep.subr.bf16.mxu0 %v5026_v0  ;;  %4378 = vmatpush3.bf16.msra.mxu1 %v3679_v38  ;;  %v3620_v45 = vcombine.low %v1148_v40, %v1149_v41  ;;  %v3661_v38 = vcombine.low %v1608_v35, %v1609_v36  ;;  %v1606_v40 = vld [vmem:[#allocation17 + $0x190] sm:$0xf] }
 0x1cb   :  { %4403 = vmatprep.subr.bf16.mxu1 %v5026_v0  ;;  %v1607_v41 = vld [vmem:[#allocation17 + $0x1b0] sm:$0xf] }
 0x1cd   :  { %4194 = vmatpush3.bf16.msra.mxu0 %v3605_v46  ;;  %v5333_v46 = vpop.f32.mrf.mxu1  ;;  %4380 = vmatmul.mubr.bf16.vlgmr.msra.gmra.mxu1 %v5241_v10 }
 0x1ce   :  { %4195 = vmatprep.subr.bf16.mxu0 %v5026_v0  ;;  %4404 = vmatpush3.bf16.msra.mxu1 %v3703_v44  ;;  %v1605_v44 = vld [vmem:[#allocation17 + $0x170] sm:$0xf] }
 0x1cf   :  { %v4141_v50 = vpop.f32.mrf.mxu1  ;;  %4405 = vmatprep.subr.bf16.mxu1 %v5026_v0  ;;  %4419 = vmatprep.mubr.msk.bf16.mxu1 %vm5027_vm0, %v5026_v0 }
 0x1d0   :  { %v1600_v50 = vld [vmem:[#allocation17 + $0xd0] sm:$0xf] }
 0x1d1   :  { %4196 = vmatpush3.bf16.msra.mxu0 %v3604_v52  ;;  %v3702_v52 = vcombine.low %v2162_v49, %v2163_v51  ;;  %v5340_v55 = vpop.f32.mrf.mxu1  ;;  %v3658_v49 = vcombine.low %v1602_v47, %v1603_v48  ;;  %v1601_v51 = vld [vmem:[#allocation17 + $0xf0] sm:$0xf]  ;;  %v2046_v48 = vld [vmem:[#allocation17 + $0xd8] sm:$0xf] }
 0x1d2   :  { %4197 = vmatprep.subr.bf16.mxu0 %v5026_v0 }
 0x1d3   :  { %4406 = vmatpush3.bf16.msra.mxu1 %v3702_v52  ;;  %v4142_v59 = vpop.f32.mrf.mxu1  ;;  %v3657_v52 = vcombine.low %v1600_v50, %v1601_v51  ;;  %v2044_v51 = vld [vmem:[#allocation17 + $0x98] sm:$0xf] }
 0x1d4   :  { %4407 = vmatprep.subr.bf16.mxu1 %v5026_v0 }
 0x1d5   :  { %4198 = vmatpush3.bf16.msra.mxu0 %v3603_v58  ;;  %v2161_v58 = vld [vmem:[#allocation16 + $0x17c] sm:$0xf]  ;;  %v5360_v34 = vpop.f32.mrf.mxu1 }
 0x1d6   :  { %4223 = vmatprep.subr.bf16.mxu0 %v5026_v0  ;;  %v3701_v60 = vcombine.low %v2160_v57, %v2161_v58  ;;  %v1596_v57 = vld [vmem:[#allocation17 + $0x50] sm:$0xf] }
 0x1d7   :  { %v4181_v37 = vpop.f32.mrf.mxu1  ;;  %v1597_v58 = vld [vmem:[#allocation17 + $0x70] sm:$0xf] }
 0x1d8   :  { %4200 = vmatmul.mubr.bf16.vlgmr.msra.gmra.mxu0 %v5293_v17  ;;  %4408 = vmatpush3.bf16.msra.mxu1 %v3701_v60  ;;  %v3655_v59 = vcombine.low %v1596_v57, %v1597_v58  ;;  %v1594_v60 = vld [vmem:[#allocation17 + $0x10] sm:$0xf]  ;;  %v2052_v37 = vld [vmem:[#allocation17 + $0x198] sm:$0xf] }
 0x1d9   :  { %4224 = vmatpush3.bf16.msra.mxu0 %v3627_v1  ;;  %4239 = vmatprep.mubr.msk.bf16.mxu0 %vm5027_vm0, %v5026_v0  ;;  %v2158_v1 = vld [vmem:[#allocation16 + $0x11c] sm:$0xf]  ;;  %v2040_v58 = vld [vmem:[#allocation17 + $0x18] sm:$0xf] }
 0x1da   :  { %4225 = vmatprep.subr.bf16.mxu0 %v5026_v0  ;;  %4409 = vmatprep.subr.bf16.mxu1 %v5026_v0  ;;  %v3700_v3 = vcombine.low %v2158_v1, %v2159_v2  ;;  %v1831_v1 = vld [vmem:[#allocation17 + $0x1d4] sm:$0xf] }
 0x1db   :  { %v1832_v2 = vld [vmem:[#allocation17 + $0x1f4] sm:$0xf] }
 0x1dc   :  { %4410 = vmatpush3.bf16.msra.mxu1 %v3700_v3 }
 0x1dd   :  { %4226 = vmatpush3.bf16.msra.mxu0 %v3626_v7  ;;  %v2156_v7 = vld [vmem:[#allocation16 + $0xdc] sm:$0xf]  ;;  %4411 = vmatprep.subr.bf16.mxu1 %v5026_v0 }
 0x1de   :  { %4227 = vmatprep.subr.bf16.mxu0 %v5026_v0  ;;  %v3699_v9 = vcombine.low %v2156_v7, %v2157_v8  ;;  %v1830_v7 = vld [vmem:[#allocation17 + $0x1b4] sm:$0xf] }
 0x1e0   :  { %4412 = vmatpush3.bf16.msra.mxu1 %v3699_v9  ;;  %v3677_v9 = vcombine.low %v1829_v6, %v1830_v7 }
 0x1e1   :  { %4228 = vmatpush3.bf16.msra.mxu0 %v3625_v14  ;;  %v2154_v14 = vld [vmem:[#allocation16 + $0x9c] sm:$0xf]  ;;  %4413 = vmatprep.subr.bf16.mxu1 %v5026_v0 }
 0x1e2   :  { %4229 = vmatprep.subr.bf16.mxu0 %v5026_v0  ;;  %v3698_v16 = vcombine.low %v2154_v14, %v2155_v15  ;;  %v1825_v14 = vld [vmem:[#allocation17 + $0x114] sm:$0xf] }
 0x1e3   :  { %v1826_v15 = vld [vmem:[#allocation17 + $0x134] sm:$0xf] }
 0x1e4   :  { %4414 = vmatpush3.bf16.msra.mxu1 %v3698_v16  ;;  %v3675_v16 = vcombine.low %v1825_v14, %v1826_v15  ;;  %v2273_v15 = vld [vmem:[#allocation17 + $0x15c] sm:$0xf] }
 0x1e5   :  { %4230 = vmatpush3.bf16.msra.mxu0 %v3624_v21  ;;  %v2152_v21 = vld [vmem:[#allocation16 + $0x5c] sm:$0xf]  ;;  %4415 = vmatprep.subr.bf16.mxu1 %v5026_v0 }
 0x1e6   :  { %4231 = vmatprep.subr.bf16.mxu0 %v5026_v0  ;;  %v3697_v23 = vcombine.low %v2152_v21, %v2153_v22  ;;  %v1821_v21 = vld [vmem:[#allocation17 + $0x94] sm:$0xf] }
 0x1e7   :  { %v1822_v22 = vld [vmem:[#allocation17 + $0xb4] sm:$0xf] }
 0x1e8   :  { %4416 = vmatpush3.bf16.msra.mxu1 %v3697_v23  ;;  %v3673_v23 = vcombine.low %v1821_v21, %v1822_v22 }
 0x1e9   :  { %4232 = vmatpush3.bf16.msra.mxu0 %v3623_v27  ;;  %v2150_v27 = vld [vmem:[#allocation16 + $0x1c] sm:$0xf]  ;;  %4417 = vmatprep.subr.bf16.mxu1 %v5026_v0 }
 0x1ea   :  { %4233 = vmatprep.subr.bf16.mxu0 %v5026_v0  ;;  %v3696_v29 = vcombine.low %v2150_v27, %v2151_v28  ;;  %v1817_v27 = vld [vmem:[#allocation17 + $0x14] sm:$0xf] }
 0x1eb   :  { %v1818_v28 = vld [vmem:[#allocation17 + $0x34] sm:$0xf] }
 0x1ec   :  { %4418 = vmatpush3.bf16.msra.mxu1 %v3696_v29  ;;  %v3671_v29 = vcombine.low %v1817_v27, %v1818_v28  ;;  %v2270_v27 = vld [vmem:[#allocation17 + $0xfc] sm:$0xf] }
 0x1ed   :  { %4234 = vmatpush3.bf16.msra.mxu0 %v3622_v33  ;;  %4443 = vmatprep.subr.bf16.mxu1 %v5026_v0  ;;  %v3637_v33 = vcombine.low %v1371_v31, %v1372_v32  ;;  %v2054_v31 = vld [vmem:[#allocation17 + $0x1d8] sm:$0xf] }
 0x1ee   :  { %4235 = vmatprep.subr.bf16.mxu0 %v5026_v0  ;;  %v2055_v32 = vld [vmem:[#allocation17 + $0x1f8] sm:$0xf] }
 0x1ef   :  { %4420 = vmatmul.mubr.bf16.vlgmr.msra.gmra.mxu1 %v5241_v10  ;;  %v3660_v10 = vcombine.low %v1606_v40, %v1607_v41  ;;  %v3695_v35 = vcombine.low %v2054_v31, %v2055_v32  ;;  %v2265_v32 = vld [vmem:[#allocation17 + $0x5c] sm:$0xf] }
 0x1f0   :  { %4459 = vmatprep.mubr.msk.bf16.mxu1 %vm5027_vm0, %v5026_v0 }
 0x1f1   :  { %4236 = vmatpush3.bf16.msra.mxu0 %v3621_v39  ;;  %v5365_v39 = vpop.f32.mrf.mxu1 }
 0x1f2   :  { %4237 = vmatprep.subr.bf16.mxu0 %v5026_v0 }
 0x1f3   :  { %v4182_v42 = vpop.f32.mrf.mxu1 }
 0x1f4   :  { %v2050_v42 = vld [vmem:[#allocation17 + $0x158] sm:$0xf] }
 0x1f5   :  { %4238 = vmatpush3.bf16.msra.mxu0 %v3620_v45  ;;  %v3659_v45 = vcombine.low %v1604_v43, %v1605_v44  ;;  %v5377_v63 = vpop.f32.mrf.mxu1  ;;  %v2048_v44 = vld [vmem:[#allocation17 + $0x118] sm:$0xf] }
 0x1f6   :  { %4263 = vmatprep.subr.bf16.mxu0 %v5026_v0 }
 0x1f7   :  { %v4221_v3 = vpop.f32.mrf.mxu1 }
 0x1f8   :  { %4240 = vmatmul.mubr.bf16.vlgmr.msra.gmra.mxu0 %v5293_v17 }
 0x1f9   :  { %4264 = vmatpush3.bf16.msra.mxu0 %v3644_v53  ;;  %4279 = vmatprep.mubr.msk.bf16.mxu0 %vm5027_vm0, %v5026_v0  ;;  %v1598_v53 = vld [vmem:[#allocation17 + $0x90] sm:$0xf]  ;;  %v5380_v5 = vpop.f32.mrf.mxu1 }
 0x1fa   :  { %4265 = vmatprep.subr.bf16.mxu0 %v5026_v0  ;;  %v3656_v56 = vcombine.low %v1598_v53, %v1599_v54  ;;  %v2042_v54 = vld [vmem:[#allocation17 + $0x58] sm:$0xf] }
 0x1fb   :  { %v4222_v8 = vpop.f32.mrf.mxu1 }
 0x1fc   :  { %v2275_v8 = vld [vmem:[#allocation17 + $0x19c] sm:$0xf] }
 0x1fd   :  { %4266 = vmatpush3.bf16.msra.mxu0 %v3643_v61  ;;  %v1595_v61 = vld [vmem:[#allocation17 + $0x30] sm:$0xf] }
 0x1fe   :  { %4267 = vmatprep.subr.bf16.mxu0 %v5026_v0  ;;  %v3654_v62 = vcombine.low %v1594_v60, %v1595_v61 }
 0x201   :  { %4268 = vmatpush3.bf16.msra.mxu0 %v3642_v4  ;;  %v3678_v4 = vcombine.low %v1831_v1, %v1832_v2  ;;  %v2277_v1 = vld [vmem:[#allocation17 + $0x1dc] sm:$0xf] }
 0x202   :  { %4269 = vmatprep.subr.bf16.mxu0 %v5026_v0  ;;  %v2278_v2 = vld [vmem:[#allocation17 + $0x1fc] sm:$0xf] }
 0x203   :  { %v3712_v6 = vcombine.low %v2277_v1, %v2278_v2 }
 0x205   :  { %4270 = vmatpush3.bf16.msra.mxu0 %v3641_v11  ;;  %v1827_v11 = vld [vmem:[#allocation17 + $0x154] sm:$0xf] }
 0x206   :  { %4271 = vmatprep.subr.bf16.mxu0 %v5026_v0  ;;  %v3676_v13 = vcombine.low %v1827_v11, %v1828_v12 }
 0x209   :  { %4272 = vmatpush3.bf16.msra.mxu0 %v3640_v18  ;;  %v1823_v18 = vld [vmem:[#allocation17 + $0xd4] sm:$0xf] }
 0x20a   :  { %4273 = vmatprep.subr.bf16.mxu0 %v5026_v0  ;;  %v3674_v20 = vcombine.low %v1823_v18, %v1824_v19 }
 0x20d   :  { %4274 = vmatpush3.bf16.msra.mxu0 %v3639_v24  ;;  %v1819_v24 = vld [vmem:[#allocation17 + $0x54] sm:$0xf] }
 0x20e   :  { %4275 = vmatprep.subr.bf16.mxu0 %v5026_v0  ;;  %v3672_v26 = vcombine.low %v1819_v24, %v1820_v25  ;;  %v2272_v24 = vld [vmem:[#allocation17 + $0x13c] sm:$0xf] }
 0x211   :  { %4276 = vmatpush3.bf16.msra.mxu0 %v3638_v30  ;;  %v5392_v30 = vpop.f32.mrf.mxu1 }
 0x212   :  { %4277 = vmatprep.subr.bf16.mxu0 %v5026_v0 }
 0x215   :  { %4278 = vmatpush3.bf16.msra.mxu0 %v3637_v33  ;;  %v4261_v33 = vpop.f32.mrf.mxu1 }
 0x216   :  { %4303 = vmatprep.subr.bf16.mxu0 %v5026_v0  ;;  %v2266_v33 = vld [vmem:[#allocation17 + $0x7c] sm:$0xf] }
 0x217   :  { %v5395_v36 = vpop.f32.mrf.mxu1 }
 0x218   :  { %4280 = vmatmul.mubr.bf16.vlgmr.msra.gmra.mxu0 %v5293_v17 }
 0x219   :  { %4304 = vmatpush3.bf16.msra.mxu0 %v3661_v38  ;;  %4319 = vmatprep.mubr.msk.bf16.mxu0 %vm5027_vm0, %v5026_v0  ;;  %v2053_v38 = vld [vmem:[#allocation17 + $0x1b8] sm:$0xf]  ;;  %v4262_v40 = vpop.f32.mrf.mxu1 }
 0x21a   :  { %4305 = vmatprep.subr.bf16.mxu0 %v5026_v0  ;;  %v3694_v41 = vcombine.low %v2052_v37, %v2053_v38  ;;  %v2263_v37 = vld [vmem:[#allocation17 + $0x1c] sm:$0xf] }
 0x21b   :  { %v2264_v38 = vld [vmem:[#allocation17 + $0x3c] sm:$0xf] }
 0x21c   :  { %v3705_v40 = vcombine.low %v2263_v37, %v2264_v38  ;;  %v2494_v37 = vld [vmem:[#allocation19 + $0xc4] sm:$0xf] }
 0x21d   :  { %4306 = vmatpush3.bf16.msra.mxu0 %v3660_v10  ;;  %v2051_v10 = vld [vmem:[#allocation17 + $0x178] sm:$0xf]  ;;  %v2495_v38 = vld [vmem:[#allocation19 + $0xe4] sm:$0xf] }
 0x21e   :  { %4307 = vmatprep.subr.bf16.mxu0 %v5026_v0  ;;  %v3693_v43 = vcombine.low %v2050_v42, %v2051_v10  ;;  %v3602_v42 = vld [vmem:[%s5636_s10 + $0x1] ss:$0 sm:$0xff] }
 0x221   :  { %4308 = vmatpush3.bf16.msra.mxu0 %v3659_v45  ;;  %v2049_v45 = vld [vmem:[#allocation17 + $0x138] sm:$0xf]  ;;  %v5407_v61 = vpop.f32.mrf.mxu1 }
 0x222   :  { %4309 = vmatprep.subr.bf16.mxu0 %v5026_v0  ;;  %v3692_v47 = vcombine.low %v2048_v44, %v2049_v45 }
 0x223   :  { %v4301_v3 = vpop.f32.mrf.mxu1 }
 0x225   :  { %4310 = vmatpush3.bf16.msra.mxu0 %v3658_v49  ;;  %v2047_v49 = vld [vmem:[#allocation17 + $0xf8] sm:$0xf]  ;;  %v5414_v7 = vpop.f32.mrf.mxu1 }
 0x226   :  { %4311 = vmatprep.subr.bf16.mxu0 %v5026_v0  ;;  %v3691_v50 = vcombine.low %v2046_v48, %v2047_v49 }
 0x227   :  { %v4302_v11 = vpop.f32.mrf.mxu1 }
 0x228   :  { %v2388_v11 = vld [vmem:[#allocation19 + $0x1c0] sm:$0xf] }
 0x229   :  { %4312 = vmatpush3.bf16.msra.mxu0 %v3657_v52  ;;  %v2045_v52 = vld [vmem:[#allocation17 + $0xb8] sm:$0xf] }
 0x22a   :  { %4313 = vmatprep.subr.bf16.mxu0 %v5026_v0  ;;  %v3690_v53 = vcombine.low %v2044_v51, %v2045_v52 }
 0x22d   :  { %4314 = vmatpush3.bf16.msra.mxu0 %v3656_v56  ;;  %v2043_v56 = vld [vmem:[#allocation17 + $0x78] sm:$0xf] }
 0x22e   :  { %4315 = vmatprep.subr.bf16.mxu0 %v5026_v0  ;;  %v3689_v57 = vcombine.low %v2042_v54, %v2043_v56 }
 0x231   :  { %4316 = vmatpush3.bf16.msra.mxu0 %v3655_v59  ;;  %v2041_v59 = vld [vmem:[#allocation17 + $0x38] sm:$0xf] }
 0x232   :  { %4317 = vmatprep.subr.bf16.mxu0 %v5026_v0  ;;  %v3688_v60 = vcombine.low %v2040_v58, %v2041_v59 }
 0x235   :  { %4318 = vmatpush3.bf16.msra.mxu0 %v3654_v62  ;;  %v3585_v62 = vld [vmem:[%s5636_s10] ss:$0 sm:$0xff] }
 0x236   :  { %4343 = vmatprep.subr.bf16.mxu0 %v5026_v0  ;;  %v703_v18 = vadd.f32 %v3585_v62, %v5340_v55  ;;  %v2267_v55 = vld [vmem:[#allocation17 + $0x9c] sm:$0xf] }
 0x238   :  { %4320 = vmatmul.mubr.bf16.vlgmr.msra.gmra.mxu0 %v5293_v17 }
 0x239   :  { %4344 = vmatpush3.bf16.msra.mxu0 %v3678_v4  ;;  %4359 = vmatprep.mubr.msk.bf16.mxu0 %vm5027_vm0, %v5026_v0  ;;  %v702_v4 = vadd.f32 %v3585_v62, %v5333_v46 }
 0x23a   :  { %4345 = vmatprep.subr.bf16.mxu0 %v5026_v0 }
 0x23d   :  { %4346 = vmatpush3.bf16.msra.mxu0 %v3677_v9  ;;  %v2276_v9 = vld [vmem:[#allocation17 + $0x1bc] sm:$0xf] }
 0x23e   :  { %4347 = vmatprep.subr.bf16.mxu0 %v5026_v0  ;;  %v3711_v14 = vcombine.low %v2275_v8, %v2276_v9 }
 0x241   :  { %4348 = vmatpush3.bf16.msra.mxu0 %v3676_v13 }
 0x242   :  { %4349 = vmatprep.subr.bf16.mxu0 %v5026_v0 }
 0x245   :  { %4350 = vmatpush3.bf16.msra.mxu0 %v3675_v16  ;;  %v2274_v16 = vld [vmem:[#allocation17 + $0x17c] sm:$0xf] }
 0x246   :  { %4351 = vmatprep.subr.bf16.mxu0 %v5026_v0  ;;  %v3710_v21 = vcombine.low %v2273_v15, %v2274_v16  ;;  %v2387_v15 = vld [vmem:[#allocation19 + $0x1a0] sm:$0xf] }
 0x249   :  { %4352 = vmatpush3.bf16.msra.mxu0 %v3674_v20 }
 0x24a   :  { %4353 = vmatprep.subr.bf16.mxu0 %v5026_v0 }
 0x24d   :  { %4354 = vmatpush3.bf16.msra.mxu0 %v3673_v23  ;;  %v2271_v23 = vld [vmem:[#allocation17 + $0x11c] sm:$0xf] }
 0x24e   :  { %4355 = vmatprep.subr.bf16.mxu0 %v5026_v0  ;;  %v3709_v25 = vcombine.low %v2271_v23, %v2272_v24  ;;  %v2498_v23 = vld [vmem:[#allocation19 + $0x144] sm:$0xf] }
 0x24f   :  { %v2499_v24 = vld [vmem:[#allocation19 + $0x164] sm:$0xf] }
 0x251   :  { %4356 = vmatpush3.bf16.msra.mxu0 %v3672_v26  ;;  %v2269_v26 = vld [vmem:[#allocation17 + $0xdc] sm:$0xf] }
 0x252   :  { %4357 = vmatprep.subr.bf16.mxu0 %v5026_v0  ;;  %v3708_v28 = vcombine.low %v2269_v26, %v2270_v27  ;;  %v3727_v26 = vcombine.low %v2498_v23, %v2499_v24  ;;  %v2382_v27 = vld [vmem:[#allocation19 + $0x100] sm:$0xf] }
 0x255   :  { %4358 = vmatpush3.bf16.msra.mxu0 %v3671_v29  ;;  %v2268_v29 = vld [vmem:[#allocation17 + $0xbc] sm:$0xf] }
 0x256   :  { %4383 = vmatprep.subr.bf16.mxu0 %v5026_v0  ;;  %v3707_v31 = vcombine.low %v2267_v55, %v2268_v29  ;;  %v2496_v55 = vld [vmem:[#allocation19 + $0x104] sm:$0xf] }
 0x257   :  { %v2497_v29 = vld [vmem:[#allocation19 + $0x124] sm:$0xf] }
 0x258   :  { %4360 = vmatmul.mubr.bf16.vlgmr.msra.gmra.mxu0 %v5293_v17 }
 0x259   :  { %4384 = vmatpush3.bf16.msra.mxu0 %v3695_v35  ;;  %4399 = vmatprep.mubr.msk.bf16.mxu0 %vm5027_vm0, %v5026_v0  ;;  %v3706_v35 = vcombine.low %v2265_v32, %v2266_v33  ;;  %v3726_v32 = vcombine.low %v2496_v55, %v2497_v29  ;;  %v2380_v33 = vld [vmem:[#allocation19 + $0xc0] sm:$0xf] }
 0x25a   :  { %4385 = vmatprep.subr.bf16.mxu0 %v5026_v0 }
 0x25d   :  { %4386 = vmatpush3.bf16.msra.mxu0 %v3694_v41 }
 0x25e   :  { %4387 = vmatprep.subr.bf16.mxu0 %v5026_v0 }
 0x261   :  { %4388 = vmatpush3.bf16.msra.mxu0 %v3693_v43  ;;  %v923_v43 = vadd.f32 %v3602_v42, %v5360_v34 }
 0x262   :  { %4389 = vmatprep.subr.bf16.mxu0 %v5026_v0 }
 0x265   :  { %4390 = vmatpush3.bf16.msra.mxu0 %v3692_v47 }
 0x266   :  { %4391 = vmatprep.subr.bf16.mxu0 %v5026_v0 }
 0x269   :  { %4392 = vmatpush3.bf16.msra.mxu0 %v3691_v50  ;;  %v924_v50 = vadd.f32 %v3602_v42, %v5365_v39  ;;  %v3725_v42 = vcombine.low %v2494_v37, %v2495_v38  ;;  %v3687_v37 = vld [vmem:[%s5636_s10 + $0x6] ss:$0 sm:$0xff] }
 0x26a   :  { %4393 = vmatprep.subr.bf16.mxu0 %v5026_v0 }
 0x26c   :  { %v5431_v41 = vpop.f32.mrf.mxu1 }
 0x26d   :  { %4394 = vmatpush3.bf16.msra.mxu0 %v3690_v53 }
 0x26e   :  { %4395 = vmatprep.subr.bf16.mxu0 %v5026_v0  ;;  %v4341_v10 = vpop.f32.mrf.mxu1 }
 0x26f   :  { %v2378_v10 = vld [vmem:[#allocation19 + $0x80] sm:$0xf] }
 0x270   :  { %v5438_v44 = vpop.f32.mrf.mxu1 }
 0x271   :  { %4396 = vmatpush3.bf16.msra.mxu0 %v3689_v57 }
 0x272   :  { %4397 = vmatprep.subr.bf16.mxu0 %v5026_v0  ;;  %v4342_v45 = vpop.f32.mrf.mxu1 }
 0x273   :  { %v2492_v45 = vld [vmem:[#allocation19 + $0x84] sm:$0xf] }
 0x275   :  { %4398 = vmatpush3.bf16.msra.mxu0 %v3688_v60 }
 0x276   :  { %4423 = vmatprep.subr.bf16.mxu0 %v5026_v0 }
 0x278   :  { %4400 = vmatmul.mubr.bf16.vlgmr.msra.gmra.mxu0 %v5293_v17  ;;  %v802_v12 = vpop.f32.mrf.mxu0 }
 0x279   :  { %v5418_v13 = vadd.f32 %v802_v12, %v702_v4  ;;  %4424 = vmatpush3.bf16.msra.mxu0 %v3712_v6  ;;  %4439 = vmatprep.mubr.msk.bf16.mxu0 %vm5027_vm0, %v5026_v0  ;;  %v2389_v12 = vld [vmem:[#allocation19 + $0x1e0] sm:$0xf] }
 0x27a   :  { %v4161_v46 = vpop.f32.mrf.mxu0  ;;  %4425 = vmatprep.subr.bf16.mxu0 %v5026_v0 }
 0x27b   :  { %v2386_v46 = vld [vmem:[#allocation19 + $0x180] sm:$0xf] }
 0x27c   :  { %v805_v19 = vpop.f32.mrf.mxu0 }
 0x27d   :  { %v5424_v20 = vadd.f32 %v805_v19, %v703_v18  ;;  %4426 = vmatpush3.bf16.msra.mxu0 %v3711_v14  ;;  %v3720_v14 = vcombine.low %v2388_v11, %v2389_v12  ;;  %v2500_v18 = vld [vmem:[#allocation19 + $0x184] sm:$0xf]  ;;  %v2374_v11 = vld [vmem:[#allocation19] sm:$0xf] }
 0x27e   :  { %v4162_v22 = vpop.f32.mrf.mxu0  ;;  %4427 = vmatprep.subr.bf16.mxu0 %v5026_v0  ;;  %v2501_v19 = vld [vmem:[#allocation19 + $0x1a4] sm:$0xf]  ;;  %v2375_v12 = vld [vmem:[#allocation19 + $0x20] sm:$0xf] }
 0x27f   :  { %4444 = vmatpush3.bf16.msra.mxu1 %v3720_v14  ;;  %v2385_v22 = vld [vmem:[#allocation19 + $0x160] sm:$0xf] }
 0x280   :  { %4445 = vmatprep.subr.bf16.mxu1 %v5026_v0 }
 0x281   :  { %4428 = vmatpush3.bf16.msra.mxu0 %v3710_v21  ;;  %v2384_v21 = vld [vmem:[#allocation19 + $0x140] sm:$0xf] }
 0x282   :  { %4429 = vmatprep.subr.bf16.mxu0 %v5026_v0 }
 0x285   :  { %4430 = vmatpush3.bf16.msra.mxu0 %v3709_v25  ;;  %v3718_v25 = vcombine.low %v2384_v21, %v2385_v22 }
 0x286   :  { %4431 = vmatprep.subr.bf16.mxu0 %v5026_v0 }
 0x289   :  { %4432 = vmatpush3.bf16.msra.mxu0 %v3708_v28  ;;  %v2383_v28 = vld [vmem:[#allocation19 + $0x120] sm:$0xf] }
 0x28a   :  { %4433 = vmatprep.subr.bf16.mxu0 %v5026_v0 }
 0x28d   :  { %4434 = vmatpush3.bf16.msra.mxu0 %v3707_v31  ;;  %v5447_v56 = vpop.f32.mrf.mxu1  ;;  %v3717_v31 = vcombine.low %v2382_v27, %v2383_v28 }
 0x28e   :  { %4435 = vmatprep.subr.bf16.mxu0 %v5026_v0  ;;  %v2038_v38 = vadd.f32 %v3687_v37, %v5447_v56 }
 0x28f   :  { %v4381_v57 = vpop.f32.mrf.mxu1 }
 0x290   :  { %v2376_v57 = vld [vmem:[#allocation19 + $0x40] sm:$0xf] }
 0x291   :  { %4436 = vmatpush3.bf16.msra.mxu0 %v3706_v35  ;;  %v5453_v59 = vpop.f32.mrf.mxu1  ;;  %v2381_v35 = vld [vmem:[#allocation19 + $0xe0] sm:$0xf] }
 0x292   :  { %4437 = vmatprep.subr.bf16.mxu0 %v5026_v0 }
 0x293   :  { %v4382_v60 = vpop.f32.mrf.mxu1 }
 0x294   :  { %v2490_v60 = vld [vmem:[#allocation19 + $0x44] sm:$0xf] }
 0x295   :  { %4438 = vmatpush3.bf16.msra.mxu0 %v3705_v40  ;;  %v3716_v40 = vcombine.low %v2380_v33, %v2381_v35 }
 0x296   :  { %4463 = vmatprep.subr.bf16.mxu0 %v5026_v0 }
 0x298   :  { %v1023_v47 = vpop.f32.mrf.mxu0  ;;  %4440 = vmatmul.mubr.bf16.vlgmr.msra.gmra.mxu0 %v5293_v17  ;;  %v3619_v17 = vld [vmem:[%s5636_s10 + $0x2] ss:$0 sm:$0xff] }
 0x299   :  { %v1030_v48 = vadd.f32 %v1023_v47, %v923_v43  ;;  %4479 = vmatprep.mubr.msk.bf16.mxu0 %vm5027_vm0, %v5026_v0  ;;  %v1146_v58 = vadd.f32 %v3619_v17, %v5377_v63  ;;  %v1147_v2 = vadd.f32 %v3619_v17, %v5380_v5  ;;  %v2503_v63 = vld [vmem:[#allocation19 + $0x1e4] sm:$0xf]  ;;  %v3728_v5 = vcombine.low %v2500_v18, %v2501_v19  ;;  %v2379_v43 = vld [vmem:[#allocation19 + $0xa0] sm:$0xf] }
 0x29a   :  { %v4201_v49 = vpop.f32.mrf.mxu0  ;;  %v2493_v47 = vld [vmem:[#allocation19 + $0xa4] sm:$0xf] }
 0x29b   :  { %v1032_v51 = vmax.f32 %v5418_v13, %v1030_v48  ;;  %v2502_v13 = vld [vmem:[#allocation19 + $0x1c4] sm:$0xf]  ;;  %v3636_v49 = vld [vmem:[%s5636_s10 + $0x3] ss:$0 sm:$0xff] }
 0x29c   :  { %v1026_v52 = vpop.f32.mrf.mxu0  ;;  %v3729_v16 = vcombine.low %v2502_v13, %v2503_v63  ;;  %v2488_v13 = vld [vmem:[#allocation19 + $0x4] sm:$0xf]  ;;  %v3713_v63 = vcombine.low %v2374_v11, %v2375_v12  ;;  %v2732_v11 = vld [vmem:[#allocation19 + $0x18c] sm:$0xf] }
 0x29d   :  { %v1031_v34 = vadd.f32 %v1026_v52, %v924_v50  ;;  %v3715_v50 = vcombine.low %v2378_v10, %v2379_v43  ;;  %v3724_v52 = vcombine.low %v2492_v45, %v2493_v47  ;;  %v2733_v12 = vld [vmem:[#allocation19 + $0x1ac] sm:$0xf] }
 0x29e   :  { %v4202_v53 = vpop.f32.mrf.mxu0  ;;  %4464 = vmatpush3.bf16.msra.mxu0 %v3729_v16 }
 0x29f   :  { %v1033_v54 = vmax.f32 %v5424_v20, %v1031_v34  ;;  %v3719_v20 = vcombine.low %v2386_v46, %v2387_v15  ;;  %4465 = vmatprep.subr.bf16.mxu0 %v5026_v0  ;;  %v1369_v34 = vadd.f32 %v3636_v49, %v5392_v30  ;;  %v1370_v30 = vadd.f32 %v3636_v49, %v5395_v36  ;;  %v2489_v46 = vld [vmem:[#allocation19 + $0x24] sm:$0xf]  ;;  %v3653_v36 = vld [vmem:[%s5636_s10 + $0x4] ss:$0 sm:$0xff] }
 0x2a0   :  { %v3722_v16 = vcombine.low %v2488_v13, %v2489_v46  ;;  %v1593_v21 = vadd.f32 %v3653_v36, %v5414_v7  ;;  %v3746_v13 = vcombine.low %v2732_v11, %v2733_v12  ;;  %v2730_v46 = vld [vmem:[#allocation19 + $0x14c] sm:$0xf] }
 0x2a1   :  { %4446 = vmatpush3.bf16.msra.mxu1 %v3719_v20 }
 0x2a2   :  { %4466 = vmatpush3.bf16.msra.mxu0 %v3728_v5  ;;  %4447 = vmatprep.subr.bf16.mxu1 %v5026_v0 }
 0x2a3   :  { %4467 = vmatprep.subr.bf16.mxu0 %v5026_v0 }
 0x2a5   :  { %4448 = vmatpush3.bf16.msra.mxu1 %v3718_v25 }
 0x2a6   :  { %4468 = vmatpush3.bf16.msra.mxu0 %v3727_v26  ;;  %4449 = vmatprep.subr.bf16.mxu1 %v5026_v0  ;;  %v3670_v26 = vld [vmem:[%s5636_s10 + $0x5] ss:$0 sm:$0xff] }
 0x2a7   :  { %4469 = vmatprep.subr.bf16.mxu0 %v5026_v0  ;;  %v1815_v27 = vadd.f32 %v3670_v26, %v5431_v41  ;;  %v2039_v41 = vadd.f32 %v3687_v37, %v5453_v59 }
 0x2a9   :  { %4450 = vmatpush3.bf16.msra.mxu1 %v3717_v31 }
 0x2aa   :  { %4470 = vmatpush3.bf16.msra.mxu0 %v3726_v32  ;;  %4451 = vmatprep.subr.bf16.mxu1 %v5026_v0 }
 0x2ab   :  { %4471 = vmatprep.subr.bf16.mxu0 %v5026_v0 }
 0x2ad   :  { %4452 = vmatpush3.bf16.msra.mxu1 %v3716_v40 }
 0x2ae   :  { %4472 = vmatpush3.bf16.msra.mxu0 %v3725_v42  ;;  %4453 = vmatprep.subr.bf16.mxu1 %v5026_v0 }
 0x2af   :  { %v5468_v48 = vpop.f32.mrf.mxu1  ;;  %4473 = vmatprep.subr.bf16.mxu0 %v5026_v0 }
 0x2b1   :  { %4454 = vmatpush3.bf16.msra.mxu1 %v3715_v50  ;;  %v3704_v50 = vld [vmem:[%s5636_s10 + $0x7] ss:$0 sm:$0xff] }
 0x2b2   :  { %4474 = vmatpush3.bf16.msra.mxu0 %v3724_v52  ;;  %4455 = vmatprep.subr.bf16.mxu1 %v5026_v0 }
 0x2b3   :  { %4475 = vmatprep.subr.bf16.mxu0 %v5026_v0 }
 0x2b8   :  { %v1246_v39 = vpop.f32.mrf.mxu0 }
 0x2b9   :  { %v1253_v62 = vadd.f32 %v1246_v39, %v1146_v58  ;;  %v2377_v58 = vld [vmem:[#allocation19 + $0x60] sm:$0xf] }
 0x2ba   :  { %v4241_v1 = vpop.f32.mrf.mxu0 }
 0x2bb   :  { %v5456_v3 = vmax.f32 %v1032_v51, %v1253_v62  ;;  %v4421_v51 = vpop.f32.mrf.mxu1  ;;  %v3714_v62 = vcombine.low %v2376_v57, %v2377_v58  ;;  %v2491_v1 = vld [vmem:[#allocation19 + $0x64] sm:$0xf]  ;;  %v2618_v58 = vld [vmem:[#allocation19 + $0x1c8] sm:$0xf] }
 0x2bc   :  { %v1249_v4 = vpop.f32.mrf.mxu0  ;;  %v2261_v51 = vadd.f32 %v3704_v50, %v5468_v48  ;;  %v2617_v48 = vld [vmem:[#allocation19 + $0x1a8] sm:$0xf] }
 0x2bd   :  { %v1254_v6 = vadd.f32 %v1249_v4, %v1147_v2  ;;  %v5476_v53 = vpop.f32.mrf.mxu1  ;;  %v3723_v4 = vcombine.low %v2490_v60, %v2491_v1  ;;  %4456 = vmatpush3.bf16.msra.mxu1 %v3714_v62  ;;  %v2619_v60 = vld [vmem:[#allocation19 + $0x1e8] sm:$0xf]  ;;  %v2735_v62 = vld [vmem:[#allocation19 + $0x1ec] sm:$0xf] }
 0x2be   :  { %v4242_v8 = vpop.f32.mrf.mxu0  ;;  %4457 = vmatprep.subr.bf16.mxu1 %v5026_v0  ;;  %v2262_v56 = vadd.f32 %v3704_v50, %v5476_v53  ;;  %v2967_v50 = vld [vmem:[#allocation19 + $0x1f4] sm:$0xf] }
 0x2bf   :  { %v5458_v9 = vmax.f32 %v1033_v54, %v1254_v6  ;;  %v4422_v54 = vpop.f32.mrf.mxu1  ;;  %4476 = vmatpush3.bf16.msra.mxu0 %v3723_v4  ;;  %v3738_v4 = vcombine.low %v2618_v58, %v2619_v60  ;;  %v2847_v60 = vld [vmem:[#allocation19 + $0x170] sm:$0xf] }
 0x2c0   :  { %4477 = vmatprep.subr.bf16.mxu0 %v5026_v0 }
 0x2c1   :  { %4458 = vmatpush3.bf16.msra.mxu1 %v3713_v63  ;;  %v2615_v63 = vld [vmem:[#allocation19 + $0x168] sm:$0xf] }
 0x2c2   :  { %4483 = vmatprep.subr.bf16.mxu1 %v5026_v0 }
 0x2c3   :  { %4478 = vmatpush3.bf16.msra.mxu0 %v3722_v16 }
 0x2c4   :  { %4503 = vmatprep.subr.bf16.mxu0 %v5026_v0 }
 0x2d8   :  { %v1469_v17 = vpop.f32.mrf.mxu0 }
 0x2d9   :  { %v1476_v39 = vadd.f32 %v1469_v17, %v1369_v34 }
 0x2da   :  { %v4281_v2 = vpop.f32.mrf.mxu0 }
 0x2db   :  { %v1478_v6 = vmax.f32 %v5456_v3, %v1476_v39  ;;  %v1592_v3 = vadd.f32 %v3653_v36, %v5407_v61  ;;  %v1816_v61 = vadd.f32 %v3670_v26, %v5438_v44  ;;  %v2734_v39 = vld [vmem:[#allocation19 + $0x1cc] sm:$0xf]  ;;  %v2612_v36 = vld [vmem:[#allocation19 + $0x108] sm:$0xf] }
 0x2dc   :  { %v1472_v8 = vpop.f32.mrf.mxu0 }
 0x2dd   :  { %v1477_v14 = vadd.f32 %v1472_v8, %v1370_v30  ;;  %v3747_v30 = vcombine.low %v2734_v39, %v2735_v62  ;;  %v2962_v39 = vld [vmem:[#allocation19 + $0x154] sm:$0xf] }
 0x2de   :  { %v4282_v15 = vpop.f32.mrf.mxu0  ;;  %v2963_v62 = vld [vmem:[#allocation19 + $0x174] sm:$0xf] }
 0x2df   :  { %v1479_v18 = vmax.f32 %v5458_v9, %v1477_v14  ;;  %v2614_v14 = vld [vmem:[#allocation19 + $0x148] sm:$0xf]  ;;  %v2731_v15 = vld [vmem:[#allocation19 + $0x16c] sm:$0xf] }
 0x2e0   :  { %v3736_v16 = vcombine.low %v2614_v14, %v2615_v63  ;;  %v2958_v14 = vld [vmem:[#allocation19 + $0xd4] sm:$0xf] }
 0x2e1   :  { %v2959_v63 = vld [vmem:[#allocation19 + $0xf4] sm:$0xf] }
 0x2f8   :  { %v1692_v19 = vpop.f32.mrf.mxu0 }
 0x2f9   :  { %v1699_v20 = vadd.f32 %v1692_v19, %v1592_v3  ;;  %v2613_v3 = vld [vmem:[#allocation19 + $0x128] sm:$0xf]  ;;  %v2728_v19 = vld [vmem:[#allocation19 + $0x10c] sm:$0xf] }
 0x2fa   :  { %v4321_v5 = vpop.f32.mrf.mxu0 }
 0x2fb   :  { %v1701_v22 = vmax.f32 %v1478_v6, %v1699_v20  ;;  %v2616_v6 = vld [vmem:[#allocation19 + $0x188] sm:$0xf]  ;;  %v2729_v20 = vld [vmem:[#allocation19 + $0x12c] sm:$0xf]  ;;  %v3735_v5 = vcombine.low %v2612_v36, %v2613_v3  ;;  %v2956_v36 = vld [vmem:[#allocation19 + $0x94] sm:$0xf] }
 0x2fc   :  { %v1695_v23 = vpop.f32.mrf.mxu0  ;;  %v3737_v53 = vcombine.low %v2616_v6, %v2617_v48  ;;  %v2960_v6 = vld [vmem:[#allocation19 + $0x114] sm:$0xf] }
 0x2fd   :  { %v1700_v9 = vadd.f32 %v1695_v23, %v1593_v21  ;;  %v3744_v21 = vcombine.low %v2728_v19, %v2729_v20  ;;  %v2611_v23 = vld [vmem:[#allocation19 + $0xe8] sm:$0xf]  ;;  %v2961_v48 = vld [vmem:[#allocation19 + $0x134] sm:$0xf] }
 0x2fe   :  { %v4322_v24 = vpop.f32.mrf.mxu0  ;;  %v3762_v12 = vcombine.low %v2960_v6, %v2961_v48  ;;  %v2957_v3 = vld [vmem:[#allocation19 + $0xb4] sm:$0xf] }
 0x2ff   :  { %v1702_v25 = vmax.f32 %v1479_v18, %v1700_v9  ;;  %v3745_v18 = vcombine.low %v2730_v46, %v2731_v15  ;;  %v2726_v9 = vld [vmem:[#allocation19 + $0xcc] sm:$0xf]  ;;  %v3761_v15 = vcombine.low %v2958_v14, %v2959_v63  ;;  %v3760_v20 = vcombine.low %v2956_v36, %v2957_v3 }
 0x300   :  { %v2727_v24 = vld [vmem:[#allocation19 + $0xec] sm:$0xf] }
 0x301   :  { %v3743_v26 = vcombine.low %v2726_v9, %v2727_v24 }
 0x318   :  { %v1915_v28 = vpop.f32.mrf.mxu0 }
 0x319   :  { %v1922_v55 = vadd.f32 %v1915_v28, %v1815_v27  ;;  %v2608_v27 = vld [vmem:[#allocation19 + $0x88] sm:$0xf] }
 0x31a   :  { %v4361_v29 = vpop.f32.mrf.mxu0  ;;  %v2609_v28 = vld [vmem:[#allocation19 + $0xa8] sm:$0xf] }
 0x31b   :  { %v1924_v31 = vmax.f32 %v1701_v22, %v1922_v55  ;;  %v2610_v22 = vld [vmem:[#allocation19 + $0xc8] sm:$0xf]  ;;  %v2724_v55 = vld [vmem:[#allocation19 + $0x8c] sm:$0xf] }
 0x31c   :  { %v1918_v32 = vpop.f32.mrf.mxu0  ;;  %v2725_v29 = vld [vmem:[#allocation19 + $0xac] sm:$0xf] }
 0x31d   :  { %v1923_v33 = vadd.f32 %v1918_v32, %v1816_v61  ;;  %v3733_v61 = vcombine.low %v2608_v27, %v2609_v28  ;;  %v2606_v32 = vld [vmem:[#allocation19 + $0x48] sm:$0xf]  ;;  %v2952_v27 = vld [vmem:[#allocation19 + $0x14] sm:$0xf] }
 0x31e   :  { %v4362_v7 = vpop.f32.mrf.mxu0  ;;  %v2953_v28 = vld [vmem:[#allocation19 + $0x34] sm:$0xf] }
 0x31f   :  { %v1925_v35 = vmax.f32 %v1702_v25, %v1923_v33  ;;  %v3734_v25 = vcombine.low %v2610_v22, %v2611_v23  ;;  %v2607_v33 = vld [vmem:[#allocation19 + $0x68] sm:$0xf]  ;;  %v2722_v7 = vld [vmem:[#allocation19 + $0x4c] sm:$0xf]  ;;  %v2954_v22 = vld [vmem:[#allocation19 + $0x54] sm:$0xf] }
 0x320   :  { %v3732_v37 = vcombine.low %v2606_v32, %v2607_v33  ;;  %v2955_v23 = vld [vmem:[#allocation19 + $0x74] sm:$0xf]  ;;  %v3198_v32 = vld [vmem:[#allocation19 + $0x1dc] sm:$0xf] }
 0x321   :  { %v3759_v24 = vcombine.low %v2954_v22, %v2955_v23  ;;  %v3199_v33 = vld [vmem:[#allocation19 + $0x1fc] sm:$0xf]  ;;  %v4698_v23 = vld [vmem:[#allocation20 + $0x10] sm:$0xff]  }
 0x322   :  { %v4697_v22 = vld [vmem:[#allocation20 + $0x18] sm:$0xff]  }
 0x338   :  { %v2138_v40 = vpop.f32.mrf.mxu0 }
 0x339   :  { %v2145_v42 = vadd.f32 %v2138_v40, %v2038_v38  ;;  %v2604_v40 = vld [vmem:[#allocation19 + $0x8] sm:$0xf] }
 0x33a   :  { %v4401_v10 = vpop.f32.mrf.mxu0 }
 0x33b   :  { %v2147_v43 = vmax.f32 %v1924_v31, %v2145_v42  ;;  %v3742_v31 = vcombine.low %v2724_v55, %v2725_v29  ;;  %v2605_v42 = vld [vmem:[#allocation19 + $0x28] sm:$0xf]  ;;  %v2720_v10 = vld [vmem:[#allocation19 + $0xc] sm:$0xf]  ;;  %v3758_v29 = vcombine.low %v2952_v27, %v2953_v28  ;;  %v4704_v28 = vld [vmem:[#allocation22 + $0x20] sm:$0xff]  }
 0x33c   :  { %v2141_v45 = vpop.f32.mrf.mxu0  ;;  %v4703_v27 = vld [vmem:[#allocation22 + $0x28] sm:$0xff]  }
 0x33d   :  { %v2146_v47 = vadd.f32 %v2141_v45, %v2039_v41  ;;  %v2721_v41 = vld [vmem:[#allocation19 + $0x2c] sm:$0xf] }
 0x33e   :  { %v4402_v44 = vpop.f32.mrf.mxu0  ;;  %v3740_v45 = vcombine.low %v2720_v10, %v2721_v41 }
 0x33f   :  { %v2148_v49 = vmax.f32 %v1925_v35, %v2146_v47  ;;  %v2723_v35 = vld [vmem:[#allocation19 + $0x6c] sm:$0xf]  ;;  %v2850_v47 = vld [vmem:[#allocation19 + $0x1d0] sm:$0xf] }
 0x340   :  { %v3741_v38 = vcombine.low %v2722_v7, %v2723_v35  ;;  %v2851_v44 = vld [vmem:[#allocation19 + $0x1f0] sm:$0xf]  ;;  %v3783_v35 = vcombine.low %v3198_v32, %v3199_v33  ;;  %v3730_v32 = vld [vmem:[%s5638_s12 + $0x1] ss:$0 sm:$0xff] }
 0x358   :  { %v2361_v52 = vpop.f32.mrf.mxu0 }
 0x359   :  { %v2368_v34 = vadd.f32 %v2361_v52, %v2261_v51  ;;  %v3756_v51 = vcombine.low %v2850_v47, %v2851_v44  ;;  %v3194_v47 = vld [vmem:[#allocation19 + $0x15c] sm:$0xf] }
 0x35a   :  { %v4441_v54 = vpop.f32.mrf.mxu0  ;;  %v3195_v44 = vld [vmem:[#allocation19 + $0x17c] sm:$0xf] }
 0x35b   :  { %v2370_v17 = vmax.f32 %v2147_v43, %v2368_v34  ;;  %v3731_v43 = vcombine.low %v2604_v40, %v2605_v42  ;;  %v2848_v34 = vld [vmem:[#allocation19 + $0x190] sm:$0xf]  ;;  %v3196_v40 = vld [vmem:[#allocation19 + $0x19c] sm:$0xf] }
 0x35c   :  { %v2364_v57 = vpop.f32.mrf.mxu0  ;;  %v2849_v54 = vld [vmem:[#allocation19 + $0x1b0] sm:$0xf]  ;;  %v3197_v42 = vld [vmem:[#allocation19 + $0x1bc] sm:$0xf] }
 0x35d   :  { %v2369_v59 = vadd.f32 %v2364_v57, %v2262_v56  ;;  %v2964_v56 = vld [vmem:[#allocation19 + $0x194] sm:$0xf]  ;;  %v3755_v57 = vcombine.low %v2848_v34, %v2849_v54  ;;  %v3782_v41 = vcombine.low %v3196_v40, %v3197_v42  ;;  %v3192_v34 = vld [vmem:[#allocation19 + $0x11c] sm:$0xf] }
 0x35e   :  { %v4442_v1 = vpop.f32.mrf.mxu0  ;;  %v3193_v54 = vld [vmem:[#allocation19 + $0x13c] sm:$0xf] }
 0x35f   :  { %v2371_v2 = vmax.f32 %v2148_v49, %v2369_v59  ;;  %v2966_v49 = vld [vmem:[#allocation19 + $0x1d4] sm:$0xf]  ;;  %v2846_v59 = vld [vmem:[#allocation19 + $0x150] sm:$0xf] }
 0x360   :  { %v3765_v52 = vcombine.low %v2966_v49, %v2967_v50  ;;  %v3754_v1 = vcombine.low %v2846_v59, %v2847_v60  ;;  %v3781_v50 = vcombine.low %v3194_v47, %v3195_v44  ;;  %v3190_v59 = vld [vmem:[#allocation19 + $0xdc] sm:$0xf] }
 0x361   :  { %v5507_v8 = vpack.c.bf16 %v2371_v2, %v2370_v17  ;;  %v2965_v17 = vld [vmem:[#allocation19 + $0x1b4] sm:$0xf]  ;;  %v3763_v2 = vcombine.low %v2962_v39, %v2963_v62  ;;  %v3191_v60 = vld [vmem:[#allocation19 + $0xfc] sm:$0xf] }
 0x362   :  { %v3764_v58 = vcombine.low %v2964_v56, %v2965_v17  ;;  %v3780_v17 = vcombine.low %v3192_v34, %v3193_v54  ;;  %v3779_v62 = vcombine.low %v3190_v59, %v3191_v60 }
 0x363   :  { %4460 = vmatmul.mubr.bf16.vlgmr.msra.gmra.mxu1 %v5507_v8  ;;  %4480 = vmatmul.mubr.bf16.vlgmr.msra.gmra.mxu0 %v5507_v8 }
 0x364   :  { %4484 = vmatpush3.bf16.msra.mxu1 %v3738_v4  ;;  %4504 = vmatpush3.bf16.msra.mxu0 %v3747_v30  ;;  %v2844_v4 = vld [vmem:[#allocation19 + $0x110] sm:$0xf] }
 0x365   :  { %4485 = vmatprep.subr.bf16.mxu1 %v5026_v0  ;;  %4505 = vmatprep.subr.bf16.mxu0 %v5026_v0  ;;  %v2845_v30 = vld [vmem:[#allocation19 + $0x130] sm:$0xf] }
 0x366   :  { %4499 = vmatprep.mubr.msk.bf16.mxu1 %vm5027_vm0, %v5026_v0  ;;  %4519 = vmatprep.mubr.msk.bf16.mxu0 %vm5027_vm0, %v5026_v0  ;;  %v3753_v11 = vcombine.low %v2844_v4, %v2845_v30  ;;  %v3188_v4 = vld [vmem:[#allocation19 + $0x9c] sm:$0xf] }
 0x367   :  { %v3189_v30 = vld [vmem:[#allocation19 + $0xbc] sm:$0xf] }
 0x368   :  { %4486 = vmatpush3.bf16.msra.mxu1 %v3737_v53  ;;  %4506 = vmatpush3.bf16.msra.mxu0 %v3746_v13  ;;  %v2842_v53 = vld [vmem:[#allocation19 + $0xd0] sm:$0xf]  ;;  %v3778_v48 = vcombine.low %v3188_v4, %v3189_v30  ;;  %v3739_v4 = vld [vmem:[%s5638_s12 + $0x2] ss:$0 sm:$0xff] }
 0x369   :  { %4487 = vmatprep.subr.bf16.mxu1 %v5026_v0  ;;  %4507 = vmatprep.subr.bf16.mxu0 %v5026_v0  ;;  %v2843_v13 = vld [vmem:[#allocation19 + $0xf0] sm:$0xf] }
 0x36a   :  { %v3752_v46 = vcombine.low %v2842_v53, %v2843_v13  ;;  %v3186_v53 = vld [vmem:[#allocation19 + $0x5c] sm:$0xf] }
 0x36b   :  { %v3187_v13 = vld [vmem:[#allocation19 + $0x7c] sm:$0xf] }
 0x36c   :  { %4488 = vmatpush3.bf16.msra.mxu1 %v3736_v16  ;;  %4508 = vmatpush3.bf16.msra.mxu0 %v3745_v18  ;;  %v2840_v16 = vld [vmem:[#allocation19 + $0x90] sm:$0xf]  ;;  %v3777_v63 = vcombine.low %v3186_v53, %v3187_v13 }
 0x36d   :  { %4489 = vmatprep.subr.bf16.mxu1 %v5026_v0  ;;  %4509 = vmatprep.subr.bf16.mxu0 %v5026_v0  ;;  %v2841_v18 = vld [vmem:[#allocation19 + $0xb0] sm:$0xf] }
 0x36e   :  { %v3751_v19 = vcombine.low %v2840_v16, %v2841_v18  ;;  %v3184_v16 = vld [vmem:[#allocation19 + $0x1c] sm:$0xf] }
 0x36f   :  { %v3185_v18 = vld [vmem:[#allocation19 + $0x3c] sm:$0xf] }
 0x370   :  { %4490 = vmatpush3.bf16.msra.mxu1 %v3735_v5  ;;  %4510 = vmatpush3.bf16.msra.mxu0 %v3744_v21  ;;  %v2838_v5 = vld [vmem:[#allocation19 + $0x50] sm:$0xf]  ;;  %v3776_v3 = vcombine.low %v3184_v16, %v3185_v18  ;;  %v3766_v16 = vld [vmem:[%s5638_s12 + $0x5] ss:$0 sm:$0xff]  ;;  %v3775_v18 = vld [vmem:[%s5638_s12 + $0x6] ss:$0 sm:$0xff] }
 0x371   :  { %4491 = vmatprep.subr.bf16.mxu1 %v5026_v0  ;;  %4511 = vmatprep.subr.bf16.mxu0 %v5026_v0  ;;  %v2839_v21 = vld [vmem:[#allocation19 + $0x70] sm:$0xf] }
 0x372   :  { %v3750_v9 = vcombine.low %v2838_v5, %v2839_v21  ;;  %v4695_v5 = vld [vmem:[#allocation20 + $0x28] sm:$0xff]   ;;  %v4696_v21 = vld [vmem:[#allocation20 + $0x20] sm:$0xff]  }
 0x374   :  { %4492 = vmatpush3.bf16.msra.mxu1 %v3734_v25  ;;  %4512 = vmatpush3.bf16.msra.mxu0 %v3743_v26  ;;  %v2836_v25 = vld [vmem:[#allocation19 + $0x10] sm:$0xf] }
 0x375   :  { %4493 = vmatprep.subr.bf16.mxu1 %v5026_v0  ;;  %4513 = vmatprep.subr.bf16.mxu0 %v5026_v0  ;;  %v2837_v26 = vld [vmem:[#allocation19 + $0x30] sm:$0xf] }
 0x376   :  { %v3749_v55 = vcombine.low %v2836_v25, %v2837_v26  ;;  %v4701_v25 = vld [vmem:[#allocation22 + $0x38] sm:$0xff]   ;;  %v4702_v26 = vld [vmem:[#allocation22 + $0x30] sm:$0xff]  }
 0x378   :  { %4494 = vmatpush3.bf16.msra.mxu1 %v3733_v61  ;;  %4514 = vmatpush3.bf16.msra.mxu0 %v3742_v31  ;;  %v3082_v61 = vld [vmem:[#allocation19 + $0x1d8] sm:$0xf] }
 0x379   :  { %4495 = vmatprep.subr.bf16.mxu1 %v5026_v0  ;;  %4515 = vmatprep.subr.bf16.mxu0 %v5026_v0  ;;  %v3083_v31 = vld [vmem:[#allocation19 + $0x1f8] sm:$0xf] }
 0x37a   :  { %v3774_v7 = vcombine.low %v3082_v61, %v3083_v31  ;;  %v4708_v61 = vld [vmem:[#allocation22] sm:$0xff]   ;;  %v3721_v31 = vld [vmem:[%s5638_s12] ss:$0 sm:$0xff] }
 0x37c   :  { %4496 = vmatpush3.bf16.msra.mxu1 %v3732_v37  ;;  %4516 = vmatpush3.bf16.msra.mxu0 %v3741_v38  ;;  %v3080_v37 = vld [vmem:[#allocation19 + $0x198] sm:$0xf] }
 0x37d   :  { %4497 = vmatprep.subr.bf16.mxu1 %v5026_v0  ;;  %4517 = vmatprep.subr.bf16.mxu0 %v5026_v0  ;;  %v3081_v38 = vld [vmem:[#allocation19 + $0x1b8] sm:$0xf] }
 0x37e   :  { %v3773_v10 = vcombine.low %v3080_v37, %v3081_v38 }
 0x380   :  { %4498 = vmatpush3.bf16.msra.mxu1 %v3731_v43  ;;  %4518 = vmatpush3.bf16.msra.mxu0 %v3740_v45  ;;  %v3078_v43 = vld [vmem:[#allocation19 + $0x158] sm:$0xf] }
 0x381   :  { %4523 = vmatprep.subr.bf16.mxu1 %v5026_v0  ;;  %4543 = vmatprep.subr.bf16.mxu0 %v5026_v0  ;;  %v3079_v45 = vld [vmem:[#allocation19 + $0x178] sm:$0xf] }
 0x382   :  { %v3772_v49 = vcombine.low %v3078_v43, %v3079_v45 }
 0x383   :  { %4500 = vmatmul.mubr.bf16.vlgmr.msra.gmra.mxu1 %v5507_v8  ;;  %4520 = vmatmul.mubr.bf16.vlgmr.msra.gmra.mxu0 %v5507_v8 }
 0x384   :  { %4524 = vmatpush3.bf16.msra.mxu1 %v3756_v51  ;;  %4544 = vmatpush3.bf16.msra.mxu0 %v3765_v52  ;;  %v3076_v51 = vld [vmem:[#allocation19 + $0x118] sm:$0xf] }
 0x385   :  { %4525 = vmatprep.subr.bf16.mxu1 %v5026_v0  ;;  %4545 = vmatprep.subr.bf16.mxu0 %v5026_v0  ;;  %v3077_v52 = vld [vmem:[#allocation19 + $0x138] sm:$0xf] }
 0x386   :  { %4539 = vmatprep.mubr.msk.bf16.mxu1 %vm5027_vm0, %v5026_v0  ;;  %4559 = vmatprep.mubr.msk.bf16.mxu0 %vm5027_vm0, %v5026_v0  ;;  %v3771_v56 = vcombine.low %v3076_v51, %v3077_v52 }
 0x388   :  { %4526 = vmatpush3.bf16.msra.mxu1 %v3755_v57  ;;  %4546 = vmatpush3.bf16.msra.mxu0 %v3764_v58  ;;  %v3074_v57 = vld [vmem:[#allocation19 + $0xd8] sm:$0xf] }
 0x389   :  { %4527 = vmatprep.subr.bf16.mxu1 %v5026_v0  ;;  %4547 = vmatprep.subr.bf16.mxu0 %v5026_v0  ;;  %v3075_v58 = vld [vmem:[#allocation19 + $0xf8] sm:$0xf] }
 0x38a   :  { %v3770_v39 = vcombine.low %v3074_v57, %v3075_v58 }
 0x38c   :  { %4528 = vmatpush3.bf16.msra.mxu1 %v3754_v1  ;;  %4548 = vmatpush3.bf16.msra.mxu0 %v3763_v2  ;;  %v3072_v1 = vld [vmem:[#allocation19 + $0x98] sm:$0xf] }
 0x38d   :  { %4529 = vmatprep.subr.bf16.mxu1 %v5026_v0  ;;  %4549 = vmatprep.subr.bf16.mxu0 %v5026_v0  ;;  %v3073_v2 = vld [vmem:[#allocation19 + $0xb8] sm:$0xf] }
 0x38e   :  { %v3769_v6 = vcombine.low %v3072_v1, %v3073_v2 }
 0x390   :  { %4530 = vmatpush3.bf16.msra.mxu1 %v3753_v11  ;;  %4550 = vmatpush3.bf16.msra.mxu0 %v3762_v12  ;;  %v3070_v11 = vld [vmem:[#allocation19 + $0x58] sm:$0xf] }
 0x391   :  { %4531 = vmatprep.subr.bf16.mxu1 %v5026_v0  ;;  %4551 = vmatprep.subr.bf16.mxu0 %v5026_v0  ;;  %v3071_v12 = vld [vmem:[#allocation19 + $0x78] sm:$0xf] }
 0x392   :  { %v3768_v14 = vcombine.low %v3070_v11, %v3071_v12  ;;  %v3757_v11 = vld [vmem:[%s5638_s12 + $0x4] ss:$0 sm:$0xff] }
 0x394   :  { %4532 = vmatpush3.bf16.msra.mxu1 %v3752_v46  ;;  %4552 = vmatpush3.bf16.msra.mxu0 %v3761_v15  ;;  %v3068_v46 = vld [vmem:[#allocation19 + $0x18] sm:$0xf] }
 0x395   :  { %4533 = vmatprep.subr.bf16.mxu1 %v5026_v0  ;;  %4553 = vmatprep.subr.bf16.mxu0 %v5026_v0  ;;  %v3069_v15 = vld [vmem:[#allocation19 + $0x38] sm:$0xf] }
 0x396   :  { %v3767_v36 = vcombine.low %v3068_v46, %v3069_v15 }
 0x398   :  { %4534 = vmatpush3.bf16.msra.mxu1 %v3751_v19  ;;  %4554 = vmatpush3.bf16.msra.mxu0 %v3760_v20  ;;  %v4693_v19 = vld [vmem:[#allocation20 + $0x38] sm:$0xff]   ;;  %v4694_v20 = vld [vmem:[#allocation20 + $0x30] sm:$0xff]  }
 0x399   :  { %4535 = vmatprep.subr.bf16.mxu1 %v5026_v0  ;;  %4555 = vmatprep.subr.bf16.mxu0 %v5026_v0 }
 0x39c   :  { %4536 = vmatpush3.bf16.msra.mxu1 %v3750_v9  ;;  %4556 = vmatpush3.bf16.msra.mxu0 %v3759_v24  ;;  %v4699_v9 = vld [vmem:[#allocation20 + $0x8] sm:$0xff]   ;;  %v4700_v24 = vld [vmem:[#allocation20] sm:$0xff]  }
 0x39d   :  { %4537 = vmatprep.subr.bf16.mxu1 %v5026_v0  ;;  %4557 = vmatprep.subr.bf16.mxu0 %v5026_v0 }
 0x3a0   :  { %4538 = vmatpush3.bf16.msra.mxu1 %v3749_v55  ;;  %4558 = vmatpush3.bf16.msra.mxu0 %v3758_v29  ;;  %v4705_v55 = vld [vmem:[#allocation22 + $0x18] sm:$0xff]   ;;  %v4707_v29 = vld [vmem:[#allocation22 + $0x8] sm:$0xff]  }
 0x3a1   :  { %4563 = vmatprep.subr.bf16.mxu1 %v5026_v0  ;;  %4583 = vmatprep.subr.bf16.mxu0 %v5026_v0 }
 0x3a3   :  { %4540 = vmatmul.mubr.bf16.vlgmr.msra.gmra.mxu1 %v5507_v8  ;;  %4560 = vmatmul.mubr.bf16.vlgmr.msra.gmra.mxu0 %v5507_v8 }
 0x3a4   :  { %4564 = vmatpush3.bf16.msra.mxu1 %v3774_v7  ;;  %4584 = vmatpush3.bf16.msra.mxu0 %v3783_v35 }
 0x3a5   :  { %4565 = vmatprep.subr.bf16.mxu1 %v5026_v0  ;;  %4585 = vmatprep.subr.bf16.mxu0 %v5026_v0 }
 0x3a6   :  { %4579 = vmatprep.mubr.msk.bf16.mxu1 %vm5027_vm0, %v5026_v0  ;;  %4599 = vmatprep.mubr.msk.bf16.mxu0 %vm5027_vm0, %v5026_v0 }
 0x3a8   :  { %4566 = vmatpush3.bf16.msra.mxu1 %v3773_v10  ;;  %4586 = vmatpush3.bf16.msra.mxu0 %v3782_v41 }
 0x3a9   :  { %4567 = vmatprep.subr.bf16.mxu1 %v5026_v0  ;;  %4587 = vmatprep.subr.bf16.mxu0 %v5026_v0 }
 0x3ac   :  { %4568 = vmatpush3.bf16.msra.mxu1 %v3772_v49  ;;  %4588 = vmatpush3.bf16.msra.mxu0 %v3781_v50 }
 0x3ad   :  { %4569 = vmatprep.subr.bf16.mxu1 %v5026_v0  ;;  %4589 = vmatprep.subr.bf16.mxu0 %v5026_v0 }
 0x3b0   :  { %4570 = vmatpush3.bf16.msra.mxu1 %v3771_v56  ;;  %4590 = vmatpush3.bf16.msra.mxu0 %v3780_v17 }
 0x3b1   :  { %4571 = vmatprep.subr.bf16.mxu1 %v5026_v0  ;;  %4591 = vmatprep.subr.bf16.mxu0 %v5026_v0 }
 0x3b4   :  { %4572 = vmatpush3.bf16.msra.mxu1 %v3770_v39  ;;  %4592 = vmatpush3.bf16.msra.mxu0 %v3779_v62 }
 0x3b5   :  { %4573 = vmatprep.subr.bf16.mxu1 %v5026_v0  ;;  %4593 = vmatprep.subr.bf16.mxu0 %v5026_v0 }
 0x3b8   :  { %4574 = vmatpush3.bf16.msra.mxu1 %v3769_v6  ;;  %4594 = vmatpush3.bf16.msra.mxu0 %v3778_v48  ;;  %v3748_v48 = vld [vmem:[%s5638_s12 + $0x3] ss:$0 sm:$0xff] }
 0x3b9   :  { %4575 = vmatprep.subr.bf16.mxu1 %v5026_v0  ;;  %4595 = vmatprep.subr.bf16.mxu0 %v5026_v0 }
 0x3bc   :  { %4576 = vmatpush3.bf16.msra.mxu1 %v3768_v14  ;;  %4596 = vmatpush3.bf16.msra.mxu0 %v3777_v63 }
 0x3bd   :  { %4577 = vmatprep.subr.bf16.mxu1 %v5026_v0  ;;  %4597 = vmatprep.subr.bf16.mxu0 %v5026_v0 }
 0x3c0   :  { %4578 = vmatpush3.bf16.msra.mxu1 %v3767_v36  ;;  %4598 = vmatpush3.bf16.msra.mxu0 %v3776_v3 }
 0x3c1   :  { %4623 = vmatprep.subr.bf16.mxu0 %v5026_v0  ;;  %4603 = vmatprep.subr.bf16.mxu1 %v5026_v0 }
 0x3c3   :  { %4580 = vmatmul.mubr.bf16.vlgmr.msra.gmra.mxu1 %v5507_v8  ;;  %4600 = vmatmul.mubr.bf16.vlgmr.msra.gmra.mxu0 %v5507_v8 }
 0x3c4   :  { %4624 = vmatpush3.bf16.msra.mxu0 %v4693_v19  ;;  %4639 = vmatprep.mubr.msk.bf16.mxu0 %vm5027_vm0, %v5026_v0 }
 0x3c5   :  { %4625 = vmatprep.subr.bf16.mxu0 %v5026_v0  ;;  %4619 = vmatprep.mubr.msk.bf16.mxu1 %vm5027_vm0, %v5026_v0 }
 0x3c6   :  { %4604 = vmatpush3.bf16.msra.mxu1 %v4701_v25 }
 0x3c7   :  { %4605 = vmatprep.subr.bf16.mxu1 %v5026_v0 }
 0x3c8   :  { %4626 = vmatpush3.bf16.msra.mxu0 %v4694_v20 }
 0x3c9   :  { %4627 = vmatprep.subr.bf16.mxu0 %v5026_v0 }
 0x3ca   :  { %4606 = vmatpush3.bf16.msra.mxu1 %v4702_v26  ;;  %v3784_v26 = vld [vmem:[%s5638_s12 + $0x7] ss:$0 sm:$0xff] }
 0x3cb   :  { %4607 = vmatprep.subr.bf16.mxu1 %v5026_v0 }
 0x3cc   :  { %4628 = vmatpush3.bf16.msra.mxu0 %v4695_v5 }
 0x3cd   :  { %4629 = vmatprep.subr.bf16.mxu0 %v5026_v0 }
 0x3ce   :  { %4608 = vmatpush3.bf16.msra.mxu1 %v4703_v27 }
 0x3cf   :  { %4609 = vmatprep.subr.bf16.mxu1 %v5026_v0 }
 0x3d0   :  { %4630 = vmatpush3.bf16.msra.mxu0 %v4696_v21 }
 0x3d1   :  { %4631 = vmatprep.subr.bf16.mxu0 %v5026_v0 }
 0x3d2   :  { %4610 = vmatpush3.bf16.msra.mxu1 %v4704_v28 }
 0x3d3   :  { %4611 = vmatprep.subr.bf16.mxu1 %v5026_v0 }
 0x3d4   :  { %4632 = vmatpush3.bf16.msra.mxu0 %v4697_v22 }
 0x3d5   :  { %4633 = vmatprep.subr.bf16.mxu0 %v5026_v0 }
 0x3d6   :  { %4612 = vmatpush3.bf16.msra.mxu1 %v4705_v55 }
 0x3d7   :  { %4613 = vmatprep.subr.bf16.mxu1 %v5026_v0 }
 0x3d8   :  { %4634 = vmatpush3.bf16.msra.mxu0 %v4698_v23 }
 0x3d9   :  { %4635 = vmatprep.subr.bf16.mxu0 %v5026_v0 }
 0x3dc   :  { %4636 = vmatpush3.bf16.msra.mxu0 %v4699_v9 }
 0x3dd   :  { %4637 = vmatprep.subr.bf16.mxu0 %v5026_v0 }
 0x3e0   :  { %4638 = vmatpush3.bf16.msra.mxu0 %v4700_v24 }
 0x3e3   :  { %4640 = vmatmul.mubr.bf16.vlgmr.msra.gmra.mxu0 %v5507_v8  ;;  %v4706_v8 = vld [vmem:[#allocation22 + $0x10] sm:$0xff]  }
 0x3e4   :  { %4614 = vmatpush3.bf16.msra.mxu1 %v4706_v8 }
 0x3e5   :  { %4615 = vmatprep.subr.bf16.mxu1 %v5026_v0 }
 0x3e8   :  { %4616 = vmatpush3.bf16.msra.mxu1 %v4707_v29 }
 0x3e9   :  { %4617 = vmatprep.subr.bf16.mxu1 %v5026_v0 }
 0x3ec   :  { %4618 = vmatpush3.bf16.msra.mxu1 %v4708_v61 }
 0x423   :  { %v2472_v33 = vpop.f32.mrf.mxu1  ;;  %v2586_v7 = vpop.f32.mrf.mxu0 }
 0x424   :  { %v2485_v35 = vadd.f32 %v3721_v31, %v2472_v33  ;;  %v2599_v37 = vadd.f32 %v3730_v32, %v2586_v7 }
 0x425   :  { %v4461_v38 = vpop.f32.mrf.mxu1  ;;  %v4481_v40 = vpop.f32.mrf.mxu0 }
 0x426   :  { %v2601_v42 = vmax.f32 %v2485_v35, %v2599_v37 }
 0x427   :  { %v2475_v10 = vpop.f32.mrf.mxu1  ;;  %v2589_v41 = vpop.f32.mrf.mxu0 }
 0x428   :  { %v2486_v0 = vadd.f32 %v3721_v31, %v2475_v10  ;;  %v2600_v43 = vadd.f32 %v3730_v32, %v2589_v41 }
 0x429   :  { %v4462_v45 = vpop.f32.mrf.mxu1  ;;  %v4482_v47 = vpop.f32.mrf.mxu0 }
 0x42a   :  { %v2602_v44 = vmax.f32 %v2486_v0, %v2600_v43  ;;  %v3801_v43 = vld [vmem:[%s5641_s15] ss:$0 sm:$0xff] }
 0x443   :  { %v2702_v49 = vpop.f32.mrf.mxu1  ;;  %v2818_v50 = vpop.f32.mrf.mxu0 }
 0x444   :  { %v2715_v30 = vadd.f32 %v3739_v4, %v2702_v49  ;;  %v2831_v53 = vadd.f32 %v3748_v48, %v2818_v50 }
 0x445   :  { %v4501_v51 = vpop.f32.mrf.mxu1  ;;  %v4521_v52 = vpop.f32.mrf.mxu0 }
 0x446   :  { %v2717_v12 = vmax.f32 %v2601_v42, %v2715_v30 }
 0x447   :  { %v2705_v34 = vpop.f32.mrf.mxu1  ;;  %v2821_v54 = vpop.f32.mrf.mxu0 }
 0x448   :  { %v2716_v6 = vadd.f32 %v3739_v4, %v2705_v34  ;;  %v2833_v63 = vmax.f32 %v2717_v12, %v2831_v53  ;;  %v2832_v46 = vadd.f32 %v3748_v48, %v2821_v54 }
 0x449   :  { %v4502_v56 = vpop.f32.mrf.mxu1  ;;  %v4522_v17 = vpop.f32.mrf.mxu0 }
 0x44a   :  { %v2718_v13 = vmax.f32 %v2602_v44, %v2716_v6 }
 0x44c   :  { %v2834_v36 = vmax.f32 %v2718_v13, %v2832_v46 }
 0x463   :  { %v2934_v57 = vpop.f32.mrf.mxu1  ;;  %v3050_v58 = vpop.f32.mrf.mxu0 }
 0x464   :  { %v2947_v14 = vadd.f32 %v3757_v11, %v2934_v57  ;;  %v3063_v5 = vadd.f32 %v3766_v16, %v3050_v58 }
 0x465   :  { %v4541_v59 = vpop.f32.mrf.mxu1  ;;  %v4561_v60 = vpop.f32.mrf.mxu0 }
 0x466   :  { %v2949_v3 = vmax.f32 %v2833_v63, %v2947_v14 }
 0x467   :  { %v2937_v39 = vpop.f32.mrf.mxu1  ;;  %v3053_v62 = vpop.f32.mrf.mxu0 }
 0x468   :  { %v2948_v15 = vadd.f32 %v3757_v11, %v2937_v39  ;;  %v3065_v24 = vmax.f32 %v2949_v3, %v3063_v5  ;;  %v3064_v25 = vadd.f32 %v3766_v16, %v3053_v62 }
 0x469   :  { %v4542_v1 = vpop.f32.mrf.mxu1  ;;  %v4562_v2 = vpop.f32.mrf.mxu0 }
 0x46a   :  { %v2950_v21 = vmax.f32 %v2834_v36, %v2948_v15 }
 0x46c   :  { %v3066_v55 = vmax.f32 %v2950_v21, %v3064_v25 }
 0x483   :  { %v3166_v19 = vpop.f32.mrf.mxu1  ;;  %v3282_v20 = vpop.f32.mrf.mxu0 }
 0x484   :  { %v3179_v22 = vadd.f32 %v3775_v18, %v3166_v19  ;;  %v3295_v32 = vadd.f32 %v3784_v26, %v3282_v20 }
 0x485   :  { %v4581_v23 = vpop.f32.mrf.mxu1  ;;  %v4601_v9 = vpop.f32.mrf.mxu0 }
 0x486   :  { %v3181_v8 = vmax.f32 %v3065_v24, %v3179_v22 }
 0x487   :  { %v3169_v27 = vpop.f32.mrf.mxu1  ;;  %v3285_v28 = vpop.f32.mrf.mxu0 }
 0x488   :  { %v3180_v29 = vadd.f32 %v3775_v18, %v3169_v27  ;;  %v3296_v7 = vadd.f32 %v3784_v26, %v3285_v28  ;;  %v3297_v35 = vmax.f32 %v3181_v8, %v3295_v32 }
 0x489   :  { %v4582_v61 = vpop.f32.mrf.mxu1  ;;  %v4602_v31 = vpop.f32.mrf.mxu0 }
 0x48a   :  { %v3182_v33 = vmax.f32 %v3066_v55, %v3180_v29 }
 0x48c   :  { %v3298_v37 = vmax.f32 %v3182_v33, %v3296_v7 }
 0x48e   :  { %v3299_v38 = vpack.c.bf16 %v3298_v37, %v3297_v35 }
 0x490   :  { %4620 = vmatmul.mubr.bf16.vlgmr.msra.gmra.mxu1 %v3299_v38 }
 0x4a3   :  { %v3503_v40 = vpop.f32.mrf.mxu0 }
 0x4a5   :  { %v4641_v42 = vpop.f32.mrf.mxu0 }
 0x4a7   :  { %v3506_v10 = vpop.f32.mrf.mxu0 }
 0x4a9   :  { %v4642_v41 = vpop.f32.mrf.mxu0 }
 0x550   :  { %v3414_v0 = vpop.f32.mrf.mxu1 }
 0x551   :  { %v3504_v45 = vadd.f32 %v3503_v40, %v3414_v0 }
 0x552   :  { %v4621_v47 = vpop.f32.mrf.mxu1 }
 0x553   :  { %v3517_v44 = vadd.f32 %v3801_v43, %v3504_v45 }
 0x554   :  { %v3417_v49 = vpop.f32.mrf.mxu1 }
 0x555   :  { %v3507_v50 = vadd.f32 %v3506_v10, %v3417_v49  ;;  %3519 = vmax.xlane.f32.xlu0 %v3517_v44 }
 0x556   :  { %v4622_v51 = vpop.f32.mrf.mxu1 }
 0x557   :  { %v3518_v52 = vadd.f32 %v3801_v43, %v3507_v50 }
 0x559   :  { %3521 = vmax.xlane.f32.xlu0 %v3518_v52 }
 0x5de   :  { %v3520_v34 = vpop.xlane.xlu0 %3519 }
 0x5df   :  { %3523 = vst [vmem:[#allocation23] sm:$0xff] %v3520_v34 }
 0x5e2   :  { %v3522_v54 = vpop.xlane.xlu0 %3521 }
 0x5e3   :  { %3524 = vst [vmem:[#allocation23 + $0x8] sm:$0xff] %v3522_v54 }
 0x5e4   :  { %4984 = shalt.err (!%p4981_p13)
}
 0x5e5   :  { %s5029_s15 = smov 128   ;;  %s5030_s23 = smov 8  }
 0x5e6   :  { %3536 = dma.vmem_to_hbm [thread:$0]  %s3531_s1, 256, %s5642_s16, [#allocation4], %s5029_s15, %s5029_s15, %s5030_s23  }
 0x5e7   :  { %5007 = dma.done.wait [#allocation4], 256  }
 0x5e8   :  { %5008 = vsyncadd [#allocation4], 4294967040 }
 0x5e9   :  { %3540 = vsyncpa [#allocation3], 1 }
 0x5ea   :  { %3541 = vsyncpa [#allocation6], 1 }
 0x5eb   :  { %3542 = vsyncpa [#allocation9], 1 }
 0x5ec   :  { %3543 = vsyncpa [#allocation12], 1 }
 0x5ed   :  { %3544 = vsyncpa [#allocation15], 1 }
 0x5ee   :  { %3545 = vsyncpa [#allocation18], 1 }
 0x5ef   :  { %3546 = vsyncpa [#allocation21], 1 }
 0x5f0   :  { %3547 = vsyncpa [#allocation4], 1 }

// kernel: tpu_custom_call.1
= control target key start
LH: loop header
LB: loop body
LE: loop exit
PB: predicated region body
PF: predicated region fallthrough
CT: control target
= control target key end

     0   :  { %s5626_s0 = inlined_call_operand.hbm [shape: bf16[16,128], index: 0, kind: input, shape index: {}]   ;;  %s5627_s1 = inlined_call_operand.hbm [shape: bf16[16,128], index: 1, kind: input, shape index: {}]   ;;  %s5628_s2 = inlined_call_operand.hbm [shape: bf16[16,128], index: 2, kind: input, shape index: {}]   ;;  %s5629_s3 = inlined_call_operand.hbm [shape: bf16[16,128], index: 3, kind: input, shape index: {}]   ;;  %s5630_s4 = inlined_call_operand.hbm [shape: bf16[128,128], index: 4, kind: input, shape index: {}]   ;;  %s5631_s5 = inlined_call_operand.hbm [shape: bf16[128,128], index: 5, kind: input, shape index: {}]   ;;  %s5632_s6 = inlined_call_operand.hbm [shape: bf16[128,128], index: 6, kind: input, shape index: {}]   ;;  %s5633_s7 = inlined_call_operand.hbm [shape: f32[1,128], index: 7, kind: input, shape index: {}]   ;;  %s5634_s8 = inlined_call_operand.hbm [shape: bf16[128,1024], index: 8, kind: input, shape index: {}]   ;;  %s5635_s9 = inlined_call_operand.hbm [shape: bf16[128,1024], index: 9, kind: input, shape index: {}]   ;;  %s5636_s10 = inlined_call_operand.vmem [shape: f32[1,1024], index: 10, kind: input, shape index: {}]   ;;  %s5637_s11 = inlined_call_operand.hbm [shape: bf16[128,1024], index: 11, kind: input, shape index: {}]   ;;  %s5638_s12 = inlined_call_operand.vmem [shape: f32[1,1024], index: 12, kind: input, shape index: {}]   ;;  %s5639_s13 = inlined_call_operand.hbm [shape: bf16[128,128], index: 13, kind: input, shape index: {}]   ;;  %s5640_s14 = inlined_call_operand.hbm [shape: bf16[128,128], index: 14, kind: input, shape index: {}]   ;;  %s5641_s15 = inlined_call_operand.vmem [shape: f32[1,128], index: 15, kind: input, shape index: {}]   ;;  %s5642_s16 = inlined_call_operand.hbm [shape: f32[16,128], index: 16, kind: output, shape index: {}]  }
   0x1   :  { %5643 = sst [smem:[#allocation32_spill]] %s5626_s0 }
   0x2   :  { %21 = vsyncpa [#allocation3], 0 }
   0x3   :  { %22 = vsyncpa [#allocation6], 0 }
   0x4   :  { %23 = vsyncpa [#allocation9], 0 }
   0x5   :  { %24 = vsyncpa [#allocation12], 0 }
   0x6   :  { %25 = vsyncpa [#allocation15], 0 }
   0x7   :  { %26 = vsyncpa [#allocation18], 0 }
   0x8   :  { %27 = vsyncpa [#allocation21], 0 }
   0x9   :  { %28 = vsyncpa [#allocation4], 0  ;;  %s5009_s21 = smov [#allocation5]   ;;  %s5010_s23 = smov [#allocation8]  }
   0xa   :  { %s46_s22 = sshll.u32 %s5009_s21, 4  ;;  %s70_s24 = sshll.u32 %s5010_s23, 4  ;;  %s47_s22 = int_to_ptr.vmem [resolvable:$true] %s46_s22  ;;  %s71_s24 = int_to_ptr.vmem [resolvable:$true] %s70_s24 }
   0xb   :  { %s4721_s25 = scalar_lea.vmem %s47_s22, 128  ;;  %p4726_p1 = scmp.lt.s32.totalorder %s47_s22, %s47_s22 }
   0xc   :  { %p4722_p0 = scmp.ne.s32.totalorder %s47_s22, %s4721_s25  ;;  %p4727_p2 = scmp.lt.s32.totalorder %s4721_s25, %s4721_s25 }
   0xe   :  { %p4728_p3 = por %p4727_p2, %p4726_p1 }
  0x10   :  { %p4729_p4 = pnand %p4728_p3, %p4722_p0 }
  0x12   :  { %4732 = shalt.err (!%p4729_p4)
}
  0x13   :  { %s5011_s26 = smov 64   ;;  %s5012_s27 = smov 4  }
  0x14   :  { %52 = dma.hbm_to_vmem [thread:$0]  %s5627_s1, 128, %s47_s22, [#allocation6], %s5011_s26, %s5011_s26, %s5012_s27  }
  0x15   :  { %s4741_s30 = scalar_lea.vmem %s71_s24, 128  ;;  %p4746_p6 = scmp.lt.s32.totalorder %s71_s24, %s71_s24 }
  0x16   :  { %p4742_p5 = scmp.ne.s32.totalorder %s71_s24, %s4741_s30  ;;  %p4747_p7 = scmp.lt.s32.totalorder %s4741_s30, %s4741_s30 }
  0x18   :  { %p4748_p8 = por %p4747_p7, %p4746_p6 }
  0x1a   :  { %p4749_p9 = pnand %p4748_p8, %p4742_p5 }
  0x1c   :  { %4752 = shalt.err (!%p4749_p9)
}
  0x1d   :  { %76 = dma.hbm_to_vmem [thread:$0]  %s5629_s3, 128, %s71_s24, [#allocation9], %s5011_s26, %s5011_s26, %s5012_s27  }
  0x1e   :  { %s5013_s18 = smov [#allocation11]   ;;  %s5014_s20 = smov [#allocation14]  }
  0x1f   :  { %s94_s19 = sshll.u32 %s5013_s18, 4  ;;  %s119_s21 = sshll.u32 %s5014_s20, 4  ;;  %s95_s19 = int_to_ptr.vmem [resolvable:$true] %s94_s19  ;;  %s120_s21 = int_to_ptr.vmem [resolvable:$true] %s119_s21 }
  0x20   :  { %s4761_s1 = scalar_lea.vmem %s95_s19, 1024  ;;  %p4766_p11 = scmp.lt.s32.totalorder %s95_s19, %s95_s19 }
  0x21   :  { %p4762_p10 = scmp.ne.s32.totalorder %s95_s19, %s4761_s1  ;;  %p4767_p12 = scmp.lt.s32.totalorder %s4761_s1, %s4761_s1 }
  0x23   :  { %p4768_p13 = por %p4767_p12, %p4766_p11 }
  0x25   :  { %p4769_p0 = pnand %p4768_p13, %p4762_p10 }
  0x27   :  { %4772 = shalt.err (!%p4769_p0)
}
  0x28   :  { %100 = dma.hbm_to_vmem [thread:$0]  %s5631_s5, 1024, %s95_s19, [#allocation12], %s5011_s26, %s5011_s26, %s5012_s27  }
  0x29   :  { %s4781_s3 = scalar_lea.vmem %s120_s21, 16  ;;  %s4785_s24 = scalar_lea.vmem %s120_s21, 32 }
  0x2a   :  { %p4782_p1 = scmp.ne.s32.totalorder %s120_s21, %s4781_s3  ;;  %p4786_p2 = scmp.lt.s32.totalorder %s120_s21, %s120_s21 }
  0x2b   :  { %p4787_p3 = scmp.lt.s32.totalorder %s4785_s24, %s4781_s3 }
  0x2d   :  { %p4788_p4 = por %p4787_p3, %p4786_p2 }
  0x2f   :  { %p4789_p5 = pnand %p4788_p4, %p4782_p1 }
  0x31   :  { %4792 = shalt.err (!%p4789_p5)
}
  0x32   :  { %122 = dma.hbm_to_vmem [thread:$0]  %s5633_s7, 16, %s120_s21, [#allocation15]  }
  0x33   :  { %s5015_s29 = smov [#allocation17]   ;;  %s5016_s0 = smov [#allocation20]  }
  0x34   :  { %s140_s30 = sshll.u32 %s5015_s29, 4  ;;  %s168_s17 = sshll.u32 %s5016_s0, 4  ;;  %s141_s30 = int_to_ptr.vmem [resolvable:$true] %s140_s30  ;;  %s169_s17 = int_to_ptr.vmem [resolvable:$true] %s168_s17 }
  0x35   :  { %s4801_s18 = scalar_lea.vmem %s141_s30, 8192  ;;  %p4806_p7 = scmp.lt.s32.totalorder %s141_s30, %s141_s30 }
  0x36   :  { %p4802_p6 = scmp.ne.s32.totalorder %s141_s30, %s4801_s18  ;;  %p4807_p8 = scmp.lt.s32.totalorder %s4801_s18, %s4801_s18 }
  0x38   :  { %p4808_p9 = por %p4807_p8, %p4806_p7 }
  0x3a   :  { %p4809_p10 = pnand %p4808_p9, %p4802_p6 }
  0x3c   :  { %4812 = shalt.err (!%p4809_p10)
}
  0x3d   :  { %s5017_s5 = smov 512   ;;  %s5018_s19 = smov 32  }
  0x3e   :  { %146 = dma.hbm_to_vmem [thread:$0]  %s5635_s9, 8192, %s141_s30, [#allocation18], %s5017_s5, %s5017_s5, %s5018_s19  }
  0x3f   :  { %s4821_s21 = scalar_lea.vmem %s169_s17, 1024  ;;  %p4826_p12 = scmp.lt.s32.totalorder %s169_s17, %s169_s17 }
  0x40   :  { %p4822_p11 = scmp.ne.s32.totalorder %s169_s17, %s4821_s21  ;;  %p4827_p13 = scmp.lt.s32.totalorder %s4821_s21, %s4821_s21 }
  0x42   :  { %p4828_p0 = por %p4827_p13, %p4826_p12 }
  0x44   :  { %p4829_p1 = pnand %p4828_p0, %p4822_p11 }
  0x46   :  { %4832 = shalt.err (!%p4829_p1)
}
  0x47   :  { %174 = dma.hbm_to_vmem [thread:$0]  %s5639_s13, 1024, %s169_s17, [#allocation21], %s5011_s26, %s5011_s26, %s5012_s27  }
  0x48   :  { %s5019_s23 = smov [#allocation2]   ;;  %s5020_s24 = smov [#allocation7]  }
  0x49   :  { %s34_s3 = sshll.u32 %s5019_s23, 4  ;;  %s58_s25 = sshll.u32 %s5020_s24, 4  ;;  %s35_s3 = int_to_ptr.vmem [resolvable:$true] %s34_s3  ;;  %s59_s25 = int_to_ptr.vmem [resolvable:$true] %s58_s25 }
  0x4a   :  { %s4841_s9 = scalar_lea.vmem %s35_s3, 128  ;;  %p4846_p3 = scmp.lt.s32.totalorder %s35_s3, %s35_s3 }
  0x4b   :  { %p4842_p2 = scmp.ne.s32.totalorder %s35_s3, %s4841_s9  ;;  %p4847_p4 = scmp.lt.s32.totalorder %s4841_s9, %s4841_s9 }
  0x4d   :  { %p4848_p5 = por %p4847_p4, %p4846_p3 }
  0x4f   :  { %p4849_p6 = pnand %p4848_p5, %p4842_p2 }
  0x51   :  { %4852 = shalt.err (!%p4849_p6)
}
  0x52   :  { %s5644_s30 = sld [smem:[#allocation32_spill]]  ;;  %s4861_s13 = scalar_lea.vmem %s59_s25, 128 }
  0x53   :  { %p4862_p7 = scmp.ne.s32.totalorder %s59_s25, %s4861_s13  ;;  %p4866_p8 = scmp.lt.s32.totalorder %s59_s25, %s59_s25 }
  0x54   :  { %p4867_p9 = scmp.lt.s32.totalorder %s4861_s13, %s4861_s13 }
  0x56   :  { %p4868_p10 = por %p4867_p9, %p4866_p8 }
  0x58   :  { %40 = dma.hbm_to_vmem [thread:$0]  %s5644_s30, 128, %s35_s3, [#allocation3], %s5011_s26, %s5011_s26, %s5012_s27  }
  0x59   :  { %p4869_p11 = pnand %p4868_p10, %p4862_p7 }
  0x5b   :  { %4872 = shalt.err (!%p4869_p11)
}
  0x5c   :  { %64 = dma.hbm_to_vmem [thread:$0]  %s5628_s2, 128, %s59_s25, [#allocation6], %s5011_s26, %s5011_s26, %s5012_s27  }
  0x5d   :  { %s5021_s18 = smov [#allocation10]   ;;  %s5022_s7 = smov [#allocation13]  }
  0x5e   :  { %s82_s20 = sshll.u32 %s5021_s18, 4  ;;  %s106_s21 = sshll.u32 %s5022_s7, 4  ;;  %s83_s20 = int_to_ptr.vmem [resolvable:$true] %s82_s20  ;;  %s107_s21 = int_to_ptr.vmem [resolvable:$true] %s106_s21 }
  0x5f   :  { %s4881_s1 = scalar_lea.vmem %s83_s20, 1024  ;;  %p4886_p13 = scmp.lt.s32.totalorder %s83_s20, %s83_s20 }
  0x60   :  { %p4882_p12 = scmp.ne.s32.totalorder %s83_s20, %s4881_s1  ;;  %p4887_p0 = scmp.lt.s32.totalorder %s4881_s1, %s4881_s1 }
  0x62   :  { %p4888_p1 = por %p4887_p0, %p4886_p13 }
  0x64   :  { %p4889_p2 = pnand %p4888_p1, %p4882_p12 }
  0x66   :  { %4892 = shalt.err (!%p4889_p2)
}
  0x67   :  { %88 = dma.hbm_to_vmem [thread:$0]  %s5630_s4, 1024, %s83_s20, [#allocation9], %s5011_s26, %s5011_s26, %s5012_s27  }
  0x68   :  { %s4901_s2 = scalar_lea.vmem %s107_s21, 1024  ;;  %p4906_p4 = scmp.lt.s32.totalorder %s107_s21, %s107_s21 }
  0x69   :  { %p4902_p3 = scmp.ne.s32.totalorder %s107_s21, %s4901_s2  ;;  %p4907_p5 = scmp.lt.s32.totalorder %s4901_s2, %s4901_s2 }
  0x6b   :  { %p4908_p6 = por %p4907_p5, %p4906_p4 }
  0x6d   :  { %p4909_p7 = pnand %p4908_p6, %p4902_p3 }
  0x6f   :  { %4912 = shalt.err (!%p4909_p7)
}
  0x70   :  { %112 = dma.hbm_to_vmem [thread:$0]  %s5632_s6, 1024, %s107_s21, [#allocation12], %s5011_s26, %s5011_s26, %s5012_s27  }
  0x71   :  { %s5023_s25 = smov [#allocation16]   ;;  %s5024_s28 = smov [#allocation19]  }
  0x72   :  { %s128_s9 = sshll.u32 %s5023_s25, 4  ;;  %s154_s29 = sshll.u32 %s5024_s28, 4  ;;  %s129_s9 = int_to_ptr.vmem [resolvable:$true] %s128_s9  ;;  %s155_s29 = int_to_ptr.vmem [resolvable:$true] %s154_s29 }
  0x73   :  { %s4921_s4 = scalar_lea.vmem %s129_s9, 8192  ;;  %p4926_p9 = scmp.lt.s32.totalorder %s129_s9, %s129_s9 }
  0x74   :  { %p4922_p8 = scmp.ne.s32.totalorder %s129_s9, %s4921_s4  ;;  %p4927_p10 = scmp.lt.s32.totalorder %s4921_s4, %s4921_s4 }
  0x76   :  { %p4928_p11 = por %p4927_p10, %p4926_p9 }
  0x78   :  { %p4929_p12 = pnand %p4928_p11, %p4922_p8 }
  0x7a   :  { %4932 = shalt.err (!%p4929_p12)
}
  0x7b   :  { %134 = dma.hbm_to_vmem [thread:$0]  %s5634_s8, 8192, %s129_s9, [#allocation15], %s5017_s5, %s5017_s5, %s5018_s19  }
  0x7c   :  { %s4941_s6 = scalar_lea.vmem %s155_s29, 8192  ;;  %p4946_p0 = scmp.lt.s32.totalorder %s155_s29, %s155_s29 }
  0x7d   :  { %p4942_p13 = scmp.ne.s32.totalorder %s155_s29, %s4941_s6  ;;  %p4947_p1 = scmp.lt.s32.totalorder %s4941_s6, %s4941_s6 }
  0x7f   :  { %p4948_p2 = por %p4947_p1, %p4946_p0 }
  0x81   :  { %p4949_p3 = pnand %p4948_p2, %p4942_p13 }
  0x83   :  { %4952 = shalt.err (!%p4949_p3)
}
  0x84   :  { %160 = dma.hbm_to_vmem [thread:$0]  %s5637_s11, 8192, %s155_s29, [#allocation18], %s5017_s5, %s5017_s5, %s5018_s19  }
  0x85   :  { %s5025_s18 = smov [#allocation22]  }
  0x86   :  { %s180_s20 = sshll.u32 %s5025_s18, 4  ;;  %s181_s20 = int_to_ptr.vmem [resolvable:$true] %s180_s20 }
  0x87   :  { %s4961_s7 = scalar_lea.vmem %s181_s20, 1024  ;;  %p4966_p5 = scmp.lt.s32.totalorder %s181_s20, %s181_s20 }
  0x88   :  { %p4962_p4 = scmp.ne.s32.totalorder %s181_s20, %s4961_s7  ;;  %p4967_p6 = scmp.lt.s32.totalorder %s4961_s7, %s4961_s7 }
  0x8a   :  { %p4968_p7 = por %p4967_p6, %p4966_p5 }
  0x8c   :  { %p4969_p8 = pnand %p4968_p7, %p4962_p4 }
  0x8e   :  { %4972 = shalt.err (!%p4969_p8)
}
  0x8f   :  { %186 = dma.hbm_to_vmem [thread:$0]  %s5640_s14, 1024, %s181_s20, [#allocation21], %s5011_s26, %s5011_s26, %s5012_s27  }
  0x90   :  { %4993 = dma.done.wait [#allocation3], 128  }
  0x91   :  { %4994 = vsyncadd [#allocation3], 4294967168 }
  0x92   :  { %4995 = dma.done.wait [#allocation6], 256  }
  0x93   :  { %4996 = vsyncadd [#allocation6], 4294967040 }
  0x94   :  { %4997 = dma.done.wait [#allocation9], 1152  }
  0x95   :  { %4998 = vsyncadd [#allocation9], 4294966144 }
  0x96   :  { %4999 = dma.done.wait [#allocation12], 2048  }
  0x97   :  { %5000 = vsyncadd [#allocation12], 4294965248 }
  0x98   :  { %5001 = dma.done.wait [#allocation15], 8208  }
  0x99   :  { %5002 = vsyncadd [#allocation15], 4294959088 }
  0x9a   :  { %5003 = dma.done.wait [#allocation18], 16384  }
  0x9b   :  { %5004 = vsyncadd [#allocation18], 4294950912 }
  0x9c   :  { %5005 = dma.done.wait [#allocation21], 2048  }
  0x9d   :  { %5006 = vsyncadd [#allocation21], 4294965248  ;;  %v5026_v0 = vmov 0.0   ;;  %vm5027_vm0 = vmmov 0   ;;  %v4665_v1 = vld [vmem:[#allocation11 + $0x38] sm:$0xff]   ;;  %v4667_v3 = vld [vmem:[#allocation11 + $0x30] sm:$0xff]  }
  0x9e   :  { %4063 = vmatprep.subr.bf16.mxu0 %v5026_v0  ;;  %4083 = vmatprep.subr.bf16.mxu1 %v5026_v0  ;;  %v4666_v2 = vld [vmem:[#allocation10 + $0x38] sm:$0xff]   ;;  %v4668_v4 = vld [vmem:[#allocation10 + $0x30] sm:$0xff]   ;;  %v4669_v5 = vld [vmem:[#allocation11 + $0x28] sm:$0xff]   ;;  %s5028_s19 = smov [#allocation23]  }
  0x9f   :  { %4079 = vmatprep.mubr.msk.bf16.mxu0 %vm5027_vm0, %v5026_v0  ;;  %4099 = vmatprep.mubr.msk.bf16.mxu1 %vm5027_vm0, %v5026_v0  ;;  %v4670_v6 = vld [vmem:[#allocation10 + $0x28] sm:$0xff]   ;;  %v4671_v7 = vld [vmem:[#allocation11 + $0x20] sm:$0xff]   ;;  %v4673_v9 = vld [vmem:[#allocation11 + $0x18] sm:$0xff]   ;;  %s3530_s1 = sshll.u32 %s5028_s19, 4  ;;  %s3531_s1 = int_to_ptr.vmem [resolvable:$true] %s3530_s1 }
  0xa0   :  { %4064 = vmatpush3.bf16.msra.mxu0 %v4665_v1  ;;  %4084 = vmatpush3.bf16.msra.mxu1 %v4666_v2  ;;  %v4672_v8 = vld [vmem:[#allocation10 + $0x20] sm:$0xff]   ;;  %v4674_v10 = vld [vmem:[#allocation10 + $0x18] sm:$0xff]   ;;  %v4675_v11 = vld [vmem:[#allocation11 + $0x10] sm:$0xff]   ;;  %s4973_s22 = scalar_lea.vmem %s3531_s1, 256  ;;  %p4978_p10 = scmp.lt.s32.totalorder %s3531_s1, %s3531_s1 }
  0xa1   :  { %4065 = vmatprep.subr.bf16.mxu0 %v5026_v0  ;;  %4085 = vmatprep.subr.bf16.mxu1 %v5026_v0  ;;  %v4676_v12 = vld [vmem:[#allocation10 + $0x10] sm:$0xff]   ;;  %v4677_v13 = vld [vmem:[#allocation11 + $0x8] sm:$0xff]   ;;  %v4679_v15 = vld [vmem:[#allocation11] sm:$0xff]   ;;  %p4974_p9 = scmp.ne.s32.totalorder %s3531_s1, %s4973_s22  ;;  %p4979_p11 = scmp.lt.s32.totalorder %s4973_s22, %s4973_s22 }
  0xa2   :  { %v4678_v14 = vld [vmem:[#allocation10 + $0x8] sm:$0xff]   ;;  %v4680_v16 = vld [vmem:[#allocation10] sm:$0xff]   ;;  %v4681_v17 = vld [vmem:[#allocation7] sm:$0xff]  }
  0xa3   :  { %v4682_v18 = vld [vmem:[#allocation5] sm:$0xff]   ;;  %v4683_v19 = vld [vmem:[#allocation13 + $0x38] sm:$0xff]   ;;  %v4684_v20 = vld [vmem:[#allocation13 + $0x30] sm:$0xff]   ;;  %p4980_p12 = por %p4979_p11, %p4978_p10 }
  0xa4   :  { %4066 = vmatpush3.bf16.msra.mxu0 %v4667_v3  ;;  %4086 = vmatpush3.bf16.msra.mxu1 %v4668_v4  ;;  %v4685_v21 = vld [vmem:[#allocation13 + $0x28] sm:$0xff]   ;;  %v4686_v22 = vld [vmem:[#allocation13 + $0x20] sm:$0xff]   ;;  %v4687_v23 = vld [vmem:[#allocation13 + $0x18] sm:$0xff]  }
  0xa5   :  { %4067 = vmatprep.subr.bf16.mxu0 %v5026_v0  ;;  %4087 = vmatprep.subr.bf16.mxu1 %v5026_v0  ;;  %v4688_v24 = vld [vmem:[#allocation13 + $0x10] sm:$0xff]   ;;  %v4689_v25 = vld [vmem:[#allocation13 + $0x8] sm:$0xff]   ;;  %v4690_v26 = vld [vmem:[#allocation13] sm:$0xff]   ;;  %p4981_p13 = pnand %p4980_p12, %p4974_p9 }
  0xa6   :  { %v4691_v27 = vld [vmem:[#allocation8] sm:$0xff]   ;;  %v599_v28 = vld [vmem:[#allocation16 + $0x1c0] sm:$0xf] }
  0xa7   :  { %v600_v29 = vld [vmem:[#allocation16 + $0x1e0] sm:$0xf] }
  0xa8   :  { %4068 = vmatpush3.bf16.msra.mxu0 %v4669_v5  ;;  %4088 = vmatpush3.bf16.msra.mxu1 %v4670_v6  ;;  %v597_v30 = vld [vmem:[#allocation16 + $0x180] sm:$0xf]  ;;  %v3584_v31 = vcombine.low %v599_v28, %v600_v29  ;;  %v816_v29 = vld [vmem:[#allocation16 + $0x84] sm:$0xf] }
  0xa9   :  { %4069 = vmatprep.subr.bf16.mxu0 %v5026_v0  ;;  %4089 = vmatprep.subr.bf16.mxu1 %v5026_v0  ;;  %v598_v32 = vld [vmem:[#allocation16 + $0x1a0] sm:$0xf] }
  0xaa   :  { %v718_v33 = vld [vmem:[#allocation17 + $0x1c0] sm:$0xf]  ;;  %v3583_v35 = vcombine.low %v597_v30, %v598_v32  ;;  %v817_v30 = vld [vmem:[#allocation16 + $0xa4] sm:$0xf] }
  0xab   :  { %v719_v34 = vld [vmem:[#allocation17 + $0x1e0] sm:$0xf]  ;;  %v814_v32 = vld [vmem:[#allocation16 + $0x44] sm:$0xf] }
  0xac   :  { %4070 = vmatpush3.bf16.msra.mxu0 %v4671_v7  ;;  %4090 = vmatpush3.bf16.msra.mxu1 %v4672_v8  ;;  %v3593_v36 = vcombine.low %v718_v33, %v719_v34  ;;  %v716_v37 = vld [vmem:[#allocation17 + $0x180] sm:$0xf]  ;;  %v815_v33 = vld [vmem:[#allocation16 + $0x64] sm:$0xf] }
  0xad   :  { %4071 = vmatprep.subr.bf16.mxu0 %v5026_v0  ;;  %4091 = vmatprep.subr.bf16.mxu1 %v5026_v0  ;;  %v717_v38 = vld [vmem:[#allocation17 + $0x1a0] sm:$0xf]  ;;  %v3595_v34 = vcombine.low %v814_v32, %v815_v33  ;;  %v1495_v32 = vld [vmem:[#allocation16 + $0x1d0] sm:$0xf] }
  0xae   :  { %v595_v39 = vld [vmem:[#allocation16 + $0x140] sm:$0xf]  ;;  %v3592_v41 = vcombine.low %v716_v37, %v717_v38  ;;  %v1049_v38 = vld [vmem:[#allocation16 + $0x1c8] sm:$0xf]  ;;  %v1496_v33 = vld [vmem:[#allocation16 + $0x1f0] sm:$0xf] }
  0xaf   :  { %v596_v40 = vld [vmem:[#allocation16 + $0x160] sm:$0xf] }
  0xb0   :  { %4072 = vmatpush3.bf16.msra.mxu0 %v4673_v9  ;;  %4092 = vmatpush3.bf16.msra.mxu1 %v4674_v10  ;;  %v3582_v42 = vcombine.low %v595_v39, %v596_v40  ;;  %v593_v43 = vld [vmem:[#allocation16 + $0x100] sm:$0xf]  ;;  %v826_v9 = vld [vmem:[#allocation16 + $0x1c4] sm:$0xf]  ;;  %v1050_v39 = vld [vmem:[#allocation16 + $0x1e8] sm:$0xf] }
  0xb1   :  { %4073 = vmatprep.subr.bf16.mxu0 %v5026_v0  ;;  %4093 = vmatprep.subr.bf16.mxu1 %v5026_v0  ;;  %v594_v44 = vld [vmem:[#allocation16 + $0x120] sm:$0xf]  ;;  %v3618_v40 = vcombine.low %v1049_v38, %v1050_v39  ;;  %v1491_v38 = vld [vmem:[#allocation16 + $0x150] sm:$0xf] }
  0xb2   :  { %v3581_v45 = vcombine.low %v593_v43, %v594_v44  ;;  %v591_v46 = vld [vmem:[#allocation16 + $0xc0] sm:$0xf]  ;;  %v1045_v44 = vld [vmem:[#allocation16 + $0x148] sm:$0xf]  ;;  %v1492_v39 = vld [vmem:[#allocation16 + $0x170] sm:$0xf] }
  0xb3   :  { %v592_v47 = vld [vmem:[#allocation16 + $0xe0] sm:$0xf] }
  0xb4   :  { %4074 = vmatpush3.bf16.msra.mxu0 %v4675_v11  ;;  %4094 = vmatpush3.bf16.msra.mxu1 %v4676_v12  ;;  %v714_v48 = vld [vmem:[#allocation17 + $0x140] sm:$0xf]  ;;  %v3580_v49 = vcombine.low %v591_v46, %v592_v47  ;;  %v827_v12 = vld [vmem:[#allocation16 + $0x1e4] sm:$0xf]  ;;  %v1043_v47 = vld [vmem:[#allocation16 + $0x108] sm:$0xf] }
  0xb5   :  { %4075 = vmatprep.subr.bf16.mxu0 %v5026_v0  ;;  %4095 = vmatprep.subr.bf16.mxu1 %v5026_v0  ;;  %v715_v50 = vld [vmem:[#allocation17 + $0x160] sm:$0xf] }
  0xb6   :  { %v3591_v51 = vcombine.low %v714_v48, %v715_v50  ;;  %v589_v52 = vld [vmem:[#allocation16 + $0x80] sm:$0xf]  ;;  %v1044_v48 = vld [vmem:[#allocation16 + $0x128] sm:$0xf] }
  0xb7   :  { %v590_v53 = vld [vmem:[#allocation16 + $0xa0] sm:$0xf]  ;;  %v1041_v50 = vld [vmem:[#allocation16 + $0xc8] sm:$0xf] }
  0xb8   :  { %4076 = vmatpush3.bf16.msra.mxu0 %v4677_v13  ;;  %4096 = vmatpush3.bf16.msra.mxu1 %v4678_v14  ;;  %v712_v54 = vld [vmem:[#allocation17 + $0x100] sm:$0xf]  ;;  %v3579_v55 = vcombine.low %v589_v52, %v590_v53  ;;  %v3601_v13 = vcombine.low %v826_v9, %v827_v12  ;;  %v1039_v53 = vld [vmem:[#allocation16 + $0x88] sm:$0xf]  ;;  %v1267_v9 = vld [vmem:[#allocation16 + $0x12c] sm:$0xf] }
  0xb9   :  { %4077 = vmatprep.subr.bf16.mxu0 %v5026_v0  ;;  %4097 = vmatprep.subr.bf16.mxu1 %v5026_v0  ;;  %v713_v56 = vld [vmem:[#allocation17 + $0x120] sm:$0xf]  ;;  %v1264_v12 = vld [vmem:[#allocation16 + $0xcc] sm:$0xf] }
  0xba   :  { %v3590_v57 = vcombine.low %v712_v54, %v713_v56  ;;  %v587_v58 = vld [vmem:[#allocation16 + $0x40] sm:$0xf]  ;;  %v1040_v54 = vld [vmem:[#allocation16 + $0xa8] sm:$0xf] }
  0xbb   :  { %v588_v59 = vld [vmem:[#allocation16 + $0x60] sm:$0xf]  ;;  %v1037_v56 = vld [vmem:[#allocation16 + $0x48] sm:$0xf] }
  0xbc   :  { %4078 = vmatpush3.bf16.msra.mxu0 %v4679_v15  ;;  %4098 = vmatpush3.bf16.msra.mxu1 %v4680_v16  ;;  %v710_v60 = vld [vmem:[#allocation17 + $0xc0] sm:$0xf]  ;;  %v3578_v61 = vcombine.low %v587_v58, %v588_v59  ;;  %v824_v16 = vld [vmem:[#allocation16 + $0x184] sm:$0xf]  ;;  %v1035_v59 = vld [vmem:[#allocation16 + $0x8] sm:$0xf] }
  0xbd   :  { %4103 = vmatprep.subr.bf16.mxu0 %v5026_v0  ;;  %4123 = vmatprep.subr.bf16.mxu1 %v5026_v0  ;;  %v711_v62 = vld [vmem:[#allocation17 + $0xe0] sm:$0xf] }
  0xbe   :  { %v3589_v63 = vcombine.low %v710_v60, %v711_v62  ;;  %v585_v1 = vld [vmem:[#allocation16] sm:$0xf]  ;;  %v1036_v60 = vld [vmem:[#allocation16 + $0x28] sm:$0xf]  ;;  %v1272_v62 = vld [vmem:[#allocation16 + $0x1cc] sm:$0xf] }
  0xbf   :  { %4080 = vmatmul.mubr.bf16.vlgmr.msra.gmra.mxu0 %v4681_v17  ;;  %4100 = vmatmul.mubr.bf16.vlgmr.msra.gmra.mxu1 %v4682_v18  ;;  %v586_v2 = vld [vmem:[#allocation16 + $0x20] sm:$0xf]  ;;  %v825_v18 = vld [vmem:[#allocation16 + $0x1a4] sm:$0xf] }
  0xc0   :  { %4104 = vmatpush3.bf16.msra.mxu0 %v4683_v19  ;;  %4119 = vmatprep.mubr.msk.bf16.mxu0 %vm5027_vm0, %v5026_v0  ;;  %v708_v3 = vld [vmem:[#allocation17 + $0x80] sm:$0xf]  ;;  %v3577_v4 = vcombine.low %v585_v1, %v586_v2  ;;  %v3600_v19 = vcombine.low %v824_v16, %v825_v18  ;;  %v1270_v2 = vld [vmem:[#allocation16 + $0x18c] sm:$0xf] }
  0xc1   :  { %4105 = vmatprep.subr.bf16.mxu0 %v5026_v0  ;;  %4139 = vmatprep.mubr.msk.bf16.mxu1 %vm5027_vm0, %v5026_v0  ;;  %v709_v5 = vld [vmem:[#allocation17 + $0xa0] sm:$0xf] }
  0xc2   :  { %4124 = vmatpush3.bf16.msra.mxu1 %v3584_v31  ;;  %v3588_v6 = vcombine.low %v708_v3, %v709_v5  ;;  %v706_v7 = vld [vmem:[#allocation17 + $0x40] sm:$0xf]  ;;  %v3596_v31 = vcombine.low %v816_v29, %v817_v30  ;;  %v1271_v3 = vld [vmem:[#allocation16 + $0x1ac] sm:$0xf] }
  0xc3   :  { %4125 = vmatprep.subr.bf16.mxu1 %v5026_v0  ;;  %v707_v8 = vld [vmem:[#allocation17 + $0x60] sm:$0xf]  ;;  %v1268_v5 = vld [vmem:[#allocation16 + $0x14c] sm:$0xf] }
  0xc4   :  { %4106 = vmatpush3.bf16.msra.mxu0 %v4684_v20  ;;  %v5241_v10 = vld [vmem:[#allocation2] sm:$0xff]   ;;  %v3587_v11 = vcombine.low %v706_v7, %v707_v8  ;;  %v1266_v8 = vld [vmem:[#allocation16 + $0x10c] sm:$0xf] }
  0xc5   :  { %4107 = vmatprep.subr.bf16.mxu0 %v5026_v0  ;;  %v704_v14 = vld [vmem:[#allocation17] sm:$0xf]  ;;  %v822_v20 = vld [vmem:[#allocation16 + $0x144] sm:$0xf]  ;;  %v1258_v29 = vld [vmem:[#allocation16 + $0xc] sm:$0xf] }
  0xc6   :  { %4126 = vmatpush3.bf16.msra.mxu1 %v3583_v35  ;;  %v705_v15 = vld [vmem:[#allocation17 + $0x20] sm:$0xf]  ;;  %v812_v35 = vld [vmem:[#allocation16 + $0x4] sm:$0xf]  ;;  %v1259_v30 = vld [vmem:[#allocation16 + $0x2c] sm:$0xf] }
  0xc7   :  { %4127 = vmatprep.subr.bf16.mxu1 %v5026_v0  ;;  %v3586_v17 = vcombine.low %v704_v14, %v705_v15 }
  0xc8   :  { %4108 = vmatpush3.bf16.msra.mxu0 %v4685_v21  ;;  %v823_v21 = vld [vmem:[#allocation16 + $0x164] sm:$0xf] }
  0xc9   :  { %4109 = vmatprep.subr.bf16.mxu0 %v5026_v0 }
  0xca   :  { %4128 = vmatpush3.bf16.msra.mxu1 %v3582_v42  ;;  %v1048_v42 = vld [vmem:[#allocation16 + $0x1a8] sm:$0xf] }
  0xcb   :  { %4129 = vmatprep.subr.bf16.mxu1 %v5026_v0 }
  0xcc   :  { %4110 = vmatpush3.bf16.msra.mxu0 %v4686_v22  ;;  %v3599_v22 = vcombine.low %v822_v20, %v823_v21  ;;  %v1263_v20 = vld [vmem:[#allocation16 + $0xac] sm:$0xf] }
  0xcd   :  { %4111 = vmatprep.subr.bf16.mxu0 %v5026_v0 }
  0xce   :  { %4130 = vmatpush3.bf16.msra.mxu1 %v3581_v45  ;;  %v1046_v45 = vld [vmem:[#allocation16 + $0x168] sm:$0xf] }
  0xcf   :  { %4131 = vmatprep.subr.bf16.mxu1 %v5026_v0  ;;  %v3616_v46 = vcombine.low %v1045_v44, %v1046_v45  ;;  %v1487_v45 = vld [vmem:[#allocation16 + $0xd0] sm:$0xf] }
  0xd0   :  { %4112 = vmatpush3.bf16.msra.mxu0 %v4687_v23  ;;  %v820_v23 = vld [vmem:[#allocation16 + $0x104] sm:$0xf] }
  0xd1   :  { %4113 = vmatprep.subr.bf16.mxu0 %v5026_v0 }
  0xd2   :  { %4132 = vmatpush3.bf16.msra.mxu1 %v3580_v49  ;;  %v3615_v49 = vcombine.low %v1043_v47, %v1044_v48 }
  0xd3   :  { %4133 = vmatprep.subr.bf16.mxu1 %v5026_v0 }
  0xd4   :  { %4114 = vmatpush3.bf16.msra.mxu0 %v4688_v24  ;;  %v821_v24 = vld [vmem:[#allocation16 + $0x124] sm:$0xf] }
  0xd5   :  { %4115 = vmatprep.subr.bf16.mxu0 %v5026_v0 }
  0xd6   :  { %4134 = vmatpush3.bf16.msra.mxu1 %v3579_v55  ;;  %v3613_v55 = vcombine.low %v1039_v53, %v1040_v54  ;;  %v1485_v53 = vld [vmem:[#allocation16 + $0x90] sm:$0xf] }
  0xd7   :  { %4135 = vmatprep.subr.bf16.mxu1 %v5026_v0  ;;  %v1486_v54 = vld [vmem:[#allocation16 + $0xb0] sm:$0xf] }
  0xd8   :  { %4116 = vmatpush3.bf16.msra.mxu0 %v4689_v25  ;;  %v3598_v25 = vcombine.low %v820_v23, %v821_v24 }
  0xd9   :  { %4117 = vmatprep.subr.bf16.mxu0 %v5026_v0 }
  0xda   :  { %4136 = vmatpush3.bf16.msra.mxu1 %v3578_v61  ;;  %v3611_v61 = vcombine.low %v1035_v59, %v1036_v60 }
  0xdb   :  { %4137 = vmatprep.subr.bf16.mxu1 %v5026_v0 }
  0xdc   :  { %4118 = vmatpush3.bf16.msra.mxu0 %v4690_v26  ;;  %v818_v26 = vld [vmem:[#allocation16 + $0xc4] sm:$0xf] }
  0xdd   :  { %4143 = vmatprep.subr.bf16.mxu0 %v5026_v0 }
  0xde   :  { %4138 = vmatpush3.bf16.msra.mxu1 %v3577_v4  ;;  %v3634_v4 = vcombine.low %v1270_v2, %v1271_v3  ;;  %v1482_v2 = vld [vmem:[#allocation16 + $0x30] sm:$0xf] }
  0xdf   :  { %4120 = vmatmul.mubr.bf16.vlgmr.msra.gmra.mxu0 %v4691_v27  ;;  %4163 = vmatprep.subr.bf16.mxu1 %v5026_v0  ;;  %v819_v27 = vld [vmem:[#allocation16 + $0xe4] sm:$0xf] }
  0xe0   :  { %4159 = vmatprep.mubr.msk.bf16.mxu0 %vm5027_vm0, %v5026_v0  ;;  %4144 = vmatpush3.bf16.msra.mxu0 %v3593_v36  ;;  %v3597_v28 = vcombine.low %v818_v26, %v819_v27  ;;  %v813_v36 = vld [vmem:[#allocation16 + $0x24] sm:$0xf]  ;;  %v1260_v26 = vld [vmem:[#allocation16 + $0x4c] sm:$0xf] }
  0xe1   :  { %4145 = vmatprep.subr.bf16.mxu0 %v5026_v0  ;;  %4140 = vmatmul.mubr.bf16.vlgmr.msra.gmra.mxu1 %v5241_v10  ;;  %v3594_v37 = vcombine.low %v812_v35, %v813_v36  ;;  %v1261_v27 = vld [vmem:[#allocation16 + $0x6c] sm:$0xf]  ;;  %v1493_v35 = vld [vmem:[#allocation16 + $0x190] sm:$0xf] }
  0xe2   :  { %4164 = vmatpush3.bf16.msra.mxu1 %v3601_v13  ;;  %4179 = vmatprep.mubr.msk.bf16.mxu1 %vm5027_vm0, %v5026_v0  ;;  %v1265_v13 = vld [vmem:[#allocation16 + $0xec] sm:$0xf]  ;;  %v1494_v36 = vld [vmem:[#allocation16 + $0x1b0] sm:$0xf] }
  0xe3   :  { %4165 = vmatprep.subr.bf16.mxu1 %v5026_v0  ;;  %v3631_v15 = vcombine.low %v1264_v12, %v1265_v13 }
  0xe4   :  { %4146 = vmatpush3.bf16.msra.mxu0 %v3592_v41  ;;  %v1047_v41 = vld [vmem:[#allocation16 + $0x188] sm:$0xf] }
  0xe5   :  { %4147 = vmatprep.subr.bf16.mxu0 %v5026_v0  ;;  %v3617_v43 = vcombine.low %v1047_v41, %v1048_v42  ;;  %v1489_v41 = vld [vmem:[#allocation16 + $0x110] sm:$0xf] }
  0xe6   :  { %4166 = vmatpush3.bf16.msra.mxu1 %v3600_v19  ;;  %v1262_v19 = vld [vmem:[#allocation16 + $0x8c] sm:$0xf]  ;;  %v1490_v42 = vld [vmem:[#allocation16 + $0x130] sm:$0xf] }
  0xe7   :  { %4167 = vmatprep.subr.bf16.mxu1 %v5026_v0 }
  0xe8   :  { %4148 = vmatpush3.bf16.msra.mxu0 %v3591_v51  ;;  %v1042_v51 = vld [vmem:[#allocation16 + $0xe8] sm:$0xf] }
  0xe9   :  { %4149 = vmatprep.subr.bf16.mxu0 %v5026_v0  ;;  %v3614_v52 = vcombine.low %v1041_v50, %v1042_v51  ;;  %v3575_v50 = vld [vmem:[#allocation14] ss:$0 sm:$0xff] }
  0xea   :  { %4168 = vmatpush3.bf16.msra.mxu1 %v3599_v22  ;;  %v3630_v22 = vcombine.low %v1262_v19, %v1263_v20  ;;  %v1714_v19 = vld [vmem:[#allocation16 + $0x154] sm:$0xf] }
  0xeb   :  { %4169 = vmatprep.subr.bf16.mxu1 %v5026_v0  ;;  %v1715_v20 = vld [vmem:[#allocation16 + $0x174] sm:$0xf] }
  0xec   :  { %4150 = vmatpush3.bf16.msra.mxu0 %v3590_v57  ;;  %v1038_v57 = vld [vmem:[#allocation16 + $0x68] sm:$0xf] }
  0xed   :  { %4151 = vmatprep.subr.bf16.mxu0 %v5026_v0  ;;  %v3612_v58 = vcombine.low %v1037_v56, %v1038_v57  ;;  %v3647_v57 = vcombine.low %v1485_v53, %v1486_v54  ;;  %v925_v53 = vld [vmem:[#allocation17 + $0x4] sm:$0xf] }
  0xee   :  { %4170 = vmatpush3.bf16.msra.mxu1 %v3598_v25  ;;  %v926_v54 = vld [vmem:[#allocation17 + $0x24] sm:$0xf] }
  0xef   :  { %4171 = vmatprep.subr.bf16.mxu1 %v5026_v0 }
  0xf0   :  { %4152 = vmatpush3.bf16.msra.mxu0 %v3589_v63  ;;  %v1273_v63 = vld [vmem:[#allocation16 + $0x1ec] sm:$0xf] }
  0xf1   :  { %4153 = vmatprep.subr.bf16.mxu0 %v5026_v0  ;;  %v3635_v1 = vcombine.low %v1272_v62, %v1273_v63  ;;  %v1484_v62 = vld [vmem:[#allocation16 + $0x70] sm:$0xf] }
  0xf2   :  { %4172 = vmatpush3.bf16.msra.mxu1 %v3597_v28  ;;  %v3629_v28 = vcombine.low %v1260_v26, %v1261_v27  ;;  %v1713_v26 = vld [vmem:[#allocation16 + $0x134] sm:$0xf] }
  0xf3   :  { %4173 = vmatprep.subr.bf16.mxu1 %v5026_v0 }
  0xf4   :  { %4154 = vmatpush3.bf16.msra.mxu0 %v3588_v6  ;;  %v1269_v6 = vld [vmem:[#allocation16 + $0x16c] sm:$0xf] }
  0xf5   :  { %4155 = vmatprep.subr.bf16.mxu0 %v5026_v0  ;;  %v3633_v7 = vcombine.low %v1268_v5, %v1269_v6  ;;  %v1719_v5 = vld [vmem:[#allocation16 + $0x1f4] sm:$0xf] }
  0xf6   :  { %4174 = vmatpush3.bf16.msra.mxu1 %v3596_v31  ;;  %v3628_v31 = vcombine.low %v1258_v29, %v1259_v30  ;;  %v933_v29 = vld [vmem:[#allocation17 + $0x104] sm:$0xf] }
  0xf7   :  { %4175 = vmatprep.subr.bf16.mxu1 %v5026_v0  ;;  %v934_v30 = vld [vmem:[#allocation17 + $0x124] sm:$0xf] }
  0xf8   :  { %4156 = vmatpush3.bf16.msra.mxu0 %v3587_v11  ;;  %v3632_v11 = vcombine.low %v1266_v8, %v1267_v9  ;;  %v940_v8 = vld [vmem:[#allocation17 + $0x1e4] sm:$0xf]  ;;  %v1716_v9 = vld [vmem:[#allocation16 + $0x194] sm:$0xf] }
  0xf9   :  { %4157 = vmatprep.subr.bf16.mxu0 %v5026_v0 }
  0xfa   :  { %4176 = vmatpush3.bf16.msra.mxu1 %v3595_v34  ;;  %v3652_v34 = vcombine.low %v1495_v32, %v1496_v33  ;;  %v1711_v32 = vld [vmem:[#allocation16 + $0xf4] sm:$0xf] }
  0xfb   :  { %4177 = vmatprep.subr.bf16.mxu1 %v5026_v0 }
  0xfc   :  { %4158 = vmatpush3.bf16.msra.mxu0 %v3586_v17 }
  0xfd   :  { %4183 = vmatprep.subr.bf16.mxu0 %v5026_v0 }
  0xfe   :  { %4178 = vmatpush3.bf16.msra.mxu1 %v3594_v37  ;;  %v3651_v37 = vcombine.low %v1493_v35, %v1494_v36  ;;  %v931_v35 = vld [vmem:[#allocation17 + $0xc4] sm:$0xf] }
  0xff   :  { %4203 = vmatprep.subr.bf16.mxu1 %v5026_v0  ;;  %v932_v36 = vld [vmem:[#allocation17 + $0xe4] sm:$0xf] }
 0x101   :  { %4180 = vmatmul.mubr.bf16.vlgmr.msra.gmra.mxu1 %v5241_v10 }
 0x102   :  { %4204 = vmatpush3.bf16.msra.mxu1 %v3618_v40  ;;  %4219 = vmatprep.mubr.msk.bf16.mxu1 %vm5027_vm0, %v5026_v0  ;;  %v3650_v40 = vcombine.low %v1491_v38, %v1492_v39  ;;  %v1709_v38 = vld [vmem:[#allocation16 + $0xb4] sm:$0xf] }
 0x103   :  { %4205 = vmatprep.subr.bf16.mxu1 %v5026_v0 }
 0x106   :  { %4206 = vmatpush3.bf16.msra.mxu1 %v3617_v43  ;;  %v3649_v43 = vcombine.low %v1489_v41, %v1490_v42  ;;  %v929_v41 = vld [vmem:[#allocation17 + $0x84] sm:$0xf] }
 0x107   :  { %4207 = vmatprep.subr.bf16.mxu1 %v5026_v0  ;;  %v930_v42 = vld [vmem:[#allocation17 + $0xa4] sm:$0xf] }
 0x10a   :  { %4208 = vmatpush3.bf16.msra.mxu1 %v3616_v46  ;;  %v1488_v46 = vld [vmem:[#allocation16 + $0xf0] sm:$0xf] }
 0x10b   :  { %4209 = vmatprep.subr.bf16.mxu1 %v5026_v0  ;;  %v3648_v48 = vcombine.low %v1487_v45, %v1488_v46  ;;  %v3605_v46 = vcombine.low %v929_v41, %v930_v42  ;;  %v1149_v41 = vld [vmem:[#allocation17 + $0x28] sm:$0xf]  ;;  %v2164_v42 = vld [vmem:[#allocation16 + $0x1dc] sm:$0xf] }
 0x10e   :  { %4210 = vmatpush3.bf16.msra.mxu1 %v3615_v49 }
 0x10f   :  { %4211 = vmatprep.subr.bf16.mxu1 %v5026_v0 }
 0x112   :  { %4212 = vmatpush3.bf16.msra.mxu1 %v3614_v52 }
 0x113   :  { %4213 = vmatprep.subr.bf16.mxu1 %v5026_v0 }
 0x116   :  { %4214 = vmatpush3.bf16.msra.mxu1 %v3613_v55 }
 0x117   :  { %4215 = vmatprep.subr.bf16.mxu1 %v5026_v0 }
 0x11a   :  { %4216 = vmatpush3.bf16.msra.mxu1 %v3612_v58 }
 0x11b   :  { %4217 = vmatprep.subr.bf16.mxu1 %v5026_v0 }
 0x11e   :  { %4218 = vmatpush3.bf16.msra.mxu1 %v3611_v61  ;;  %v1483_v61 = vld [vmem:[#allocation16 + $0x50] sm:$0xf] }
 0x11f   :  { %4243 = vmatprep.subr.bf16.mxu1 %v5026_v0  ;;  %v3646_v63 = vcombine.low %v1483_v61, %v1484_v62  ;;  %v1939_v61 = vld [vmem:[#allocation16 + $0x198] sm:$0xf] }
 0x120   :  { %v1940_v62 = vld [vmem:[#allocation16 + $0x1b8] sm:$0xf] }
 0x121   :  { %4220 = vmatmul.mubr.bf16.vlgmr.msra.gmra.mxu1 %v5241_v10 }
 0x122   :  { %4244 = vmatpush3.bf16.msra.mxu1 %v3635_v1  ;;  %4259 = vmatprep.mubr.msk.bf16.mxu1 %vm5027_vm0, %v5026_v0  ;;  %v1481_v1 = vld [vmem:[#allocation16 + $0x10] sm:$0xf] }
 0x123   :  { %4245 = vmatprep.subr.bf16.mxu1 %v5026_v0  ;;  %v3645_v3 = vcombine.low %v1481_v1, %v1482_v2  ;;  %v1160_v2 = vld [vmem:[#allocation17 + $0x188] sm:$0xf] }
 0x126   :  { %4246 = vmatpush3.bf16.msra.mxu1 %v3634_v4  ;;  %v1718_v4 = vld [vmem:[#allocation16 + $0x1d4] sm:$0xf] }
 0x127   :  { %4247 = vmatprep.subr.bf16.mxu1 %v5026_v0  ;;  %v3669_v6 = vcombine.low %v1718_v4, %v1719_v5  ;;  %v1937_v4 = vld [vmem:[#allocation16 + $0x158] sm:$0xf] }
 0x128   :  { %v1938_v5 = vld [vmem:[#allocation16 + $0x178] sm:$0xf] }
 0x12a   :  { %4248 = vmatpush3.bf16.msra.mxu1 %v3633_v7  ;;  %v939_v7 = vld [vmem:[#allocation17 + $0x1c4] sm:$0xf] }
 0x12b   :  { %4249 = vmatprep.subr.bf16.mxu1 %v5026_v0 }
 0x12e   :  { %4250 = vmatpush3.bf16.msra.mxu1 %v3632_v11  ;;  %v1717_v11 = vld [vmem:[#allocation16 + $0x1b4] sm:$0xf] }
 0x12f   :  { %4251 = vmatprep.subr.bf16.mxu1 %v5026_v0  ;;  %v3668_v13 = vcombine.low %v1716_v9, %v1717_v11  ;;  %v1159_v9 = vld [vmem:[#allocation17 + $0x168] sm:$0xf]  ;;  %v1935_v11 = vld [vmem:[#allocation16 + $0x118] sm:$0xf] }
 0x132   :  { %4252 = vmatpush3.bf16.msra.mxu1 %v3631_v15  ;;  %v3610_v15 = vcombine.low %v939_v7, %v940_v8  ;;  %v1158_v8 = vld [vmem:[#allocation17 + $0x148] sm:$0xf] }
 0x133   :  { %4253 = vmatprep.subr.bf16.mxu1 %v5026_v0 }
 0x136   :  { %4254 = vmatpush3.bf16.msra.mxu1 %v3630_v22 }
 0x137   :  { %4255 = vmatprep.subr.bf16.mxu1 %v5026_v0 }
 0x13a   :  { %4256 = vmatpush3.bf16.msra.mxu1 %v3629_v28 }
 0x13b   :  { %4257 = vmatprep.subr.bf16.mxu1 %v5026_v0 }
 0x13e   :  { %4258 = vmatpush3.bf16.msra.mxu1 %v3628_v31  ;;  %v1710_v31 = vld [vmem:[#allocation16 + $0xd4] sm:$0xf] }
 0x13f   :  { %4283 = vmatprep.subr.bf16.mxu1 %v5026_v0  ;;  %v3665_v33 = vcombine.low %v1710_v31, %v1711_v32  ;;  %v1930_v31 = vld [vmem:[#allocation16 + $0x78] sm:$0xf] }
 0x141   :  { %4260 = vmatmul.mubr.bf16.vlgmr.msra.gmra.mxu1 %v5241_v10 }
 0x142   :  { %4284 = vmatpush3.bf16.msra.mxu1 %v3652_v34  ;;  %4299 = vmatprep.mubr.msk.bf16.mxu1 %vm5027_vm0, %v5026_v0  ;;  %v3607_v34 = vcombine.low %v933_v29, %v934_v30  ;;  %v1153_v29 = vld [vmem:[#allocation17 + $0xa8] sm:$0xf]  ;;  %v1929_v30 = vld [vmem:[#allocation16 + $0x58] sm:$0xf] }
 0x143   :  { %4285 = vmatprep.subr.bf16.mxu1 %v5026_v0  ;;  %v3680_v32 = vcombine.low %v1929_v30, %v1930_v31  ;;  %v1371_v31 = vld [vmem:[#allocation17 + $0xc] sm:$0xf] }
 0x146   :  { %4286 = vmatpush3.bf16.msra.mxu1 %v3651_v37  ;;  %v1708_v37 = vld [vmem:[#allocation16 + $0x94] sm:$0xf] }
 0x147   :  { %4287 = vmatprep.subr.bf16.mxu1 %v5026_v0  ;;  %v3664_v39 = vcombine.low %v1708_v37, %v1709_v38  ;;  %v1928_v37 = vld [vmem:[#allocation16 + $0x38] sm:$0xf] }
 0x14a   :  { %4288 = vmatpush3.bf16.msra.mxu1 %v3650_v40  ;;  %v3606_v40 = vcombine.low %v931_v35, %v932_v36  ;;  %v1151_v35 = vld [vmem:[#allocation17 + $0x68] sm:$0xf]  ;;  %v1927_v36 = vld [vmem:[#allocation16 + $0x18] sm:$0xf] }
 0x14b   :  { %4289 = vmatprep.subr.bf16.mxu1 %v5026_v0  ;;  %v3679_v38 = vcombine.low %v1927_v36, %v1928_v37  ;;  %v1609_v36 = vld [vmem:[#allocation17 + $0x1f0] sm:$0xf] }
 0x14e   :  { %4290 = vmatpush3.bf16.msra.mxu1 %v3649_v43  ;;  %v1706_v43 = vld [vmem:[#allocation16 + $0x54] sm:$0xf] }
 0x14f   :  { %4291 = vmatprep.subr.bf16.mxu1 %v5026_v0 }
 0x152   :  { %4292 = vmatpush3.bf16.msra.mxu1 %v3648_v48  ;;  %v928_v48 = vld [vmem:[#allocation17 + $0x64] sm:$0xf] }
 0x153   :  { %4293 = vmatprep.subr.bf16.mxu1 %v5026_v0 }
 0x156   :  { %4294 = vmatpush3.bf16.msra.mxu1 %v3647_v57 }
 0x157   :  { %4295 = vmatprep.subr.bf16.mxu1 %v5026_v0 }
 0x15a   :  { %4296 = vmatpush3.bf16.msra.mxu1 %v3646_v63  ;;  %v3685_v63 = vcombine.low %v1939_v61, %v1940_v62  ;;  %v1381_v62 = vld [vmem:[#allocation17 + $0x14c] sm:$0xf] }
 0x15b   :  { %4297 = vmatprep.subr.bf16.mxu1 %v5026_v0 }
 0x15e   :  { %4298 = vmatpush3.bf16.msra.mxu1 %v3645_v3  ;;  %v1161_v3 = vld [vmem:[#allocation17 + $0x1a8] sm:$0xf] }
 0x15f   :  { %4323 = vmatprep.subr.bf16.mxu1 %v5026_v0  ;;  %v3626_v7 = vcombine.low %v1160_v2, %v1161_v3  ;;  %v2159_v2 = vld [vmem:[#allocation16 + $0x13c] sm:$0xf] }
 0x161   :  { %4300 = vmatmul.mubr.bf16.vlgmr.msra.gmra.mxu1 %v5241_v10 }
 0x162   :  { %4324 = vmatpush3.bf16.msra.mxu1 %v3669_v6  ;;  %4339 = vmatprep.mubr.msk.bf16.mxu1 %vm5027_vm0, %v5026_v0  ;;  %v3684_v6 = vcombine.low %v1937_v4, %v1938_v5  ;;  %v1379_v5 = vld [vmem:[#allocation17 + $0x10c] sm:$0xf] }
 0x163   :  { %4325 = vmatprep.subr.bf16.mxu1 %v5026_v0 }
 0x166   :  { %4326 = vmatpush3.bf16.msra.mxu1 %v3668_v13 }
 0x167   :  { %4327 = vmatprep.subr.bf16.mxu1 %v5026_v0 }
 0x17f   :  { %v353_v14 = vpop.f32.mrf.mxu0  ;;  %v448_v16 = vpop.f32.mrf.mxu1 }
 0x180   :  { %v449_v44 = vadd.f32 %v448_v16, %v353_v14  ;;  %v937_v16 = vld [vmem:[#allocation17 + $0x184] sm:$0xf] }
 0x181   :  { %v4081_v17 = vpop.f32.mrf.mxu0  ;;  %v4101_v18 = vpop.f32.mrf.mxu1 }
 0x182   :  { %v938_v18 = vld [vmem:[#allocation17 + $0x1a4] sm:$0xf] }
 0x183   :  { %v356_v21 = vpop.f32.mrf.mxu0  ;;  %v451_v23 = vpop.f32.mrf.mxu1  ;;  %v3609_v22 = vcombine.low %v937_v16, %v938_v18  ;;  %v1157_v16 = vld [vmem:[#allocation17 + $0x128] sm:$0xf]  ;;  %v1933_v18 = vld [vmem:[#allocation16 + $0xd8] sm:$0xf] }
 0x184   :  { %v452_v52 = vadd.f32 %v451_v23, %v356_v21  ;;  %v3667_v21 = vcombine.low %v1714_v19, %v1715_v20  ;;  %v935_v23 = vld [vmem:[#allocation17 + $0x144] sm:$0xf]  ;;  %v1934_v19 = vld [vmem:[#allocation16 + $0xf8] sm:$0xf] }
 0x185   :  { %v4082_v24 = vpop.f32.mrf.mxu0  ;;  %v4102_v25 = vpop.f32.mrf.mxu1  ;;  %v3682_v20 = vcombine.low %v1933_v18, %v1934_v19  ;;  %v1375_v19 = vld [vmem:[#allocation17 + $0x8c] sm:$0xf] }
 0x186   :  { %v936_v24 = vld [vmem:[#allocation17 + $0x164] sm:$0xf]  ;;  %4328 = vmatpush3.bf16.msra.mxu1 %v3667_v21  ;;  %v1712_v25 = vld [vmem:[#allocation16 + $0x114] sm:$0xf] }
 0x187   :  { %4329 = vmatprep.subr.bf16.mxu1 %v5026_v0  ;;  %v3666_v27 = vcombine.low %v1712_v25, %v1713_v26  ;;  %v3608_v28 = vcombine.low %v935_v23, %v936_v24  ;;  %v1155_v23 = vld [vmem:[#allocation17 + $0xe8] sm:$0xf]  ;;  %v1931_v24 = vld [vmem:[#allocation16 + $0x98] sm:$0xf] }
 0x188   :  { %v1932_v25 = vld [vmem:[#allocation16 + $0xb8] sm:$0xf] }
 0x189   :  { %v3681_v26 = vcombine.low %v1931_v24, %v1932_v25  ;;  %v1373_v25 = vld [vmem:[#allocation17 + $0x4c] sm:$0xf] }
 0x18a   :  { %4330 = vmatpush3.bf16.msra.mxu1 %v3666_v27 }
 0x18b   :  { %4331 = vmatprep.subr.bf16.mxu1 %v5026_v0 }
 0x18e   :  { %4332 = vmatpush3.bf16.msra.mxu1 %v3665_v33 }
 0x18f   :  { %4333 = vmatprep.subr.bf16.mxu1 %v5026_v0 }
 0x192   :  { %4334 = vmatpush3.bf16.msra.mxu1 %v3664_v39 }
 0x193   :  { %4335 = vmatprep.subr.bf16.mxu1 %v5026_v0 }
 0x19f   :  { %v561_v47 = vpop.f32.mrf.mxu0 }
 0x1a0   :  { %v568_v49 = vadd.f32 %v561_v47, %v449_v44  ;;  %v1707_v44 = vld [vmem:[#allocation16 + $0x74] sm:$0xf]  ;;  %v927_v47 = vld [vmem:[#allocation17 + $0x44] sm:$0xf] }
 0x1a1   :  { %v4121_v51 = vpop.f32.mrf.mxu0  ;;  %v3663_v45 = vcombine.low %v1706_v43, %v1707_v44  ;;  %v2165_v43 = vld [vmem:[#allocation16 + $0x1fc] sm:$0xf] }
 0x1a2   :  { %v577_v55 = vadd.f32 %v3575_v50, %v568_v49  ;;  %v1704_v49 = vld [vmem:[#allocation16 + $0x14] sm:$0xf]  ;;  %v3703_v44 = vcombine.low %v2164_v42, %v2165_v43  ;;  %v1604_v43 = vld [vmem:[#allocation17 + $0x150] sm:$0xf] }
 0x1a3   :  { %v564_v56 = vpop.f32.mrf.mxu0  ;;  %4336 = vmatpush3.bf16.msra.mxu1 %v3663_v45 }
 0x1a4   :  { %v569_v58 = vadd.f32 %v564_v56, %v452_v52  ;;  %4709 = vtanh.f32 %v577_v55  ;;  %4337 = vmatprep.subr.bf16.mxu1 %v5026_v0  ;;  %v3604_v52 = vcombine.low %v927_v47, %v928_v48  ;;  %v1941_v55 = vld [vmem:[#allocation16 + $0x1d8] sm:$0xf]  ;;  %v1385_v47 = vld [vmem:[#allocation17 + $0x1cc] sm:$0xf] }
 0x1a5   :  { %v4122_v59 = vpop.f32.mrf.mxu0  ;;  %v1942_v56 = vld [vmem:[#allocation16 + $0x1f8] sm:$0xf]  ;;  %v1386_v48 = vld [vmem:[#allocation17 + $0x1ec] sm:$0xf] }
 0x1a6   :  { %v578_v60 = vadd.f32 %v3575_v50, %v569_v58  ;;  %v1705_v50 = vld [vmem:[#allocation16 + $0x34] sm:$0xf]  ;;  %v3686_v57 = vcombine.low %v1941_v55, %v1942_v56  ;;  %v3603_v58 = vcombine.low %v925_v53, %v926_v54  ;;  %v1162_v59 = vld [vmem:[#allocation17 + $0x1c8] sm:$0xf]  ;;  %v3644_v53 = vcombine.low %v1385_v47, %v1386_v48  ;;  %v1383_v54 = vld [vmem:[#allocation17 + $0x18c] sm:$0xf] }
 0x1a7   :  { %v3662_v51 = vcombine.low %v1704_v49, %v1705_v50  ;;  %v2162_v49 = vld [vmem:[#allocation16 + $0x19c] sm:$0xf]  ;;  %v1384_v56 = vld [vmem:[#allocation17 + $0x1ac] sm:$0xf]  ;;  %v1602_v47 = vld [vmem:[#allocation17 + $0x110] sm:$0xf] }
 0x1a8   :  { %4711 = vtanh.f32 %v578_v60  ;;  %v1163_v60 = vld [vmem:[#allocation17 + $0x1e8] sm:$0xf]  ;;  %v3643_v61 = vcombine.low %v1383_v54, %v1384_v56  ;;  %v1603_v48 = vld [vmem:[#allocation17 + $0x130] sm:$0xf] }
 0x1a9   :  { %4338 = vmatpush3.bf16.msra.mxu1 %v3662_v51  ;;  %v3627_v1 = vcombine.low %v1162_v59, %v1163_v60  ;;  %v2163_v51 = vld [vmem:[#allocation16 + $0x1bc] sm:$0xf]  ;;  %v1599_v54 = vld [vmem:[#allocation17 + $0xb0] sm:$0xf] }
 0x1aa   :  { %4363 = vmatprep.subr.bf16.mxu1 %v5026_v0 }
 0x1ac   :  { %4340 = vmatmul.mubr.bf16.vlgmr.msra.gmra.mxu1 %v5241_v10 }
 0x1ad   :  { %4364 = vmatpush3.bf16.msra.mxu1 %v3686_v57  ;;  %4379 = vmatprep.mubr.msk.bf16.mxu1 %vm5027_vm0, %v5026_v0  ;;  %v2160_v57 = vld [vmem:[#allocation16 + $0x15c] sm:$0xf] }
 0x1ae   :  { %4365 = vmatprep.subr.bf16.mxu1 %v5026_v0 }
 0x1b1   :  { %v4710_v12 = vpop.eup %4709  ;;  %4366 = vmatpush3.bf16.msra.mxu1 %v3685_v63  ;;  %v1382_v63 = vld [vmem:[#allocation17 + $0x16c] sm:$0xf] }
 0x1b2   :  { %4367 = vmatprep.subr.bf16.mxu1 %v5026_v0  ;;  %v3642_v4 = vcombine.low %v1381_v62, %v1382_v63 }
 0x1b5   :  { %v4712_v14 = vpop.eup %4711  ;;  %4368 = vmatpush3.bf16.msra.mxu1 %v3684_v6  ;;  %v1380_v6 = vld [vmem:[#allocation17 + $0x12c] sm:$0xf] }
 0x1b6   :  { %v5293_v17 = vpack.c.bf16 %v4712_v14, %v4710_v12  ;;  %v1936_v12 = vld [vmem:[#allocation16 + $0x138] sm:$0xf]  ;;  %4369 = vmatprep.subr.bf16.mxu1 %v5026_v0  ;;  %v3625_v14 = vcombine.low %v1158_v8, %v1159_v9  ;;  %v2157_v8 = vld [vmem:[#allocation16 + $0xfc] sm:$0xf] }
 0x1b7   :  { %v3683_v13 = vcombine.low %v1935_v11, %v1936_v12  ;;  %v3641_v11 = vcombine.low %v1379_v5, %v1380_v6  ;;  %v1377_v12 = vld [vmem:[#allocation17 + $0xcc] sm:$0xf]  ;;  %v1829_v6 = vld [vmem:[#allocation17 + $0x194] sm:$0xf] }
 0x1b8   :  { %4160 = vmatmul.mubr.bf16.vlgmr.msra.gmra.mxu0 %v5293_v17 }
 0x1b9   :  { %4184 = vmatpush3.bf16.msra.mxu0 %v3610_v15  ;;  %4199 = vmatprep.mubr.msk.bf16.mxu0 %vm5027_vm0, %v5026_v0  ;;  %v1156_v15 = vld [vmem:[#allocation17 + $0x108] sm:$0xf] }
 0x1ba   :  { %4185 = vmatprep.subr.bf16.mxu0 %v5026_v0  ;;  %4370 = vmatpush3.bf16.msra.mxu1 %v3683_v13  ;;  %v3624_v21 = vcombine.low %v1156_v15, %v1157_v16  ;;  %v1378_v13 = vld [vmem:[#allocation17 + $0xec] sm:$0xf]  ;;  %v2155_v15 = vld [vmem:[#allocation16 + $0xbc] sm:$0xf] }
 0x1bb   :  { %4371 = vmatprep.subr.bf16.mxu1 %v5026_v0  ;;  %v3640_v18 = vcombine.low %v1377_v12, %v1378_v13  ;;  %v1828_v12 = vld [vmem:[#allocation17 + $0x174] sm:$0xf] }
 0x1bd   :  { %4186 = vmatpush3.bf16.msra.mxu0 %v3609_v22  ;;  %v1154_v22 = vld [vmem:[#allocation17 + $0xc8] sm:$0xf] }
 0x1be   :  { %4187 = vmatprep.subr.bf16.mxu0 %v5026_v0  ;;  %4372 = vmatpush3.bf16.msra.mxu1 %v3682_v20  ;;  %v3623_v27 = vcombine.low %v1154_v22, %v1155_v23  ;;  %v1376_v20 = vld [vmem:[#allocation17 + $0xac] sm:$0xf]  ;;  %v2153_v22 = vld [vmem:[#allocation16 + $0x7c] sm:$0xf] }
 0x1bf   :  { %4373 = vmatprep.subr.bf16.mxu1 %v5026_v0  ;;  %v3639_v24 = vcombine.low %v1375_v19, %v1376_v20  ;;  %v1824_v19 = vld [vmem:[#allocation17 + $0xf4] sm:$0xf] }
 0x1c1   :  { %4188 = vmatpush3.bf16.msra.mxu0 %v3608_v28  ;;  %v1152_v28 = vld [vmem:[#allocation17 + $0x88] sm:$0xf] }
 0x1c2   :  { %4189 = vmatprep.subr.bf16.mxu0 %v5026_v0  ;;  %4374 = vmatpush3.bf16.msra.mxu1 %v3681_v26  ;;  %v3622_v33 = vcombine.low %v1152_v28, %v1153_v29  ;;  %v1374_v26 = vld [vmem:[#allocation17 + $0x6c] sm:$0xf]  ;;  %v2151_v28 = vld [vmem:[#allocation16 + $0x3c] sm:$0xf] }
 0x1c3   :  { %4375 = vmatprep.subr.bf16.mxu1 %v5026_v0  ;;  %v3638_v30 = vcombine.low %v1373_v25, %v1374_v26  ;;  %v1820_v25 = vld [vmem:[#allocation17 + $0x74] sm:$0xf] }
 0x1c5   :  { %4190 = vmatpush3.bf16.msra.mxu0 %v3607_v34  ;;  %v1150_v34 = vld [vmem:[#allocation17 + $0x48] sm:$0xf] }
 0x1c6   :  { %4191 = vmatprep.subr.bf16.mxu0 %v5026_v0  ;;  %4376 = vmatpush3.bf16.msra.mxu1 %v3680_v32  ;;  %v3621_v39 = vcombine.low %v1150_v34, %v1151_v35  ;;  %v1372_v32 = vld [vmem:[#allocation17 + $0x2c] sm:$0xf]  ;;  %v1608_v35 = vld [vmem:[#allocation17 + $0x1d0] sm:$0xf] }
 0x1c7   :  { %4377 = vmatprep.subr.bf16.mxu1 %v5026_v0 }
 0x1c9   :  { %4192 = vmatpush3.bf16.msra.mxu0 %v3606_v40  ;;  %v1148_v40 = vld [vmem:[#allocation17 + $0x8] sm:$0xf] }
 0x1ca   :  { %4193 = vmatprep.subr.bf16.mxu0 %v5026_v0  ;;  %4378 = vmatpush3.bf16.msra.mxu1 %v3679_v38  ;;  %v3620_v45 = vcombine.low %v1148_v40, %v1149_v41  ;;  %v3661_v38 = vcombine.low %v1608_v35, %v1609_v36  ;;  %v1606_v40 = vld [vmem:[#allocation17 + $0x190] sm:$0xf] }
 0x1cb   :  { %4403 = vmatprep.subr.bf16.mxu1 %v5026_v0  ;;  %v1607_v41 = vld [vmem:[#allocation17 + $0x1b0] sm:$0xf] }
 0x1cd   :  { %4194 = vmatpush3.bf16.msra.mxu0 %v3605_v46  ;;  %v5333_v46 = vpop.f32.mrf.mxu1  ;;  %4380 = vmatmul.mubr.bf16.vlgmr.msra.gmra.mxu1 %v5241_v10 }
 0x1ce   :  { %4195 = vmatprep.subr.bf16.mxu0 %v5026_v0  ;;  %4404 = vmatpush3.bf16.msra.mxu1 %v3703_v44  ;;  %v1605_v44 = vld [vmem:[#allocation17 + $0x170] sm:$0xf] }
 0x1cf   :  { %v4141_v50 = vpop.f32.mrf.mxu1  ;;  %4405 = vmatprep.subr.bf16.mxu1 %v5026_v0  ;;  %4419 = vmatprep.mubr.msk.bf16.mxu1 %vm5027_vm0, %v5026_v0 }
 0x1d0   :  { %v1600_v50 = vld [vmem:[#allocation17 + $0xd0] sm:$0xf] }
 0x1d1   :  { %4196 = vmatpush3.bf16.msra.mxu0 %v3604_v52  ;;  %v3702_v52 = vcombine.low %v2162_v49, %v2163_v51  ;;  %v5340_v55 = vpop.f32.mrf.mxu1  ;;  %v3658_v49 = vcombine.low %v1602_v47, %v1603_v48  ;;  %v1601_v51 = vld [vmem:[#allocation17 + $0xf0] sm:$0xf]  ;;  %v2046_v48 = vld [vmem:[#allocation17 + $0xd8] sm:$0xf] }
 0x1d2   :  { %4197 = vmatprep.subr.bf16.mxu0 %v5026_v0 }
 0x1d3   :  { %4406 = vmatpush3.bf16.msra.mxu1 %v3702_v52  ;;  %v4142_v59 = vpop.f32.mrf.mxu1  ;;  %v3657_v52 = vcombine.low %v1600_v50, %v1601_v51  ;;  %v2044_v51 = vld [vmem:[#allocation17 + $0x98] sm:$0xf] }
 0x1d4   :  { %4407 = vmatprep.subr.bf16.mxu1 %v5026_v0 }
 0x1d5   :  { %4198 = vmatpush3.bf16.msra.mxu0 %v3603_v58  ;;  %v2161_v58 = vld [vmem:[#allocation16 + $0x17c] sm:$0xf]  ;;  %v5360_v34 = vpop.f32.mrf.mxu1 }
 0x1d6   :  { %4223 = vmatprep.subr.bf16.mxu0 %v5026_v0  ;;  %v3701_v60 = vcombine.low %v2160_v57, %v2161_v58  ;;  %v1596_v57 = vld [vmem:[#allocation17 + $0x50] sm:$0xf] }
 0x1d7   :  { %v4181_v37 = vpop.f32.mrf.mxu1  ;;  %v1597_v58 = vld [vmem:[#allocation17 + $0x70] sm:$0xf] }
 0x1d8   :  { %4200 = vmatmul.mubr.bf16.vlgmr.msra.gmra.mxu0 %v5293_v17  ;;  %4408 = vmatpush3.bf16.msra.mxu1 %v3701_v60  ;;  %v3655_v59 = vcombine.low %v1596_v57, %v1597_v58  ;;  %v1594_v60 = vld [vmem:[#allocation17 + $0x10] sm:$0xf]  ;;  %v2052_v37 = vld [vmem:[#allocation17 + $0x198] sm:$0xf] }
 0x1d9   :  { %4224 = vmatpush3.bf16.msra.mxu0 %v3627_v1  ;;  %4239 = vmatprep.mubr.msk.bf16.mxu0 %vm5027_vm0, %v5026_v0  ;;  %v2158_v1 = vld [vmem:[#allocation16 + $0x11c] sm:$0xf]  ;;  %v2040_v58 = vld [vmem:[#allocation17 + $0x18] sm:$0xf] }
 0x1da   :  { %4225 = vmatprep.subr.bf16.mxu0 %v5026_v0  ;;  %4409 = vmatprep.subr.bf16.mxu1 %v5026_v0  ;;  %v3700_v3 = vcombine.low %v2158_v1, %v2159_v2  ;;  %v1831_v1 = vld [vmem:[#allocation17 + $0x1d4] sm:$0xf] }
 0x1db   :  { %v1832_v2 = vld [vmem:[#allocation17 + $0x1f4] sm:$0xf] }
 0x1dc   :  { %4410 = vmatpush3.bf16.msra.mxu1 %v3700_v3 }
 0x1dd   :  { %4226 = vmatpush3.bf16.msra.mxu0 %v3626_v7  ;;  %v2156_v7 = vld [vmem:[#allocation16 + $0xdc] sm:$0xf]  ;;  %4411 = vmatprep.subr.bf16.mxu1 %v5026_v0 }
 0x1de   :  { %4227 = vmatprep.subr.bf16.mxu0 %v5026_v0  ;;  %v3699_v9 = vcombine.low %v2156_v7, %v2157_v8  ;;  %v1830_v7 = vld [vmem:[#allocation17 + $0x1b4] sm:$0xf] }
 0x1e0   :  { %4412 = vmatpush3.bf16.msra.mxu1 %v3699_v9  ;;  %v3677_v9 = vcombine.low %v1829_v6, %v1830_v7 }
 0x1e1   :  { %4228 = vmatpush3.bf16.msra.mxu0 %v3625_v14  ;;  %v2154_v14 = vld [vmem:[#allocation16 + $0x9c] sm:$0xf]  ;;  %4413 = vmatprep.subr.bf16.mxu1 %v5026_v0 }
 0x1e2   :  { %4229 = vmatprep.subr.bf16.mxu0 %v5026_v0  ;;  %v3698_v16 = vcombine.low %v2154_v14, %v2155_v15  ;;  %v1825_v14 = vld [vmem:[#allocation17 + $0x114] sm:$0xf] }
 0x1e3   :  { %v1826_v15 = vld [vmem:[#allocation17 + $0x134] sm:$0xf] }
 0x1e4   :  { %4414 = vmatpush3.bf16.msra.mxu1 %v3698_v16  ;;  %v3675_v16 = vcombine.low %v1825_v14, %v1826_v15  ;;  %v2273_v15 = vld [vmem:[#allocation17 + $0x15c] sm:$0xf] }
 0x1e5   :  { %4230 = vmatpush3.bf16.msra.mxu0 %v3624_v21  ;;  %v2152_v21 = vld [vmem:[#allocation16 + $0x5c] sm:$0xf]  ;;  %4415 = vmatprep.subr.bf16.mxu1 %v5026_v0 }
 0x1e6   :  { %4231 = vmatprep.subr.bf16.mxu0 %v5026_v0  ;;  %v3697_v23 = vcombine.low %v2152_v21, %v2153_v22  ;;  %v1821_v21 = vld [vmem:[#allocation17 + $0x94] sm:$0xf] }
 0x1e7   :  { %v1822_v22 = vld [vmem:[#allocation17 + $0xb4] sm:$0xf] }
 0x1e8   :  { %4416 = vmatpush3.bf16.msra.mxu1 %v3697_v23  ;;  %v3673_v23 = vcombine.low %v1821_v21, %v1822_v22 }
 0x1e9   :  { %4232 = vmatpush3.bf16.msra.mxu0 %v3623_v27  ;;  %v2150_v27 = vld [vmem:[#allocation16 + $0x1c] sm:$0xf]  ;;  %4417 = vmatprep.subr.bf16.mxu1 %v5026_v0 }
 0x1ea   :  { %4233 = vmatprep.subr.bf16.mxu0 %v5026_v0  ;;  %v3696_v29 = vcombine.low %v2150_v27, %v2151_v28  ;;  %v1817_v27 = vld [vmem:[#allocation17 + $0x14] sm:$0xf] }
 0x1eb   :  { %v1818_v28 = vld [vmem:[#allocation17 + $0x34] sm:$0xf] }
 0x1ec   :  { %4418 = vmatpush3.bf16.msra.mxu1 %v3696_v29  ;;  %v3671_v29 = vcombine.low %v1817_v27, %v1818_v28  ;;  %v2270_v27 = vld [vmem:[#allocation17 + $0xfc] sm:$0xf] }
 0x1ed   :  { %4234 = vmatpush3.bf16.msra.mxu0 %v3622_v33  ;;  %4443 = vmatprep.subr.bf16.mxu1 %v5026_v0  ;;  %v3637_v33 = vcombine.low %v1371_v31, %v1372_v32  ;;  %v2054_v31 = vld [vmem:[#allocation17 + $0x1d8] sm:$0xf] }
 0x1ee   :  { %4235 = vmatprep.subr.bf16.mxu0 %v5026_v0  ;;  %v2055_v32 = vld [vmem:[#allocation17 + $0x1f8] sm:$0xf] }
 0x1ef   :  { %4420 = vmatmul.mubr.bf16.vlgmr.msra.gmra.mxu1 %v5241_v10  ;;  %v3660_v10 = vcombine.low %v1606_v40, %v1607_v41  ;;  %v3695_v35 = vcombine.low %v2054_v31, %v2055_v32  ;;  %v2265_v32 = vld [vmem:[#allocation17 + $0x5c] sm:$0xf] }
 0x1f0   :  { %4459 = vmatprep.mubr.msk.bf16.mxu1 %vm5027_vm0, %v5026_v0 }
 0x1f1   :  { %4236 = vmatpush3.bf16.msra.mxu0 %v3621_v39  ;;  %v5365_v39 = vpop.f32.mrf.mxu1 }
 0x1f2   :  { %4237 = vmatprep.subr.bf16.mxu0 %v5026_v0 }
 0x1f3   :  { %v4182_v42 = vpop.f32.mrf.mxu1 }
 0x1f4   :  { %v2050_v42 = vld [vmem:[#allocation17 + $0x158] sm:$0xf] }
 0x1f5   :  { %4238 = vmatpush3.bf16.msra.mxu0 %v3620_v45  ;;  %v3659_v45 = vcombine.low %v1604_v43, %v1605_v44  ;;  %v5377_v63 = vpop.f32.mrf.mxu1  ;;  %v2048_v44 = vld [vmem:[#allocation17 + $0x118] sm:$0xf] }
 0x1f6   :  { %4263 = vmatprep.subr.bf16.mxu0 %v5026_v0 }
 0x1f7   :  { %v4221_v3 = vpop.f32.mrf.mxu1 }
 0x1f8   :  { %4240 = vmatmul.mubr.bf16.vlgmr.msra.gmra.mxu0 %v5293_v17 }
 0x1f9   :  { %4264 = vmatpush3.bf16.msra.mxu0 %v3644_v53  ;;  %4279 = vmatprep.mubr.msk.bf16.mxu0 %vm5027_vm0, %v5026_v0  ;;  %v1598_v53 = vld [vmem:[#allocation17 + $0x90] sm:$0xf]  ;;  %v5380_v5 = vpop.f32.mrf.mxu1 }
 0x1fa   :  { %4265 = vmatprep.subr.bf16.mxu0 %v5026_v0  ;;  %v3656_v56 = vcombine.low %v1598_v53, %v1599_v54  ;;  %v2042_v54 = vld [vmem:[#allocation17 + $0x58] sm:$0xf] }
 0x1fb   :  { %v4222_v8 = vpop.f32.mrf.mxu1 }
 0x1fc   :  { %v2275_v8 = vld [vmem:[#allocation17 + $0x19c] sm:$0xf] }
 0x1fd   :  { %4266 = vmatpush3.bf16.msra.mxu0 %v3643_v61  ;;  %v1595_v61 = vld [vmem:[#allocation17 + $0x30] sm:$0xf] }
 0x1fe   :  { %4267 = vmatprep.subr.bf16.mxu0 %v5026_v0  ;;  %v3654_v62 = vcombine.low %v1594_v60, %v1595_v61 }
 0x201   :  { %4268 = vmatpush3.bf16.msra.mxu0 %v3642_v4  ;;  %v3678_v4 = vcombine.low %v1831_v1, %v1832_v2  ;;  %v2277_v1 = vld [vmem:[#allocation17 + $0x1dc] sm:$0xf] }
 0x202   :  { %4269 = vmatprep.subr.bf16.mxu0 %v5026_v0  ;;  %v2278_v2 = vld [vmem:[#allocation17 + $0x1fc] sm:$0xf] }
 0x203   :  { %v3712_v6 = vcombine.low %v2277_v1, %v2278_v2 }
 0x205   :  { %4270 = vmatpush3.bf16.msra.mxu0 %v3641_v11  ;;  %v1827_v11 = vld [vmem:[#allocation17 + $0x154] sm:$0xf] }
 0x206   :  { %4271 = vmatprep.subr.bf16.mxu0 %v5026_v0  ;;  %v3676_v13 = vcombine.low %v1827_v11, %v1828_v12 }
 0x209   :  { %4272 = vmatpush3.bf16.msra.mxu0 %v3640_v18  ;;  %v1823_v18 = vld [vmem:[#allocation17 + $0xd4] sm:$0xf] }
 0x20a   :  { %4273 = vmatprep.subr.bf16.mxu0 %v5026_v0  ;;  %v3674_v20 = vcombine.low %v1823_v18, %v1824_v19 }
 0x20d   :  { %4274 = vmatpush3.bf16.msra.mxu0 %v3639_v24  ;;  %v1819_v24 = vld [vmem:[#allocation17 + $0x54] sm:$0xf] }
 0x20e   :  { %4275 = vmatprep.subr.bf16.mxu0 %v5026_v0  ;;  %v3672_v26 = vcombine.low %v1819_v24, %v1820_v25  ;;  %v2272_v24 = vld [vmem:[#allocation17 + $0x13c] sm:$0xf] }
 0x211   :  { %4276 = vmatpush3.bf16.msra.mxu0 %v3638_v30  ;;  %v5392_v30 = vpop.f32.mrf.mxu1 }
 0x212   :  { %4277 = vmatprep.subr.bf16.mxu0 %v5026_v0 }
 0x215   :  { %4278 = vmatpush3.bf16.msra.mxu0 %v3637_v33  ;;  %v4261_v33 = vpop.f32.mrf.mxu1 }
 0x216   :  { %4303 = vmatprep.subr.bf16.mxu0 %v5026_v0  ;;  %v2266_v33 = vld [vmem:[#allocation17 + $0x7c] sm:$0xf] }
 0x217   :  { %v5395_v36 = vpop.f32.mrf.mxu1 }
 0x218   :  { %4280 = vmatmul.mubr.bf16.vlgmr.msra.gmra.mxu0 %v5293_v17 }
 0x219   :  { %4304 = vmatpush3.bf16.msra.mxu0 %v3661_v38  ;;  %4319 = vmatprep.mubr.msk.bf16.mxu0 %vm5027_vm0, %v5026_v0  ;;  %v2053_v38 = vld [vmem:[#allocation17 + $0x1b8] sm:$0xf]  ;;  %v4262_v40 = vpop.f32.mrf.mxu1 }
 0x21a   :  { %4305 = vmatprep.subr.bf16.mxu0 %v5026_v0  ;;  %v3694_v41 = vcombine.low %v2052_v37, %v2053_v38  ;;  %v2263_v37 = vld [vmem:[#allocation17 + $0x1c] sm:$0xf] }
 0x21b   :  { %v2264_v38 = vld [vmem:[#allocation17 + $0x3c] sm:$0xf] }
 0x21c   :  { %v3705_v40 = vcombine.low %v2263_v37, %v2264_v38  ;;  %v2494_v37 = vld [vmem:[#allocation19 + $0xc4] sm:$0xf] }
 0x21d   :  { %4306 = vmatpush3.bf16.msra.mxu0 %v3660_v10  ;;  %v2051_v10 = vld [vmem:[#allocation17 + $0x178] sm:$0xf]  ;;  %v2495_v38 = vld [vmem:[#allocation19 + $0xe4] sm:$0xf] }
 0x21e   :  { %4307 = vmatprep.subr.bf16.mxu0 %v5026_v0  ;;  %v3693_v43 = vcombine.low %v2050_v42, %v2051_v10  ;;  %v3602_v42 = vld [vmem:[%s5636_s10 + $0x1] ss:$0 sm:$0xff] }
 0x221   :  { %4308 = vmatpush3.bf16.msra.mxu0 %v3659_v45  ;;  %v2049_v45 = vld [vmem:[#allocation17 + $0x138] sm:$0xf]  ;;  %v5407_v61 = vpop.f32.mrf.mxu1 }
 0x222   :  { %4309 = vmatprep.subr.bf16.mxu0 %v5026_v0  ;;  %v3692_v47 = vcombine.low %v2048_v44, %v2049_v45 }
 0x223   :  { %v4301_v3 = vpop.f32.mrf.mxu1 }
 0x225   :  { %4310 = vmatpush3.bf16.msra.mxu0 %v3658_v49  ;;  %v2047_v49 = vld [vmem:[#allocation17 + $0xf8] sm:$0xf]  ;;  %v5414_v7 = vpop.f32.mrf.mxu1 }
 0x226   :  { %4311 = vmatprep.subr.bf16.mxu0 %v5026_v0  ;;  %v3691_v50 = vcombine.low %v2046_v48, %v2047_v49 }
 0x227   :  { %v4302_v11 = vpop.f32.mrf.mxu1 }
 0x228   :  { %v2388_v11 = vld [vmem:[#allocation19 + $0x1c0] sm:$0xf] }
 0x229   :  { %4312 = vmatpush3.bf16.msra.mxu0 %v3657_v52  ;;  %v2045_v52 = vld [vmem:[#allocation17 + $0xb8] sm:$0xf] }
 0x22a   :  { %4313 = vmatprep.subr.bf16.mxu0 %v5026_v0  ;;  %v3690_v53 = vcombine.low %v2044_v51, %v2045_v52 }
 0x22d   :  { %4314 = vmatpush3.bf16.msra.mxu0 %v3656_v56  ;;  %v2043_v56 = vld [vmem:[#allocation17 + $0x78] sm:$0xf] }
 0x22e   :  { %4315 = vmatprep.subr.bf16.mxu0 %v5026_v0  ;;  %v3689_v57 = vcombine.low %v2042_v54, %v2043_v56 }
 0x231   :  { %4316 = vmatpush3.bf16.msra.mxu0 %v3655_v59  ;;  %v2041_v59 = vld [vmem:[#allocation17 + $0x38] sm:$0xf] }
 0x232   :  { %4317 = vmatprep.subr.bf16.mxu0 %v5026_v0  ;;  %v3688_v60 = vcombine.low %v2040_v58, %v2041_v59 }
 0x235   :  { %4318 = vmatpush3.bf16.msra.mxu0 %v3654_v62  ;;  %v3585_v62 = vld [vmem:[%s5636_s10] ss:$0 sm:$0xff] }
 0x236   :  { %4343 = vmatprep.subr.bf16.mxu0 %v5026_v0  ;;  %v703_v18 = vadd.f32 %v3585_v62, %v5340_v55  ;;  %v2267_v55 = vld [vmem:[#allocation17 + $0x9c] sm:$0xf] }
 0x238   :  { %4320 = vmatmul.mubr.bf16.vlgmr.msra.gmra.mxu0 %v5293_v17 }
 0x239   :  { %4344 = vmatpush3.bf16.msra.mxu0 %v3678_v4  ;;  %4359 = vmatprep.mubr.msk.bf16.mxu0 %vm5027_vm0, %v5026_v0  ;;  %v702_v4 = vadd.f32 %v3585_v62, %v5333_v46 }
 0x23a   :  { %4345 = vmatprep.subr.bf16.mxu0 %v5026_v0 }
 0x23d   :  { %4346 = vmatpush3.bf16.msra.mxu0 %v3677_v9  ;;  %v2276_v9 = vld [vmem:[#allocation17 + $0x1bc] sm:$0xf] }
 0x23e   :  { %4347 = vmatprep.subr.bf16.mxu0 %v5026_v0  ;;  %v3711_v14 = vcombine.low %v2275_v8, %v2276_v9 }
 0x241   :  { %4348 = vmatpush3.bf16.msra.mxu0 %v3676_v13 }
 0x242   :  { %4349 = vmatprep.subr.bf16.mxu0 %v5026_v0 }
 0x245   :  { %4350 = vmatpush3.bf16.msra.mxu0 %v3675_v16  ;;  %v2274_v16 = vld [vmem:[#allocation17 + $0x17c] sm:$0xf] }
 0x246   :  { %4351 = vmatprep.subr.bf16.mxu0 %v5026_v0  ;;  %v3710_v21 = vcombine.low %v2273_v15, %v2274_v16  ;;  %v2387_v15 = vld [vmem:[#allocation19 + $0x1a0] sm:$0xf] }
 0x249   :  { %4352 = vmatpush3.bf16.msra.mxu0 %v3674_v20 }
 0x24a   :  { %4353 = vmatprep.subr.bf16.mxu0 %v5026_v0 }
 0x24d   :  { %4354 = vmatpush3.bf16.msra.mxu0 %v3673_v23  ;;  %v2271_v23 = vld [vmem:[#allocation17 + $0x11c] sm:$0xf] }
 0x24e   :  { %4355 = vmatprep.subr.bf16.mxu0 %v5026_v0  ;;  %v3709_v25 = vcombine.low %v2271_v23, %v2272_v24  ;;  %v2498_v23 = vld [vmem:[#allocation19 + $0x144] sm:$0xf] }
 0x24f   :  { %v2499_v24 = vld [vmem:[#allocation19 + $0x164] sm:$0xf] }
 0x251   :  { %4356 = vmatpush3.bf16.msra.mxu0 %v3672_v26  ;;  %v2269_v26 = vld [vmem:[#allocation17 + $0xdc] sm:$0xf] }
 0x252   :  { %4357 = vmatprep.subr.bf16.mxu0 %v5026_v0  ;;  %v3708_v28 = vcombine.low %v2269_v26, %v2270_v27  ;;  %v3727_v26 = vcombine.low %v2498_v23, %v2499_v24  ;;  %v2382_v27 = vld [vmem:[#allocation19 + $0x100] sm:$0xf] }
 0x255   :  { %4358 = vmatpush3.bf16.msra.mxu0 %v3671_v29  ;;  %v2268_v29 = vld [vmem:[#allocation17 + $0xbc] sm:$0xf] }
 0x256   :  { %4383 = vmatprep.subr.bf16.mxu0 %v5026_v0  ;;  %v3707_v31 = vcombine.low %v2267_v55, %v2268_v29  ;;  %v2496_v55 = vld [vmem:[#allocation19 + $0x104] sm:$0xf] }
 0x257   :  { %v2497_v29 = vld [vmem:[#allocation19 + $0x124] sm:$0xf] }
 0x258   :  { %4360 = vmatmul.mubr.bf16.vlgmr.msra.gmra.mxu0 %v5293_v17 }
 0x259   :  { %4384 = vmatpush3.bf16.msra.mxu0 %v3695_v35  ;;  %4399 = vmatprep.mubr.msk.bf16.mxu0 %vm5027_vm0, %v5026_v0  ;;  %v3706_v35 = vcombine.low %v2265_v32, %v2266_v33  ;;  %v3726_v32 = vcombine.low %v2496_v55, %v2497_v29  ;;  %v2380_v33 = vld [vmem:[#allocation19 + $0xc0] sm:$0xf] }
 0x25a   :  { %4385 = vmatprep.subr.bf16.mxu0 %v5026_v0 }
 0x25d   :  { %4386 = vmatpush3.bf16.msra.mxu0 %v3694_v41 }
 0x25e   :  { %4387 = vmatprep.subr.bf16.mxu0 %v5026_v0 }
 0x261   :  { %4388 = vmatpush3.bf16.msra.mxu0 %v3693_v43  ;;  %v923_v43 = vadd.f32 %v3602_v42, %v5360_v34 }
 0x262   :  { %4389 = vmatprep.subr.bf16.mxu0 %v5026_v0 }
 0x265   :  { %4390 = vmatpush3.bf16.msra.mxu0 %v3692_v47 }
 0x266   :  { %4391 = vmatprep.subr.bf16.mxu0 %v5026_v0 }
 0x269   :  { %4392 = vmatpush3.bf16.msra.mxu0 %v3691_v50  ;;  %v924_v50 = vadd.f32 %v3602_v42, %v5365_v39  ;;  %v3725_v42 = vcombine.low %v2494_v37, %v2495_v38  ;;  %v3687_v37 = vld [vmem:[%s5636_s10 + $0x6] ss:$0 sm:$0xff] }
 0x26a   :  { %4393 = vmatprep.subr.bf16.mxu0 %v5026_v0 }
 0x26c   :  { %v5431_v41 = vpop.f32.mrf.mxu1 }
 0x26d   :  { %4394 = vmatpush3.bf16.msra.mxu0 %v3690_v53 }
 0x26e   :  { %4395 = vmatprep.subr.bf16.mxu0 %v5026_v0  ;;  %v4341_v10 = vpop.f32.mrf.mxu1 }
 0x26f   :  { %v2378_v10 = vld [vmem:[#allocation19 + $0x80] sm:$0xf] }
 0x270   :  { %v5438_v44 = vpop.f32.mrf.mxu1 }
 0x271   :  { %4396 = vmatpush3.bf16.msra.mxu0 %v3689_v57 }
 0x272   :  { %4397 = vmatprep.subr.bf16.mxu0 %v5026_v0  ;;  %v4342_v45 = vpop.f32.mrf.mxu1 }
 0x273   :  { %v2492_v45 = vld [vmem:[#allocation19 + $0x84] sm:$0xf] }
 0x275   :  { %4398 = vmatpush3.bf16.msra.mxu0 %v3688_v60 }
 0x276   :  { %4423 = vmatprep.subr.bf16.mxu0 %v5026_v0 }
 0x278   :  { %4400 = vmatmul.mubr.bf16.vlgmr.msra.gmra.mxu0 %v5293_v17  ;;  %v802_v12 = vpop.f32.mrf.mxu0 }
 0x279   :  { %v5418_v13 = vadd.f32 %v802_v12, %v702_v4  ;;  %4424 = vmatpush3.bf16.msra.mxu0 %v3712_v6  ;;  %4439 = vmatprep.mubr.msk.bf16.mxu0 %vm5027_vm0, %v5026_v0  ;;  %v2389_v12 = vld [vmem:[#allocation19 + $0x1e0] sm:$0xf] }
 0x27a   :  { %v4161_v46 = vpop.f32.mrf.mxu0  ;;  %4425 = vmatprep.subr.bf16.mxu0 %v5026_v0 }
 0x27b   :  { %v2386_v46 = vld [vmem:[#allocation19 + $0x180] sm:$0xf] }
 0x27c   :  { %v805_v19 = vpop.f32.mrf.mxu0 }
 0x27d   :  { %v5424_v20 = vadd.f32 %v805_v19, %v703_v18  ;;  %4426 = vmatpush3.bf16.msra.mxu0 %v3711_v14  ;;  %v3720_v14 = vcombine.low %v2388_v11, %v2389_v12  ;;  %v2500_v18 = vld [vmem:[#allocation19 + $0x184] sm:$0xf]  ;;  %v2374_v11 = vld [vmem:[#allocation19] sm:$0xf] }
 0x27e   :  { %v4162_v22 = vpop.f32.mrf.mxu0  ;;  %4427 = vmatprep.subr.bf16.mxu0 %v5026_v0  ;;  %v2501_v19 = vld [vmem:[#allocation19 + $0x1a4] sm:$0xf]  ;;  %v2375_v12 = vld [vmem:[#allocation19 + $0x20] sm:$0xf] }
 0x27f   :  { %4444 = vmatpush3.bf16.msra.mxu1 %v3720_v14  ;;  %v2385_v22 = vld [vmem:[#allocation19 + $0x160] sm:$0xf] }
 0x280   :  { %4445 = vmatprep.subr.bf16.mxu1 %v5026_v0 }
 0x281   :  { %4428 = vmatpush3.bf16.msra.mxu0 %v3710_v21  ;;  %v2384_v21 = vld [vmem:[#allocation19 + $0x140] sm:$0xf] }
 0x282   :  { %4429 = vmatprep.subr.bf16.mxu0 %v5026_v0 }
 0x285   :  { %4430 = vmatpush3.bf16.msra.mxu0 %v3709_v25  ;;  %v3718_v25 = vcombine.low %v2384_v21, %v2385_v22 }
 0x286   :  { %4431 = vmatprep.subr.bf16.mxu0 %v5026_v0 }
 0x289   :  { %4432 = vmatpush3.bf16.msra.mxu0 %v3708_v28  ;;  %v2383_v28 = vld [vmem:[#allocation19 + $0x120] sm:$0xf] }
 0x28a   :  { %4433 = vmatprep.subr.bf16.mxu0 %v5026_v0 }
 0x28d   :  { %4434 = vmatpush3.bf16.msra.mxu0 %v3707_v31  ;;  %v5447_v56 = vpop.f32.mrf.mxu1  ;;  %v3717_v31 = vcombine.low %v2382_v27, %v2383_v28 }
 0x28e   :  { %4435 = vmatprep.subr.bf16.mxu0 %v5026_v0  ;;  %v2038_v38 = vadd.f32 %v3687_v37, %v5447_v56 }
 0x28f   :  { %v4381_v57 = vpop.f32.mrf.mxu1 }
 0x290   :  { %v2376_v57 = vld [vmem:[#allocation19 + $0x40] sm:$0xf] }
 0x291   :  { %4436 = vmatpush3.bf16.msra.mxu0 %v3706_v35  ;;  %v5453_v59 = vpop.f32.mrf.mxu1  ;;  %v2381_v35 = vld [vmem:[#allocation19 + $0xe0] sm:$0xf] }
 0x292   :  { %4437 = vmatprep.subr.bf16.mxu0 %v5026_v0 }
 0x293   :  { %v4382_v60 = vpop.f32.mrf.mxu1 }
 0x294   :  { %v2490_v60 = vld [vmem:[#allocation19 + $0x44] sm:$0xf] }
 0x295   :  { %4438 = vmatpush3.bf16.msra.mxu0 %v3705_v40  ;;  %v3716_v40 = vcombine.low %v2380_v33, %v2381_v35 }
 0x296   :  { %4463 = vmatprep.subr.bf16.mxu0 %v5026_v0 }
 0x298   :  { %v1023_v47 = vpop.f32.mrf.mxu0  ;;  %4440 = vmatmul.mubr.bf16.vlgmr.msra.gmra.mxu0 %v5293_v17  ;;  %v3619_v17 = vld [vmem:[%s5636_s10 + $0x2] ss:$0 sm:$0xff] }
 0x299   :  { %v1030_v48 = vadd.f32 %v1023_v47, %v923_v43  ;;  %4479 = vmatprep.mubr.msk.bf16.mxu0 %vm5027_vm0, %v5026_v0  ;;  %v1146_v58 = vadd.f32 %v3619_v17, %v5377_v63  ;;  %v1147_v2 = vadd.f32 %v3619_v17, %v5380_v5  ;;  %v2503_v63 = vld [vmem:[#allocation19 + $0x1e4] sm:$0xf]  ;;  %v3728_v5 = vcombine.low %v2500_v18, %v2501_v19  ;;  %v2379_v43 = vld [vmem:[#allocation19 + $0xa0] sm:$0xf] }
 0x29a   :  { %v4201_v49 = vpop.f32.mrf.mxu0  ;;  %v2493_v47 = vld [vmem:[#allocation19 + $0xa4] sm:$0xf] }
 0x29b   :  { %v1032_v51 = vmax.f32 %v5418_v13, %v1030_v48  ;;  %v2502_v13 = vld [vmem:[#allocation19 + $0x1c4] sm:$0xf]  ;;  %v3636_v49 = vld [vmem:[%s5636_s10 + $0x3] ss:$0 sm:$0xff] }
 0x29c   :  { %v1026_v52 = vpop.f32.mrf.mxu0  ;;  %v3729_v16 = vcombine.low %v2502_v13, %v2503_v63  ;;  %v2488_v13 = vld [vmem:[#allocation19 + $0x4] sm:$0xf]  ;;  %v3713_v63 = vcombine.low %v2374_v11, %v2375_v12  ;;  %v2732_v11 = vld [vmem:[#allocation19 + $0x18c] sm:$0xf] }
 0x29d   :  { %v1031_v34 = vadd.f32 %v1026_v52, %v924_v50  ;;  %v3715_v50 = vcombine.low %v2378_v10, %v2379_v43  ;;  %v3724_v52 = vcombine.low %v2492_v45, %v2493_v47  ;;  %v2733_v12 = vld [vmem:[#allocation19 + $0x1ac] sm:$0xf] }
 0x29e   :  { %v4202_v53 = vpop.f32.mrf.mxu0  ;;  %4464 = vmatpush3.bf16.msra.mxu0 %v3729_v16 }
 0x29f   :  { %v1033_v54 = vmax.f32 %v5424_v20, %v1031_v34  ;;  %v3719_v20 = vcombine.low %v2386_v46, %v2387_v15  ;;  %4465 = vmatprep.subr.bf16.mxu0 %v5026_v0  ;;  %v1369_v34 = vadd.f32 %v3636_v49, %v5392_v30  ;;  %v1370_v30 = vadd.f32 %v3636_v49, %v5395_v36  ;;  %v2489_v46 = vld [vmem:[#allocation19 + $0x24] sm:$0xf]  ;;  %v3653_v36 = vld [vmem:[%s5636_s10 + $0x4] ss:$0 sm:$0xff] }
 0x2a0   :  { %v3722_v16 = vcombine.low %v2488_v13, %v2489_v46  ;;  %v1593_v21 = vadd.f32 %v3653_v36, %v5414_v7  ;;  %v3746_v13 = vcombine.low %v2732_v11, %v2733_v12  ;;  %v2730_v46 = vld [vmem:[#allocation19 + $0x14c] sm:$0xf] }
 0x2a1   :  { %4446 = vmatpush3.bf16.msra.mxu1 %v3719_v20 }
 0x2a2   :  { %4466 = vmatpush3.bf16.msra.mxu0 %v3728_v5  ;;  %4447 = vmatprep.subr.bf16.mxu1 %v5026_v0 }
 0x2a3   :  { %4467 = vmatprep.subr.bf16.mxu0 %v5026_v0 }
 0x2a5   :  { %4448 = vmatpush3.bf16.msra.mxu1 %v3718_v25 }
 0x2a6   :  { %4468 = vmatpush3.bf16.msra.mxu0 %v3727_v26  ;;  %4449 = vmatprep.subr.bf16.mxu1 %v5026_v0  ;;  %v3670_v26 = vld [vmem:[%s5636_s10 + $0x5] ss:$0 sm:$0xff] }
 0x2a7   :  { %4469 = vmatprep.subr.bf16.mxu0 %v5026_v0  ;;  %v1815_v27 = vadd.f32 %v3670_v26, %v5431_v41  ;;  %v2039_v41 = vadd.f32 %v3687_v37, %v5453_v59 }
 0x2a9   :  { %4450 = vmatpush3.bf16.msra.mxu1 %v3717_v31 }
 0x2aa   :  { %4470 = vmatpush3.bf16.msra.mxu0 %v3726_v32  ;;  %4451 = vmatprep.subr.bf16.mxu1 %v5026_v0 }
 0x2ab   :  { %4471 = vmatprep.subr.bf16.mxu0 %v5026_v0 }
 0x2ad   :  { %4452 = vmatpush3.bf16.msra.mxu1 %v3716_v40 }
 0x2ae   :  { %4472 = vmatpush3.bf16.msra.mxu0 %v3725_v42  ;;  %4453 = vmatprep.subr.bf16.mxu1 %v5026_v0 }
 0x2af   :  { %v5468_v48 = vpop.f32.mrf.mxu1  ;;  %4473 = vmatprep.subr.bf16.mxu0 %v5026_v0 }
 0x2b1   :  { %4454 = vmatpush3.bf16.msra.mxu1 %v3715_v50  ;;  %v3704_v50 = vld [vmem:[%s5636_s10 + $0x7] ss:$0 sm:$0xff] }
 0x2b2   :  { %4474 = vmatpush3.bf16.msra.mxu0 %v3724_v52  ;;  %4455 = vmatprep.subr.bf16.mxu1 %v5026_v0 }
 0x2b3   :  { %4475 = vmatprep.subr.bf16.mxu0 %v5026_v0 }
 0x2b8   :  { %v1246_v39 = vpop.f32.mrf.mxu0 }
 0x2b9   :  { %v1253_v62 = vadd.f32 %v1246_v39, %v1146_v58  ;;  %v2377_v58 = vld [vmem:[#allocation19 + $0x60] sm:$0xf] }
 0x2ba   :  { %v4241_v1 = vpop.f32.mrf.mxu0 }
 0x2bb   :  { %v5456_v3 = vmax.f32 %v1032_v51, %v1253_v62  ;;  %v4421_v51 = vpop.f32.mrf.mxu1  ;;  %v3714_v62 = vcombine.low %v2376_v57, %v2377_v58  ;;  %v2491_v1 = vld [vmem:[#allocation19 + $0x64] sm:$0xf]  ;;  %v2618_v58 = vld [vmem:[#allocation19 + $0x1c8] sm:$0xf] }
 0x2bc   :  { %v1249_v4 = vpop.f32.mrf.mxu0  ;;  %v2261_v51 = vadd.f32 %v3704_v50, %v5468_v48  ;;  %v2617_v48 = vld [vmem:[#allocation19 + $0x1a8] sm:$0xf] }
 0x2bd   :  { %v1254_v6 = vadd.f32 %v1249_v4, %v1147_v2  ;;  %v5476_v53 = vpop.f32.mrf.mxu1  ;;  %v3723_v4 = vcombine.low %v2490_v60, %v2491_v1  ;;  %4456 = vmatpush3.bf16.msra.mxu1 %v3714_v62  ;;  %v2619_v60 = vld [vmem:[#allocation19 + $0x1e8] sm:$0xf]  ;;  %v2735_v62 = vld [vmem:[#allocation19 + $0x1ec] sm:$0xf] }
 0x2be   :  { %v4242_v8 = vpop.f32.mrf.mxu0  ;;  %4457 = vmatprep.subr.bf16.mxu1 %v5026_v0  ;;  %v2262_v56 = vadd.f32 %v3704_v50, %v5476_v53  ;;  %v2967_v50 = vld [vmem:[#allocation19 + $0x1f4] sm:$0xf] }
 0x2bf   :  { %v5458_v9 = vmax.f32 %v1033_v54, %v1254_v6  ;;  %v4422_v54 = vpop.f32.mrf.mxu1  ;;  %4476 = vmatpush3.bf16.msra.mxu0 %v3723_v4  ;;  %v3738_v4 = vcombine.low %v2618_v58, %v2619_v60  ;;  %v2847_v60 = vld [vmem:[#allocation19 + $0x170] sm:$0xf] }
 0x2c0   :  { %4477 = vmatprep.subr.bf16.mxu0 %v5026_v0 }
 0x2c1   :  { %4458 = vmatpush3.bf16.msra.mxu1 %v3713_v63  ;;  %v2615_v63 = vld [vmem:[#allocation19 + $0x168] sm:$0xf] }
 0x2c2   :  { %4483 = vmatprep.subr.bf16.mxu1 %v5026_v0 }
 0x2c3   :  { %4478 = vmatpush3.bf16.msra.mxu0 %v3722_v16 }
 0x2c4   :  { %4503 = vmatprep.subr.bf16.mxu0 %v5026_v0 }
 0x2d8   :  { %v1469_v17 = vpop.f32.mrf.mxu0 }
 0x2d9   :  { %v1476_v39 = vadd.f32 %v1469_v17, %v1369_v34 }
 0x2da   :  { %v4281_v2 = vpop.f32.mrf.mxu0 }
 0x2db   :  { %v1478_v6 = vmax.f32 %v5456_v3, %v1476_v39  ;;  %v1592_v3 = vadd.f32 %v3653_v36, %v5407_v61  ;;  %v1816_v61 = vadd.f32 %v3670_v26, %v5438_v44  ;;  %v2734_v39 = vld [vmem:[#allocation19 + $0x1cc] sm:$0xf]  ;;  %v2612_v36 = vld [vmem:[#allocation19 + $0x108] sm:$0xf] }
 0x2dc   :  { %v1472_v8 = vpop.f32.mrf.mxu0 }
 0x2dd   :  { %v1477_v14 = vadd.f32 %v1472_v8, %v1370_v30  ;;  %v3747_v30 = vcombine.low %v2734_v39, %v2735_v62  ;;  %v2962_v39 = vld [vmem:[#allocation19 + $0x154] sm:$0xf] }
 0x2de   :  { %v4282_v15 = vpop.f32.mrf.mxu0  ;;  %v2963_v62 = vld [vmem:[#allocation19 + $0x174] sm:$0xf] }
 0x2df   :  { %v1479_v18 = vmax.f32 %v5458_v9, %v1477_v14  ;;  %v2614_v14 = vld [vmem:[#allocation19 + $0x148] sm:$0xf]  ;;  %v2731_v15 = vld [vmem:[#allocation19 + $0x16c] sm:$0xf] }
 0x2e0   :  { %v3736_v16 = vcombine.low %v2614_v14, %v2615_v63  ;;  %v2958_v14 = vld [vmem:[#allocation19 + $0xd4] sm:$0xf] }
 0x2e1   :  { %v2959_v63 = vld [vmem:[#allocation19 + $0xf4] sm:$0xf] }
 0x2f8   :  { %v1692_v19 = vpop.f32.mrf.mxu0 }
 0x2f9   :  { %v1699_v20 = vadd.f32 %v1692_v19, %v1592_v3  ;;  %v2613_v3 = vld [vmem:[#allocation19 + $0x128] sm:$0xf]  ;;  %v2728_v19 = vld [vmem:[#allocation19 + $0x10c] sm:$0xf] }
 0x2fa   :  { %v4321_v5 = vpop.f32.mrf.mxu0 }
 0x2fb   :  { %v1701_v22 = vmax.f32 %v1478_v6, %v1699_v20  ;;  %v2616_v6 = vld [vmem:[#allocation19 + $0x188] sm:$0xf]  ;;  %v2729_v20 = vld [vmem:[#allocation19 + $0x12c] sm:$0xf]  ;;  %v3735_v5 = vcombine.low %v2612_v36, %v2613_v3  ;;  %v2956_v36 = vld [vmem:[#allocation19 + $0x94] sm:$0xf] }
 0x2fc   :  { %v1695_v23 = vpop.f32.mrf.mxu0  ;;  %v3737_v53 = vcombine.low %v2616_v6, %v2617_v48  ;;  %v2960_v6 = vld [vmem:[#allocation19 + $0x114] sm:$0xf] }
 0x2fd   :  { %v1700_v9 = vadd.f32 %v1695_v23, %v1593_v21  ;;  %v3744_v21 = vcombine.low %v2728_v19, %v2729_v20  ;;  %v2611_v23 = vld [vmem:[#allocation19 + $0xe8] sm:$0xf]  ;;  %v2961_v48 = vld [vmem:[#allocation19 + $0x134] sm:$0xf] }
 0x2fe   :  { %v4322_v24 = vpop.f32.mrf.mxu0  ;;  %v3762_v12 = vcombine.low %v2960_v6, %v2961_v48  ;;  %v2957_v3 = vld [vmem:[#allocation19 + $0xb4] sm:$0xf] }
 0x2ff   :  { %v1702_v25 = vmax.f32 %v1479_v18, %v1700_v9  ;;  %v3745_v18 = vcombine.low %v2730_v46, %v2731_v15  ;;  %v2726_v9 = vld [vmem:[#allocation19 + $0xcc] sm:$0xf]  ;;  %v3761_v15 = vcombine.low %v2958_v14, %v2959_v63  ;;  %v3760_v20 = vcombine.low %v2956_v36, %v2957_v3 }
 0x300   :  { %v2727_v24 = vld [vmem:[#allocation19 + $0xec] sm:$0xf] }
 0x301   :  { %v3743_v26 = vcombine.low %v2726_v9, %v2727_v24 }
 0x318   :  { %v1915_v28 = vpop.f32.mrf.mxu0 }
 0x319   :  { %v1922_v55 = vadd.f32 %v1915_v28, %v1815_v27  ;;  %v2608_v27 = vld [vmem:[#allocation19 + $0x88] sm:$0xf] }
 0x31a   :  { %v4361_v29 = vpop.f32.mrf.mxu0  ;;  %v2609_v28 = vld [vmem:[#allocation19 + $0xa8] sm:$0xf] }
 0x31b   :  { %v1924_v31 = vmax.f32 %v1701_v22, %v1922_v55  ;;  %v2610_v22 = vld [vmem:[#allocation19 + $0xc8] sm:$0xf]  ;;  %v2724_v55 = vld [vmem:[#allocation19 + $0x8c] sm:$0xf] }
 0x31c   :  { %v1918_v32 = vpop.f32.mrf.mxu0  ;;  %v2725_v29 = vld [vmem:[#allocation19 + $0xac] sm:$0xf] }
 0x31d   :  { %v1923_v33 = vadd.f32 %v1918_v32, %v1816_v61  ;;  %v3733_v61 = vcombine.low %v2608_v27, %v2609_v28  ;;  %v2606_v32 = vld [vmem:[#allocation19 + $0x48] sm:$0xf]  ;;  %v2952_v27 = vld [vmem:[#allocation19 + $0x14] sm:$0xf] }
 0x31e   :  { %v4362_v7 = vpop.f32.mrf.mxu0  ;;  %v2953_v28 = vld [vmem:[#allocation19 + $0x34] sm:$0xf] }
 0x31f   :  { %v1925_v35 = vmax.f32 %v1702_v25, %v1923_v33  ;;  %v3734_v25 = vcombine.low %v2610_v22, %v2611_v23  ;;  %v2607_v33 = vld [vmem:[#allocation19 + $0x68] sm:$0xf]  ;;  %v2722_v7 = vld [vmem:[#allocation19 + $0x4c] sm:$0xf]  ;;  %v2954_v22 = vld [vmem:[#allocation19 + $0x54] sm:$0xf] }
 0x320   :  { %v3732_v37 = vcombine.low %v2606_v32, %v2607_v33  ;;  %v2955_v23 = vld [vmem:[#allocation19 + $0x74] sm:$0xf]  ;;  %v3198_v32 = vld [vmem:[#allocation19 + $0x1dc] sm:$0xf] }
 0x321   :  { %v3759_v24 = vcombine.low %v2954_v22, %v2955_v23  ;;  %v3199_v33 = vld [vmem:[#allocation19 + $0x1fc] sm:$0xf]  ;;  %v4698_v23 = vld [vmem:[#allocation20 + $0x10] sm:$0xff]  }
 0x322   :  { %v4697_v22 = vld [vmem:[#allocation20 + $0x18] sm:$0xff]  }
 0x338   :  { %v2138_v40 = vpop.f32.mrf.mxu0 }
 0x339   :  { %v2145_v42 = vadd.f32 %v2138_v40, %v2038_v38  ;;  %v2604_v40 = vld [vmem:[#allocation19 + $0x8] sm:$0xf] }
 0x33a   :  { %v4401_v10 = vpop.f32.mrf.mxu0 }
 0x33b   :  { %v2147_v43 = vmax.f32 %v1924_v31, %v2145_v42  ;;  %v3742_v31 = vcombine.low %v2724_v55, %v2725_v29  ;;  %v2605_v42 = vld [vmem:[#allocation19 + $0x28] sm:$0xf]  ;;  %v2720_v10 = vld [vmem:[#allocation19 + $0xc] sm:$0xf]  ;;  %v3758_v29 = vcombine.low %v2952_v27, %v2953_v28  ;;  %v4704_v28 = vld [vmem:[#allocation22 + $0x20] sm:$0xff]  }
 0x33c   :  { %v2141_v45 = vpop.f32.mrf.mxu0  ;;  %v4703_v27 = vld [vmem:[#allocation22 + $0x28] sm:$0xff]  }
 0x33d   :  { %v2146_v47 = vadd.f32 %v2141_v45, %v2039_v41  ;;  %v2721_v41 = vld [vmem:[#allocation19 + $0x2c] sm:$0xf] }
 0x33e   :  { %v4402_v44 = vpop.f32.mrf.mxu0  ;;  %v3740_v45 = vcombine.low %v2720_v10, %v2721_v41 }
 0x33f   :  { %v2148_v49 = vmax.f32 %v1925_v35, %v2146_v47  ;;  %v2723_v35 = vld [vmem:[#allocation19 + $0x6c] sm:$0xf]  ;;  %v2850_v47 = vld [vmem:[#allocation19 + $0x1d0] sm:$0xf] }
 0x340   :  { %v3741_v38 = vcombine.low %v2722_v7, %v2723_v35  ;;  %v2851_v44 = vld [vmem:[#allocation19 + $0x1f0] sm:$0xf]  ;;  %v3783_v35 = vcombine.low %v3198_v32, %v3199_v33  ;;  %v3730_v32 = vld [vmem:[%s5638_s12 + $0x1] ss:$0 sm:$0xff] }
 0x358   :  { %v2361_v52 = vpop.f32.mrf.mxu0 }
 0x359   :  { %v2368_v34 = vadd.f32 %v2361_v52, %v2261_v51  ;;  %v3756_v51 = vcombine.low %v2850_v47, %v2851_v44  ;;  %v3194_v47 = vld [vmem:[#allocation19 + $0x15c] sm:$0xf] }
 0x35a   :  { %v4441_v54 = vpop.f32.mrf.mxu0  ;;  %v3195_v44 = vld [vmem:[#allocation19 + $0x17c] sm:$0xf] }
 0x35b   :  { %v2370_v17 = vmax.f32 %v2147_v43, %v2368_v34  ;;  %v3731_v43 = vcombine.low %v2604_v40, %v2605_v42  ;;  %v2848_v34 = vld [vmem:[#allocation19 + $0x190] sm:$0xf]  ;;  %v3196_v40 = vld [vmem:[#allocation19 + $0x19c] sm:$0xf] }
 0x35c   :  { %v2364_v57 = vpop.f32.mrf.mxu0  ;;  %v2849_v54 = vld [vmem:[#allocation19 + $0x1b0] sm:$0xf]  ;;  %v3197_v42 = vld [vmem:[#allocation19 + $0x1bc] sm:$0xf] }
 0x35d   :  { %v2369_v59 = vadd.f32 %v2364_v57, %v2262_v56  ;;  %v2964_v56 = vld [vmem:[#allocation19 + $0x194] sm:$0xf]  ;;  %v3755_v57 = vcombine.low %v2848_v34, %v2849_v54  ;;  %v3782_v41 = vcombine.low %v3196_v40, %v3197_v42  ;;  %v3192_v34 = vld [vmem:[#allocation19 + $0x11c] sm:$0xf] }
 0x35e   :  { %v4442_v1 = vpop.f32.mrf.mxu0  ;;  %v3193_v54 = vld [vmem:[#allocation19 + $0x13c] sm:$0xf] }
 0x35f   :  { %v2371_v2 = vmax.f32 %v2148_v49, %v2369_v59  ;;  %v2966_v49 = vld [vmem:[#allocation19 + $0x1d4] sm:$0xf]  ;;  %v2846_v59 = vld [vmem:[#allocation19 + $0x150] sm:$0xf] }
 0x360   :  { %v3765_v52 = vcombine.low %v2966_v49, %v2967_v50  ;;  %v3754_v1 = vcombine.low %v2846_v59, %v2847_v60  ;;  %v3781_v50 = vcombine.low %v3194_v47, %v3195_v44  ;;  %v3190_v59 = vld [vmem:[#allocation19 + $0xdc] sm:$0xf] }
 0x361   :  { %v5507_v8 = vpack.c.bf16 %v2371_v2, %v2370_v17  ;;  %v2965_v17 = vld [vmem:[#allocation19 + $0x1b4] sm:$0xf]  ;;  %v3763_v2 = vcombine.low %v2962_v39, %v2963_v62  ;;  %v3191_v60 = vld [vmem:[#allocation19 + $0xfc] sm:$0xf] }
 0x362   :  { %v3764_v58 = vcombine.low %v2964_v56, %v2965_v17  ;;  %v3780_v17 = vcombine.low %v3192_v34, %v3193_v54  ;;  %v3779_v62 = vcombine.low %v3190_v59, %v3191_v60 }
 0x363   :  { %4460 = vmatmul.mubr.bf16.vlgmr.msra.gmra.mxu1 %v5507_v8  ;;  %4480 = vmatmul.mubr.bf16.vlgmr.msra.gmra.mxu0 %v5507_v8 }
 0x364   :  { %4484 = vmatpush3.bf16.msra.mxu1 %v3738_v4  ;;  %4504 = vmatpush3.bf16.msra.mxu0 %v3747_v30  ;;  %v2844_v4 = vld [vmem:[#allocation19 + $0x110] sm:$0xf] }
 0x365   :  { %4485 = vmatprep.subr.bf16.mxu1 %v5026_v0  ;;  %4505 = vmatprep.subr.bf16.mxu0 %v5026_v0  ;;  %v2845_v30 = vld [vmem:[#allocation19 + $0x130] sm:$0xf] }
 0x366   :  { %4499 = vmatprep.mubr.msk.bf16.mxu1 %vm5027_vm0, %v5026_v0  ;;  %4519 = vmatprep.mubr.msk.bf16.mxu0 %vm5027_vm0, %v5026_v0  ;;  %v3753_v11 = vcombine.low %v2844_v4, %v2845_v30  ;;  %v3188_v4 = vld [vmem:[#allocation19 + $0x9c] sm:$0xf] }
 0x367   :  { %v3189_v30 = vld [vmem:[#allocation19 + $0xbc] sm:$0xf] }
 0x368   :  { %4486 = vmatpush3.bf16.msra.mxu1 %v3737_v53  ;;  %4506 = vmatpush3.bf16.msra.mxu0 %v3746_v13  ;;  %v2842_v53 = vld [vmem:[#allocation19 + $0xd0] sm:$0xf]  ;;  %v3778_v48 = vcombine.low %v3188_v4, %v3189_v30  ;;  %v3739_v4 = vld [vmem:[%s5638_s12 + $0x2] ss:$0 sm:$0xff] }
 0x369   :  { %4487 = vmatprep.subr.bf16.mxu1 %v5026_v0  ;;  %4507 = vmatprep.subr.bf16.mxu0 %v5026_v0  ;;  %v2843_v13 = vld [vmem:[#allocation19 + $0xf0] sm:$0xf] }
 0x36a   :  { %v3752_v46 = vcombine.low %v2842_v53, %v2843_v13  ;;  %v3186_v53 = vld [vmem:[#allocation19 + $0x5c] sm:$0xf] }
 0x36b   :  { %v3187_v13 = vld [vmem:[#allocation19 + $0x7c] sm:$0xf] }
 0x36c   :  { %4488 = vmatpush3.bf16.msra.mxu1 %v3736_v16  ;;  %4508 = vmatpush3.bf16.msra.mxu0 %v3745_v18  ;;  %v2840_v16 = vld [vmem:[#allocation19 + $0x90] sm:$0xf]  ;;  %v3777_v63 = vcombine.low %v3186_v53, %v3187_v13 }
 0x36d   :  { %4489 = vmatprep.subr.bf16.mxu1 %v5026_v0  ;;  %4509 = vmatprep.subr.bf16.mxu0 %v5026_v0  ;;  %v2841_v18 = vld [vmem:[#allocation19 + $0xb0] sm:$0xf] }
 0x36e   :  { %v3751_v19 = vcombine.low %v2840_v16, %v2841_v18  ;;  %v3184_v16 = vld [vmem:[#allocation19 + $0x1c] sm:$0xf] }
 0x36f   :  { %v3185_v18 = vld [vmem:[#allocation19 + $0x3c] sm:$0xf] }
 0x370   :  { %4490 = vmatpush3.bf16.msra.mxu1 %v3735_v5  ;;  %4510 = vmatpush3.bf16.msra.mxu0 %v3744_v21  ;;  %v2838_v5 = vld [vmem:[#allocation19 + $0x50] sm:$0xf]  ;;  %v3776_v3 = vcombine.low %v3184_v16, %v3185_v18  ;;  %v3766_v16 = vld [vmem:[%s5638_s12 + $0x5] ss:$0 sm:$0xff]  ;;  %v3775_v18 = vld [vmem:[%s5638_s12 + $0x6] ss:$0 sm:$0xff] }
 0x371   :  { %4491 = vmatprep.subr.bf16.mxu1 %v5026_v0  ;;  %4511 = vmatprep.subr.bf16.mxu0 %v5026_v0  ;;  %v2839_v21 = vld [vmem:[#allocation19 + $0x70] sm:$0xf] }
 0x372   :  { %v3750_v9 = vcombine.low %v2838_v5, %v2839_v21  ;;  %v4695_v5 = vld [vmem:[#allocation20 + $0x28] sm:$0xff]   ;;  %v4696_v21 = vld [vmem:[#allocation20 + $0x20] sm:$0xff]  }
 0x374   :  { %4492 = vmatpush3.bf16.msra.mxu1 %v3734_v25  ;;  %4512 = vmatpush3.bf16.msra.mxu0 %v3743_v26  ;;  %v2836_v25 = vld [vmem:[#allocation19 + $0x10] sm:$0xf] }
 0x375   :  { %4493 = vmatprep.subr.bf16.mxu1 %v5026_v0  ;;  %4513 = vmatprep.subr.bf16.mxu0 %v5026_v0  ;;  %v2837_v26 = vld [vmem:[#allocation19 + $0x30] sm:$0xf] }
 0x376   :  { %v3749_v55 = vcombine.low %v2836_v25, %v2837_v26  ;;  %v4701_v25 = vld [vmem:[#allocation22 + $0x38] sm:$0xff]   ;;  %v4702_v26 = vld [vmem:[#allocation22 + $0x30] sm:$0xff]  }
 0x378   :  { %4494 = vmatpush3.bf16.msra.mxu1 %v3733_v61  ;;  %4514 = vmatpush3.bf16.msra.mxu0 %v3742_v31  ;;  %v3082_v61 = vld [vmem:[#allocation19 + $0x1d8] sm:$0xf] }
 0x379   :  { %4495 = vmatprep.subr.bf16.mxu1 %v5026_v0  ;;  %4515 = vmatprep.subr.bf16.mxu0 %v5026_v0  ;;  %v3083_v31 = vld [vmem:[#allocation19 + $0x1f8] sm:$0xf] }
 0x37a   :  { %v3774_v7 = vcombine.low %v3082_v61, %v3083_v31  ;;  %v4708_v61 = vld [vmem:[#allocation22] sm:$0xff]   ;;  %v3721_v31 = vld [vmem:[%s5638_s12] ss:$0 sm:$0xff] }
 0x37c   :  { %4496 = vmatpush3.bf16.msra.mxu1 %v3732_v37  ;;  %4516 = vmatpush3.bf16.msra.mxu0 %v3741_v38  ;;  %v3080_v37 = vld [vmem:[#allocation19 + $0x198] sm:$0xf] }
 0x37d   :  { %4497 = vmatprep.subr.bf16.mxu1 %v5026_v0  ;;  %4517 = vmatprep.subr.bf16.mxu0 %v5026_v0  ;;  %v3081_v38 = vld [vmem:[#allocation19 + $0x1b8] sm:$0xf] }
 0x37e   :  { %v3773_v10 = vcombine.low %v3080_v37, %v3081_v38 }
 0x380   :  { %4498 = vmatpush3.bf16.msra.mxu1 %v3731_v43  ;;  %4518 = vmatpush3.bf16.msra.mxu0 %v3740_v45  ;;  %v3078_v43 = vld [vmem:[#allocation19 + $0x158] sm:$0xf] }
 0x381   :  { %4523 = vmatprep.subr.bf16.mxu1 %v5026_v0  ;;  %4543 = vmatprep.subr.bf16.mxu0 %v5026_v0  ;;  %v3079_v45 = vld [vmem:[#allocation19 + $0x178] sm:$0xf] }
 0x382   :  { %v3772_v49 = vcombine.low %v3078_v43, %v3079_v45 }
 0x383   :  { %4500 = vmatmul.mubr.bf16.vlgmr.msra.gmra.mxu1 %v5507_v8  ;;  %4520 = vmatmul.mubr.bf16.vlgmr.msra.gmra.mxu0 %v5507_v8 }
 0x384   :  { %4524 = vmatpush3.bf16.msra.mxu1 %v3756_v51  ;;  %4544 = vmatpush3.bf16.msra.mxu0 %v3765_v52  ;;  %v3076_v51 = vld [vmem:[#allocation19 + $0x118] sm:$0xf] }
 0x385   :  { %4525 = vmatprep.subr.bf16.mxu1 %v5026_v0  ;;  %4545 = vmatprep.subr.bf16.mxu0 %v5026_v0  ;;  %v3077_v52 = vld [vmem:[#allocation19 + $0x138] sm:$0xf] }
 0x386   :  { %4539 = vmatprep.mubr.msk.bf16.mxu1 %vm5027_vm0, %v5026_v0  ;;  %4559 = vmatprep.mubr.msk.bf16.mxu0 %vm5027_vm0, %v5026_v0  ;;  %v3771_v56 = vcombine.low %v3076_v51, %v3077_v52 }
 0x388   :  { %4526 = vmatpush3.bf16.msra.mxu1 %v3755_v57  ;;  %4546 = vmatpush3.bf16.msra.mxu0 %v3764_v58  ;;  %v3074_v57 = vld [vmem:[#allocation19 + $0xd8] sm:$0xf] }
 0x389   :  { %4527 = vmatprep.subr.bf16.mxu1 %v5026_v0  ;;  %4547 = vmatprep.subr.bf16.mxu0 %v5026_v0  ;;  %v3075_v58 = vld [vmem:[#allocation19 + $0xf8] sm:$0xf] }
 0x38a   :  { %v3770_v39 = vcombine.low %v3074_v57, %v3075_v58 }
 0x38c   :  { %4528 = vmatpush3.bf16.msra.mxu1 %v3754_v1  ;;  %4548 = vmatpush3.bf16.msra.mxu0 %v3763_v2  ;;  %v3072_v1 = vld [vmem:[#allocation19 + $0x98] sm:$0xf] }
 0x38d   :  { %4529 = vmatprep.subr.bf16.mxu1 %v5026_v0  ;;  %4549 = vmatprep.subr.bf16.mxu0 %v5026_v0  ;;  %v3073_v2 = vld [vmem:[#allocation19 + $0xb8] sm:$0xf] }
 0x38e   :  { %v3769_v6 = vcombine.low %v3072_v1, %v3073_v2 }
 0x390   :  { %4530 = vmatpush3.bf16.msra.mxu1 %v3753_v11  ;;  %4550 = vmatpush3.bf16.msra.mxu0 %v3762_v12  ;;  %v3070_v11 = vld [vmem:[#allocation19 + $0x58] sm:$0xf] }
 0x391   :  { %4531 = vmatprep.subr.bf16.mxu1 %v5026_v0  ;;  %4551 = vmatprep.subr.bf16.mxu0 %v5026_v0  ;;  %v3071_v12 = vld [vmem:[#allocation19 + $0x78] sm:$0xf] }
 0x392   :  { %v3768_v14 = vcombine.low %v3070_v11, %v3071_v12  ;;  %v3757_v11 = vld [vmem:[%s5638_s12 + $0x4] ss:$0 sm:$0xff] }
 0x394   :  { %4532 = vmatpush3.bf16.msra.mxu1 %v3752_v46  ;;  %4552 = vmatpush3.bf16.msra.mxu0 %v3761_v15  ;;  %v3068_v46 = vld [vmem:[#allocation19 + $0x18] sm:$0xf] }
 0x395   :  { %4533 = vmatprep.subr.bf16.mxu1 %v5026_v0  ;;  %4553 = vmatprep.subr.bf16.mxu0 %v5026_v0  ;;  %v3069_v15 = vld [vmem:[#allocation19 + $0x38] sm:$0xf] }
 0x396   :  { %v3767_v36 = vcombine.low %v3068_v46, %v3069_v15 }
 0x398   :  { %4534 = vmatpush3.bf16.msra.mxu1 %v3751_v19  ;;  %4554 = vmatpush3.bf16.msra.mxu0 %v3760_v20  ;;  %v4693_v19 = vld [vmem:[#allocation20 + $0x38] sm:$0xff]   ;;  %v4694_v20 = vld [vmem:[#allocation20 + $0x30] sm:$0xff]  }
 0x399   :  { %4535 = vmatprep.subr.bf16.mxu1 %v5026_v0  ;;  %4555 = vmatprep.subr.bf16.mxu0 %v5026_v0 }
 0x39c   :  { %4536 = vmatpush3.bf16.msra.mxu1 %v3750_v9  ;;  %4556 = vmatpush3.bf16.msra.mxu0 %v3759_v24  ;;  %v4699_v9 = vld [vmem:[#allocation20 + $0x8] sm:$0xff]   ;;  %v4700_v24 = vld [vmem:[#allocation20] sm:$0xff]  }
 0x39d   :  { %4537 = vmatprep.subr.bf16.mxu1 %v5026_v0  ;;  %4557 = vmatprep.subr.bf16.mxu0 %v5026_v0 }
 0x3a0   :  { %4538 = vmatpush3.bf16.msra.mxu1 %v3749_v55  ;;  %4558 = vmatpush3.bf16.msra.mxu0 %v3758_v29  ;;  %v4705_v55 = vld [vmem:[#allocation22 + $0x18] sm:$0xff]   ;;  %v4707_v29 = vld [vmem:[#allocation22 + $0x8] sm:$0xff]  }
 0x3a1   :  { %4563 = vmatprep.subr.bf16.mxu1 %v5026_v0  ;;  %4583 = vmatprep.subr.bf16.mxu0 %v5026_v0 }
 0x3a3   :  { %4540 = vmatmul.mubr.bf16.vlgmr.msra.gmra.mxu1 %v5507_v8  ;;  %4560 = vmatmul.mubr.bf16.vlgmr.msra.gmra.mxu0 %v5507_v8 }
 0x3a4   :  { %4564 = vmatpush3.bf16.msra.mxu1 %v3774_v7  ;;  %4584 = vmatpush3.bf16.msra.mxu0 %v3783_v35 }
 0x3a5   :  { %4565 = vmatprep.subr.bf16.mxu1 %v5026_v0  ;;  %4585 = vmatprep.subr.bf16.mxu0 %v5026_v0 }
 0x3a6   :  { %4579 = vmatprep.mubr.msk.bf16.mxu1 %vm5027_vm0, %v5026_v0  ;;  %4599 = vmatprep.mubr.msk.bf16.mxu0 %vm5027_vm0, %v5026_v0 }
 0x3a8   :  { %4566 = vmatpush3.bf16.msra.mxu1 %v3773_v10  ;;  %4586 = vmatpush3.bf16.msra.mxu0 %v3782_v41 }
 0x3a9   :  { %4567 = vmatprep.subr.bf16.mxu1 %v5026_v0  ;;  %4587 = vmatprep.subr.bf16.mxu0 %v5026_v0 }
 0x3ac   :  { %4568 = vmatpush3.bf16.msra.mxu1 %v3772_v49  ;;  %4588 = vmatpush3.bf16.msra.mxu0 %v3781_v50 }
 0x3ad   :  { %4569 = vmatprep.subr.bf16.mxu1 %v5026_v0  ;;  %4589 = vmatprep.subr.bf16.mxu0 %v5026_v0 }
 0x3b0   :  { %4570 = vmatpush3.bf16.msra.mxu1 %v3771_v56  ;;  %4590 = vmatpush3.bf16.msra.mxu0 %v3780_v17 }
 0x3b1   :  { %4571 = vmatprep.subr.bf16.mxu1 %v5026_v0  ;;  %4591 = vmatprep.subr.bf16.mxu0 %v5026_v0 }
 0x3b4   :  { %4572 = vmatpush3.bf16.msra.mxu1 %v3770_v39  ;;  %4592 = vmatpush3.bf16.msra.mxu0 %v3779_v62 }
 0x3b5   :  { %4573 = vmatprep.subr.bf16.mxu1 %v5026_v0  ;;  %4593 = vmatprep.subr.bf16.mxu0 %v5026_v0 }
 0x3b8   :  { %4574 = vmatpush3.bf16.msra.mxu1 %v3769_v6  ;;  %4594 = vmatpush3.bf16.msra.mxu0 %v3778_v48  ;;  %v3748_v48 = vld [vmem:[%s5638_s12 + $0x3] ss:$0 sm:$0xff] }
 0x3b9   :  { %4575 = vmatprep.subr.bf16.mxu1 %v5026_v0  ;;  %4595 = vmatprep.subr.bf16.mxu0 %v5026_v0 }
 0x3bc   :  { %4576 = vmatpush3.bf16.msra.mxu1 %v3768_v14  ;;  %4596 = vmatpush3.bf16.msra.mxu0 %v3777_v63 }
 0x3bd   :  { %4577 = vmatprep.subr.bf16.mxu1 %v5026_v0  ;;  %4597 = vmatprep.subr.bf16.mxu0 %v5026_v0 }
 0x3c0   :  { %4578 = vmatpush3.bf16.msra.mxu1 %v3767_v36  ;;  %4598 = vmatpush3.bf16.msra.mxu0 %v3776_v3 }
 0x3c1   :  { %4623 = vmatprep.subr.bf16.mxu0 %v5026_v0  ;;  %4603 = vmatprep.subr.bf16.mxu1 %v5026_v0 }
 0x3c3   :  { %4580 = vmatmul.mubr.bf16.vlgmr.msra.gmra.mxu1 %v5507_v8  ;;  %4600 = vmatmul.mubr.bf16.vlgmr.msra.gmra.mxu0 %v5507_v8 }
 0x3c4   :  { %4624 = vmatpush3.bf16.msra.mxu0 %v4693_v19  ;;  %4639 = vmatprep.mubr.msk.bf16.mxu0 %vm5027_vm0, %v5026_v0 }
 0x3c5   :  { %4625 = vmatprep.subr.bf16.mxu0 %v5026_v0  ;;  %4619 = vmatprep.mubr.msk.bf16.mxu1 %vm5027_vm0, %v5026_v0 }
 0x3c6   :  { %4604 = vmatpush3.bf16.msra.mxu1 %v4701_v25 }
 0x3c7   :  { %4605 = vmatprep.subr.bf16.mxu1 %v5026_v0 }
 0x3c8   :  { %4626 = vmatpush3.bf16.msra.mxu0 %v4694_v20 }
 0x3c9   :  { %4627 = vmatprep.subr.bf16.mxu0 %v5026_v0 }
 0x3ca   :  { %4606 = vmatpush3.bf16.msra.mxu1 %v4702_v26  ;;  %v3784_v26 = vld [vmem:[%s5638_s12 + $0x7] ss:$0 sm:$0xff] }
 0x3cb   :  { %4607 = vmatprep.subr.bf16.mxu1 %v5026_v0 }
 0x3cc   :  { %4628 = vmatpush3.bf16.msra.mxu0 %v4695_v5 }
 0x3cd   :  { %4629 = vmatprep.subr.bf16.mxu0 %v5026_v0 }
 0x3ce   :  { %4608 = vmatpush3.bf16.msra.mxu1 %v4703_v27 }
 0x3cf   :  { %4609 = vmatprep.subr.bf16.mxu1 %v5026_v0 }
 0x3d0   :  { %4630 = vmatpush3.bf16.msra.mxu0 %v4696_v21 }
 0x3d1   :  { %4631 = vmatprep.subr.bf16.mxu0 %v5026_v0 }
 0x3d2   :  { %4610 = vmatpush3.bf16.msra.mxu1 %v4704_v28 }
 0x3d3   :  { %4611 = vmatprep.subr.bf16.mxu1 %v5026_v0 }
 0x3d4   :  { %4632 = vmatpush3.bf16.msra.mxu0 %v4697_v22 }
 0x3d5   :  { %4633 = vmatprep.subr.bf16.mxu0 %v5026_v0 }
 0x3d6   :  { %4612 = vmatpush3.bf16.msra.mxu1 %v4705_v55 }
 0x3d7   :  { %4613 = vmatprep.subr.bf16.mxu1 %v5026_v0 }
 0x3d8   :  { %4634 = vmatpush3.bf16.msra.mxu0 %v4698_v23 }
 0x3d9   :  { %4635 = vmatprep.subr.bf16.mxu0 %v5026_v0 }
 0x3dc   :  { %4636 = vmatpush3.bf16.msra.mxu0 %v4699_v9 }
 0x3dd   :  { %4637 = vmatprep.subr.bf16.mxu0 %v5026_v0 }
 0x3e0   :  { %4638 = vmatpush3.bf16.msra.mxu0 %v4700_v24 }
 0x3e3   :  { %4640 = vmatmul.mubr.bf16.vlgmr.msra.gmra.mxu0 %v5507_v8  ;;  %v4706_v8 = vld [vmem:[#allocation22 + $0x10] sm:$0xff]  }
 0x3e4   :  { %4614 = vmatpush3.bf16.msra.mxu1 %v4706_v8 }
 0x3e5   :  { %4615 = vmatprep.subr.bf16.mxu1 %v5026_v0 }
 0x3e8   :  { %4616 = vmatpush3.bf16.msra.mxu1 %v4707_v29 }
 0x3e9   :  { %4617 = vmatprep.subr.bf16.mxu1 %v5026_v0 }
 0x3ec   :  { %4618 = vmatpush3.bf16.msra.mxu1 %v4708_v61 }
 0x423   :  { %v2472_v33 = vpop.f32.mrf.mxu1  ;;  %v2586_v7 = vpop.f32.mrf.mxu0 }
 0x424   :  { %v2485_v35 = vadd.f32 %v3721_v31, %v2472_v33  ;;  %v2599_v37 = vadd.f32 %v3730_v32, %v2586_v7 }
 0x425   :  { %v4461_v38 = vpop.f32.mrf.mxu1  ;;  %v4481_v40 = vpop.f32.mrf.mxu0 }
 0x426   :  { %v2601_v42 = vmax.f32 %v2485_v35, %v2599_v37 }
 0x427   :  { %v2475_v10 = vpop.f32.mrf.mxu1  ;;  %v2589_v41 = vpop.f32.mrf.mxu0 }
 0x428   :  { %v2486_v0 = vadd.f32 %v3721_v31, %v2475_v10  ;;  %v2600_v43 = vadd.f32 %v3730_v32, %v2589_v41 }
 0x429   :  { %v4462_v45 = vpop.f32.mrf.mxu1  ;;  %v4482_v47 = vpop.f32.mrf.mxu0 }
 0x42a   :  { %v2602_v44 = vmax.f32 %v2486_v0, %v2600_v43  ;;  %v3801_v43 = vld [vmem:[%s5641_s15] ss:$0 sm:$0xff] }
 0x443   :  { %v2702_v49 = vpop.f32.mrf.mxu1  ;;  %v2818_v50 = vpop.f32.mrf.mxu0 }
 0x444   :  { %v2715_v30 = vadd.f32 %v3739_v4, %v2702_v49  ;;  %v2831_v53 = vadd.f32 %v3748_v48, %v2818_v50 }
 0x445   :  { %v4501_v51 = vpop.f32.mrf.mxu1  ;;  %v4521_v52 = vpop.f32.mrf.mxu0 }
 0x446   :  { %v2717_v12 = vmax.f32 %v2601_v42, %v2715_v30 }
 0x447   :  { %v2705_v34 = vpop.f32.mrf.mxu1  ;;  %v2821_v54 = vpop.f32.mrf.mxu0 }
 0x448   :  { %v2716_v6 = vadd.f32 %v3739_v4, %v2705_v34  ;;  %v2833_v63 = vmax.f32 %v2717_v12, %v2831_v53  ;;  %v2832_v46 = vadd.f32 %v3748_v48, %v2821_v54 }
 0x449   :  { %v4502_v56 = vpop.f32.mrf.mxu1  ;;  %v4522_v17 = vpop.f32.mrf.mxu0 }
 0x44a   :  { %v2718_v13 = vmax.f32 %v2602_v44, %v2716_v6 }
 0x44c   :  { %v2834_v36 = vmax.f32 %v2718_v13, %v2832_v46 }
 0x463   :  { %v2934_v57 = vpop.f32.mrf.mxu1  ;;  %v3050_v58 = vpop.f32.mrf.mxu0 }
 0x464   :  { %v2947_v14 = vadd.f32 %v3757_v11, %v2934_v57  ;;  %v3063_v5 = vadd.f32 %v3766_v16, %v3050_v58 }
 0x465   :  { %v4541_v59 = vpop.f32.mrf.mxu1  ;;  %v4561_v60 = vpop.f32.mrf.mxu0 }
 0x466   :  { %v2949_v3 = vmax.f32 %v2833_v63, %v2947_v14 }
 0x467   :  { %v2937_v39 = vpop.f32.mrf.mxu1  ;;  %v3053_v62 = vpop.f32.mrf.mxu0 }
 0x468   :  { %v2948_v15 = vadd.f32 %v3757_v11, %v2937_v39  ;;  %v3065_v24 = vmax.f32 %v2949_v3, %v3063_v5  ;;  %v3064_v25 = vadd.f32 %v3766_v16, %v3053_v62 }
 0x469   :  { %v4542_v1 = vpop.f32.mrf.mxu1  ;;  %v4562_v2 = vpop.f32.mrf.mxu0 }
 0x46a   :  { %v2950_v21 = vmax.f32 %v2834_v36, %v2948_v15 }
 0x46c   :  { %v3066_v55 = vmax.f32 %v2950_v21, %v3064_v25 }
 0x483   :  { %v3166_v19 = vpop.f32.mrf.mxu1  ;;  %v3282_v20 = vpop.f32.mrf.mxu0 }
 0x484   :  { %v3179_v22 = vadd.f32 %v3775_v18, %v3166_v19  ;;  %v3295_v32 = vadd.f32 %v3784_v26, %v3282_v20 }
 0x485   :  { %v4581_v23 = vpop.f32.mrf.mxu1  ;;  %v4601_v9 = vpop.f32.mrf.mxu0 }
 0x486   :  { %v3181_v8 = vmax.f32 %v3065_v24, %v3179_v22 }
 0x487   :  { %v3169_v27 = vpop.f32.mrf.mxu1  ;;  %v3285_v28 = vpop.f32.mrf.mxu0 }
 0x488   :  { %v3180_v29 = vadd.f32 %v3775_v18, %v3169_v27  ;;  %v3296_v7 = vadd.f32 %v3784_v26, %v3285_v28  ;;  %v3297_v35 = vmax.f32 %v3181_v8, %v3295_v32 }
 0x489   :  { %v4582_v61 = vpop.f32.mrf.mxu1  ;;  %v4602_v31 = vpop.f32.mrf.mxu0 }
 0x48a   :  { %v3182_v33 = vmax.f32 %v3066_v55, %v3180_v29 }
 0x48c   :  { %v3298_v37 = vmax.f32 %v3182_v33, %v3296_v7 }
 0x48e   :  { %v3299_v38 = vpack.c.bf16 %v3298_v37, %v3297_v35 }
 0x490   :  { %4620 = vmatmul.mubr.bf16.vlgmr.msra.gmra.mxu1 %v3299_v38 }
 0x4a3   :  { %v3503_v40 = vpop.f32.mrf.mxu0 }
 0x4a5   :  { %v4641_v42 = vpop.f32.mrf.mxu0 }
 0x4a7   :  { %v3506_v10 = vpop.f32.mrf.mxu0 }
 0x4a9   :  { %v4642_v41 = vpop.f32.mrf.mxu0 }
 0x550   :  { %v3414_v0 = vpop.f32.mrf.mxu1 }
 0x551   :  { %v3504_v45 = vadd.f32 %v3503_v40, %v3414_v0 }
 0x552   :  { %v4621_v47 = vpop.f32.mrf.mxu1 }
 0x553   :  { %v3517_v44 = vadd.f32 %v3801_v43, %v3504_v45 }
 0x554   :  { %v3417_v49 = vpop.f32.mrf.mxu1 }
 0x555   :  { %v3507_v50 = vadd.f32 %v3506_v10, %v3417_v49  ;;  %3519 = vmax.xlane.f32.xlu0 %v3517_v44 }
 0x556   :  { %v4622_v51 = vpop.f32.mrf.mxu1 }
 0x557   :  { %v3518_v52 = vadd.f32 %v3801_v43, %v3507_v50 }
 0x559   :  { %3521 = vmax.xlane.f32.xlu0 %v3518_v52 }
 0x5de   :  { %v3520_v34 = vpop.xlane.xlu0 %3519 }
 0x5df   :  { %3523 = vst [vmem:[#allocation23] sm:$0xff] %v3520_v34 }
 0x5e2   :  { %v3522_v54 = vpop.xlane.xlu0 %3521 }
 0x5e3   :  { %3524 = vst [vmem:[#allocation23 + $0x8] sm:$0xff] %v3522_v54 }
 0x5e4   :  { %4984 = shalt.err (!%p4981_p13)
}
 0x5e5   :  { %s5029_s15 = smov 128   ;;  %s5030_s23 = smov 8  }
 0x5e6   :  { %3536 = dma.vmem_to_hbm [thread:$0]  %s3531_s1, 256, %s5642_s16, [#allocation4], %s5029_s15, %s5029_s15, %s5030_s23  }
 0x5e7   :  { %5007 = dma.done.wait [#allocation4], 256  }
 0x5e8   :  { %5008 = vsyncadd [#allocation4], 4294967040 }
 0x5e9   :  { %3540 = vsyncpa [#allocation3], 1 }
 0x5ea   :  { %3541 = vsyncpa [#allocation6], 1 }
 0x5eb   :  { %3542 = vsyncpa [#allocation9], 1 }
 0x5ec   :  { %3543 = vsyncpa [#allocation12], 1 }
 0x5ed   :  { %3544 = vsyncpa [#allocation15], 1 }
 0x5ee   :  { %3545 = vsyncpa [#allocation18], 1 }
 0x5ef   :  { %3546 = vsyncpa [#allocation21], 1 }
 0x5f0   :  { %3547 = vsyncpa [#allocation4], 1 }

</bundles_post_ra>
